<compile_context>
chip_gen: v6e
topology: v6e:2x2x1
jax: 0.10.0
libtpu: 0.0.40
codegen_flags: <defaults>
</compile_context>

<pallas_src>
import numpy as np
import jax
import jax.numpy as jnp
from jax.experimental import pallas as pl
from jax.experimental.pallas import tpu as pltpu


def _round_up(x: int, m: int) -> int:
    return (x + m - 1) // m * m


def _tpu_vmem_bytes() -> int:
    try:
        info = pltpu.get_tpu_info()
        return int(getattr(info, "vmem_capacity_bytes", 64 << 20))
    except Exception:
        return 64 << 20


def _pick_config():
    """Generation-dependent (tile_h, vmem_limit_bytes)."""
    vmem = _tpu_vmem_bytes()
    if vmem >= (100 << 20):          # v5e / v6e: 128 MiB VMEM
        return 32, 96 << 20
    return 16, 40 << 20              # v7x: 64 MiB per TensorCore


# ----------------------------------------------------------------------------
# Fused DoubleConv kernel: (conv3x3 + BN(eval) + ReLU) x 2 in one pallas_call
# ----------------------------------------------------------------------------
def double_conv_bn_relu_nhwc(x, w1, s1, b1, w2, s2, b2, *, tile_h=None):
    """x: (N,H,W,Cin); w1: (3,3,Cin,Cmid); w2: (3,3,Cmid,Cout);
    s*/b*: per-channel folded BN scale/shift.  Returns (N,H,W,Cout) in x.dtype."""
    N, H, W, Cin = x.shape
    Cmid = w1.shape[-1]
    Cout = w2.shape[-1]
    Cmid_p = _round_up(Cmid, 128)    # lane-aligned so conv2's kw-fold concat is free
    K1 = 9 * Cin                     # conv1 contraction dim after wrapper im2col

    th_cfg, vmem_limit = _pick_config()
    if tile_h is not None:
        th_cfg = tile_h
    TH = min(th_cfg, H)
    H_pad = _round_up(H, TH)
    n_tiles = H_pad // TH

    cdt = jnp.bfloat16               # MXU operand dtype (f32 accumulation in-kernel)
    out_dtype = x.dtype

    # ---- wrapper-side im2col + per-tile halo duplication ---------------------
    # xp row/col index r maps to original index r-2 (2 = conv1 pad + conv2 halo).
    xp = jnp.pad(x, ((0, 0), (2, 2 + H_pad - H), (2, 2), (0, 0))).astype(cdt)
    # xcol[n, i, j, :] = flattened (kh,kw,ci) 3x3xCin patch for conv1-output
    # position (i-1, j-1); covers the conv2 zero-padding ring too.
    xcol = jnp.concatenate(
        [xp[:, kh:kh + H_pad + 2, kw:kw + W + 2, :]
         for kh in range(3) for kw in range(3)], axis=-1)       # (N, H_pad+2, W+2, 9*Cin)
    # Pre-tile rows with a 2-row halo so BlockSpec tiles never overlap.
    xtiles = jnp.stack(
        [xcol[:, t * TH:t * TH + TH + 2] for t in range(n_tiles)],
        axis=1)                                                 # (N, T, TH+2, W+2, 9*Cin)

    # conv1 weights: single K = 9*Cin matmul, N padded to 128 lanes, bf16.
    w1r = jnp.pad(w1.reshape(K1, Cmid), ((0, 0), (0, Cmid_p - Cmid))).astype(cdt)
    # conv2 weights: kw folded into K, (3, 3*Cmid_p, Cout), row layout kw*Cmid_p + ci.
    w2r = jnp.pad(w2, ((0, 0), (0, 0), (0, Cmid_p - Cmid), (0, 0)))
    w2r = w2r.reshape(3, 3 * Cmid_p, Cout).astype(cdt)

    s1p = jnp.pad(s1, (0, Cmid_p - Cmid)).reshape(1, Cmid_p).astype(jnp.float32)
    b1p = jnp.pad(b1, (0, Cmid_p - Cmid)).reshape(1, Cmid_p).astype(jnp.float32)
    s2p = s2.reshape(1, Cout).astype(jnp.float32)
    b2p = b2.reshape(1, Cout).astype(jnp.float32)

    def kernel(x_ref, w1_ref, s1_ref, b1_ref, w2_ref, s2_ref, b2_ref, o_ref):
        t = pl.program_id(1)
        r0 = t * TH                                  # first output row of this tile

        # ---- conv1: ONE MXU matmul, K = 9*Cin, bf16 x bf16 -> f32 ------------
        patches = x_ref[0, 0].reshape((TH + 2) * (W + 2), K1)
        acc1 = jnp.dot(patches, w1_ref[...], preferred_element_type=jnp.float32)
        m = jnp.maximum(acc1 * s1_ref[...] + b1_ref[...], 0.0)
        m = m.reshape(TH + 2, W + 2, Cmid_p)

        # zero conv2's padding ring: conv1-output rows/cols outside [0,H)x[0,W)
        rr = jax.lax.broadcasted_iota(jnp.int32, (TH + 2, W + 2, 1), 0) + (r0 - 1)
        cc = jax.lax.broadcasted_iota(jnp.int32, (TH + 2, W + 2, 1), 1) - 1
        valid = (rr >= 0) & (rr < H) & (cc >= 0) & (cc < W)
        m = jnp.where(valid, m, 0.0).astype(cdt)

        # ---- conv2: kw folded into K (3 matmuls, K = 3*Cmid_p, bf16) ----------
        f2 = jnp.concatenate(
            [m[:, 0:W, :], m[:, 1:W + 1, :], m[:, 2:W + 2, :]], axis=-1)
        acc2 = jnp.zeros((TH * W, Cout), jnp.float32)
        for kh in range(3):
            lhs = f2[kh:kh + TH].reshape(TH * W, 3 * Cmid_p)
            acc2 = acc2 + jnp.dot(lhs, w2_ref[kh], preferred_element_type=jnp.float32)
        y = jnp.maximum(acc2 * s2_ref[...] + b2_ref[...], 0.0)
        # unpadded Cout store: only true output bytes hit HBM, no wrapper slice
        o_ref[0] = y.reshape(TH, W, Cout).astype(o_ref.dtype)

    flops = 2 * N * H_pad * W * 9 * (Cin * Cmid + Cmid * Cout)
    bytes_accessed = (
        N * n_tiles * (TH + 2) * (W + 2) * K1 * 2          # im2col'd input (bf16)
        + (K1 * Cmid_p + 9 * Cmid_p * Cout) * 2            # weights (bf16)
        + N * H_pad * W * Cout * jnp.dtype(out_dtype).itemsize)

    out = pl.pallas_call(
        kernel,
        out_shape=jax.ShapeDtypeStruct((N, H_pad, W, Cout), out_dtype),
        grid=(N, n_tiles),
        in_specs=[
            pl.BlockSpec((1, 1, TH + 2, W + 2, K1), lambda n, t: (n, t, 0, 0, 0)),
            pl.BlockSpec((K1, Cmid_p), lambda n, t: (0, 0)),
            pl.BlockSpec((1, Cmid_p), lambda n, t: (0, 0)),
            pl.BlockSpec((1, Cmid_p), lambda n, t: (0, 0)),
            pl.BlockSpec((3, 3 * Cmid_p, Cout), lambda n, t: (0, 0, 0)),
            pl.BlockSpec((1, Cout), lambda n, t: (0, 0)),
            pl.BlockSpec((1, Cout), lambda n, t: (0, 0)),
        ],
        out_specs=pl.BlockSpec((1, TH, W, Cout), lambda n, t: (n, t, 0, 0)),
        compiler_params=pltpu.CompilerParams(
            dimension_semantics=("parallel", "parallel"),
            vmem_limit_bytes=vmem_limit),
        cost_estimate=pl.CostEstimate(
            flops=flops, transcendentals=0, bytes_accessed=int(bytes_accessed)),
    )(xtiles, w1r, s1p, b1p, w2r, s2p, b2p)

    if H_pad != H:
        out = out[:, :H]
    return out


# ----------------------------------------------------------------------------
# Parameter construction (deterministic synthetic init, eval-mode BN folded)
# ----------------------------------------------------------------------------
def _fold_bn(conv_bias, gamma, beta, running_mean, running_var, eps=1e-5):
    scale = gamma / jnp.sqrt(running_var + eps)
    shift = beta + (conv_bias - running_mean) * scale
    return scale, shift


def init_inconv(key, in_channels, out_channels):
    mid = out_channels  # DoubleConv default: mid_channels = out_channels
    k1, k2, k3, k4 = jax.random.split(key, 4)
    w1 = jax.random.normal(k1, (3, 3, in_channels, mid), jnp.float32) / np.sqrt(9.0 * in_channels)
    b1 = jax.random.normal(k2, (mid,), jnp.float32) * 0.01
    w2 = jax.random.normal(k3, (3, 3, mid, out_channels), jnp.float32) / np.sqrt(9.0 * mid)
    b2 = jax.random.normal(k4, (out_channels,), jnp.float32) * 0.01
    # BatchNorm (eval mode) defaults: gamma=1, beta=0, running_mean=0, running_var=1
    s1, sh1 = _fold_bn(b1, jnp.ones((mid,)), jnp.zeros((mid,)),
                       jnp.zeros((mid,)), jnp.ones((mid,)))
    s2, sh2 = _fold_bn(b2, jnp.ones((out_channels,)), jnp.zeros((out_channels,)),
                       jnp.zeros((out_channels,)), jnp.ones((out_channels,)))
    return dict(w1=w1, s1=s1, b1=sh1, w2=w2, s2=s2, b2=sh2)


# ----------------------------------------------------------------------------
# Forward passes
# ----------------------------------------------------------------------------
def inconv_forward_nhwc(params, x_nhwc, *, tile_h=None):
    """Preferred entry point: NHWC in / NHWC out (no layout transposes)."""
    return double_conv_bn_relu_nhwc(
        x_nhwc, params["w1"], params["s1"], params["b1"],
        params["w2"], params["s2"], params["b2"], tile_h=tile_h)


def inconv_forward(params, x_nchw, *, tile_h=None):
    """NCHW in / NCHW out, matching the PyTorch module. Use the NHWC entry point
    end-to-end in a real network to avoid these transposes."""
    x = jnp.transpose(x_nchw, (0, 2, 3, 1))
    y = inconv_forward_nhwc(params, x, tile_h=tile_h)
    return jnp.transpose(y, (0, 3, 1, 2))


# ----------------------------------------------------------------------------
# Pure-JAX reference (for correctness check)
# ----------------------------------------------------------------------------
def _ref_inconv(params, x_nchw):
    def conv_bn_relu(x, w, scale, shift):
        y = jax.lax.conv_general_dilated(
            x, w, window_strides=(1, 1), padding=((1, 1), (1, 1)),
            dimension_numbers=("NCHW", "HWIO", "NCHW"),
            precision=jax.lax.Precision.HIGHEST)
        y = y * scale[None, :, None, None] + shift[None, :, None, None]
        return jnp.maximum(y, 0.0)
    y = conv_bn_relu(x_nchw, params["w1"], params["s1"], params["b1"])
    return conv_bn_relu(y, params["w2"], params["s2"], params["b2"])


if __name__ == "__main__":
    key = jax.random.PRNGKey(0)
    kx, kp = jax.random.split(key)

    # small shapes consistent with InConv: N=2, in_channels=4, out_channels=32, 16x16
    N, in_channels, out_channels, H, W = 2, 4, 32, 16, 16
    params = init_inconv(kp, in_channels, out_channels)
    x = jax.random.normal(kx, (N, in_channels, H, W), jnp.float32)

    fwd = jax.jit(inconv_forward)
    out = jax.block_until_ready(fwd(params, x))

    assert out.shape == (N, out_channels, H, W), out.shape
    assert bool(jnp.all(jnp.isfinite(out)))

    ref = _ref_inconv(params, x)
    err = float(jnp.max(jnp.abs(out - ref)))
    # bf16 MXU operands (f32 accumulation) vs. f32 HIGHEST-precision reference
    assert err < 5e-2, f"max abs err vs reference: {err}"

    print("KERNEL_OK")
</pallas_src>

<mosaic_0001>
module attributes {stable_mosaic.version = 11 : i64} {
  func.func @kernel(%arg0: i32, %arg1: i32, %arg2: memref<1x1x18x18x36xbf16, #tpu.memory_space<vmem>>, %arg3: memref<36x128xbf16, #tpu.memory_space<vmem>>, %arg4: memref<1x128xf32, #tpu.memory_space<vmem>>, %arg5: memref<1x128xf32, #tpu.memory_space<vmem>>, %arg6: memref<3x384x32xbf16, #tpu.memory_space<vmem>>, %arg7: memref<1x32xf32, #tpu.memory_space<vmem>>, %arg8: memref<1x32xf32, #tpu.memory_space<vmem>>, %arg9: memref<1x16x16x32xf32, #tpu.memory_space<vmem>>) attributes {dimension_semantics = [#tpu.dimension_semantics<parallel>, #tpu.dimension_semantics<parallel>], iteration_bounds = array<i64: 2, 1>, scalar_prefetch = 0 : i64, scratch_operands = 0 : i64, tpu.core_type = #tpu.core_type<tc>, window_params = [{transform_indices = @transform_0, window_bounds = array<i64: 1, 1, 18, 18, 36>}, {pipeline_mode = #tpu.pipeline_mode<synchronous>, transform_indices = @transform_1, window_bounds = array<i64: 36, 128>}, {pipeline_mode = #tpu.pipeline_mode<synchronous>, transform_indices = @transform_2, window_bounds = array<i64: 1, 128>}, {pipeline_mode = #tpu.pipeline_mode<synchronous>, transform_indices = @transform_3, window_bounds = array<i64: 1, 128>}, {pipeline_mode = #tpu.pipeline_mode<synchronous>, transform_indices = @transform_4, window_bounds = array<i64: 3, 384, 32>}, {pipeline_mode = #tpu.pipeline_mode<synchronous>, transform_indices = @transform_5, window_bounds = array<i64: 1, 32>}, {pipeline_mode = #tpu.pipeline_mode<synchronous>, transform_indices = @transform_6, window_bounds = array<i64: 1, 32>}, {transform_indices = @transform_7, window_bounds = array<i64: 1, 16, 16, 32>}]} {
    %c16_i32 = arith.constant 16 : i32
    %0 = arith.muli %arg1, %c16_i32 : i32
    %c0 = arith.constant 0 : index
    %c0_0 = arith.constant 0 : index
    %c0_1 = arith.constant 0 : index
    %c0_2 = arith.constant 0 : index
    %c0_3 = arith.constant 0 : index
    %1 = vector.load %arg2[%c0, %c0_0, %c0_1, %c0_2, %c0_3] : memref<1x1x18x18x36xbf16, #tpu.memory_space<vmem>>, vector<1x1x18x18x36xbf16>
    %2 = vector.shape_cast %1 : vector<1x1x18x18x36xbf16> to vector<18x18x36xbf16>
    %3 = vector.shape_cast %2 : vector<18x18x36xbf16> to vector<324x36xbf16>
    %c0_4 = arith.constant 0 : index
    %c0_5 = arith.constant 0 : index
    %4 = vector.load %arg3[%c0_4, %c0_5] : memref<36x128xbf16, #tpu.memory_space<vmem>>, vector<36x128xbf16>
    %cst = arith.constant dense<0.000000e+00> : vector<324x128xf32>
    %5 = tpu.matmul %3, %4, %cst {dimension_numbers = #tpu.dot_dimension_numbers<[1], [0], [0], [1], [0, 0, 1, 1], [], []>} : vector<324x36xbf16>, vector<36x128xbf16>, vector<324x128xf32> -> vector<324x128xf32>
    %c0_6 = arith.constant 0 : index
    %c0_7 = arith.constant 0 : index
    %6 = vector.load %arg4[%c0_6, %c0_7] : memref<1x128xf32, #tpu.memory_space<vmem>>, vector<1x128xf32>
    %7 = vector.broadcast %6 : vector<1x128xf32> to vector<324x128xf32>
    %8 = arith.mulf %5, %7 : vector<324x128xf32>
    %c0_8 = arith.constant 0 : index
    %c0_9 = arith.constant 0 : index
    %9 = vector.load %arg5[%c0_8, %c0_9] : memref<1x128xf32, #tpu.memory_space<vmem>>, vector<1x128xf32>
    %10 = vector.broadcast %9 : vector<1x128xf32> to vector<324x128xf32>
    %11 = arith.addf %8, %10 : vector<324x128xf32>
    %cst_10 = arith.constant 0.000000e+00 : f32
    %12 = vector.broadcast %cst_10 : f32 to vector<324x128xf32>
    %13 = arith.maximumf %11, %12 : vector<324x128xf32>
    %14 = vector.shape_cast %13 : vector<324x128xf32> to vector<18x18x128xf32>
    %15 = tpu.iota {dimensions = array<i32: 0>} : vector<18x18x1xi32>
    %c1_i32 = arith.constant 1 : i32
    %16 = arith.subi %0, %c1_i32 : i32
    %17 = vector.broadcast %16 : i32 to vector<18x18x1xi32>
    %18 = arith.addi %15, %17 : vector<18x18x1xi32>
    %19 = tpu.iota {dimensions = array<i32: 1>} : vector<18x18x1xi32>
    %c1_i32_11 = arith.constant 1 : i32
    %20 = vector.broadcast %c1_i32_11 : i32 to vector<18x18x1xi32>
    %21 = arith.subi %19, %20 : vector<18x18x1xi32>
    %c0_i32 = arith.constant 0 : i32
    %22 = vector.broadcast %c0_i32 : i32 to vector<18x18x1xi32>
    %23 = arith.cmpi sge, %18, %22 : vector<18x18x1xi32>
    %c16_i32_12 = arith.constant 16 : i32
    %24 = vector.broadcast %c16_i32_12 : i32 to vector<18x18x1xi32>
    %25 = arith.cmpi slt, %18, %24 : vector<18x18x1xi32>
    %26 = arith.andi %23, %25 : vector<18x18x1xi1>
    %c0_i32_13 = arith.constant 0 : i32
    %27 = vector.broadcast %c0_i32_13 : i32 to vector<18x18x1xi32>
    %28 = arith.cmpi sge, %21, %27 : vector<18x18x1xi32>
    %29 = arith.andi %26, %28 : vector<18x18x1xi1>
    %c16_i32_14 = arith.constant 16 : i32
    %30 = vector.broadcast %c16_i32_14 : i32 to vector<18x18x1xi32>
    %31 = arith.cmpi slt, %21, %30 : vector<18x18x1xi32>
    %32 = arith.andi %29, %31 : vector<18x18x1xi1>
    %cst_15 = arith.constant 0.000000e+00 : f32
    %33 = vector.shape_cast %32 : vector<18x18x1xi1> to vector<18x18x1xi1>
    %34 = vector.broadcast %33 : vector<18x18x1xi1> to vector<18x18x128xi1>
    %35 = vector.broadcast %cst_15 : f32 to vector<18x18x128xf32>
    %36 = arith.select %34, %14, %35 : vector<18x18x128xi1>, vector<18x18x128xf32>
    %37 = arith.truncf %36 : vector<18x18x128xf32> to vector<18x18x128xbf16>
    %38 = vector.extract_strided_slice %37 {offsets = [0, 0, 0], sizes = [18, 16, 128], strides = [1, 1, 1]} : vector<18x18x128xbf16> to vector<18x16x128xbf16>
    %39 = vector.extract_strided_slice %37 {offsets = [0, 1, 0], sizes = [18, 16, 128], strides = [1, 1, 1]} : vector<18x18x128xbf16> to vector<18x16x128xbf16>
    %40 = vector.extract_strided_slice %37 {offsets = [0, 2, 0], sizes = [18, 16, 128], strides = [1, 1, 1]} : vector<18x18x128xbf16> to vector<18x16x128xbf16>
    %41 = tpu.concatenate %38, %39, %40 in 2 : vector<18x16x128xbf16>, vector<18x16x128xbf16>, vector<18x16x128xbf16> -> vector<18x16x384xbf16>
    %cst_16 = arith.constant 0.000000e+00 : f32
    %42 = vector.broadcast %cst_16 : f32 to vector<256x32xf32>
    %43 = vector.extract_strided_slice %41 {offsets = [0, 0, 0], sizes = [16, 16, 384], strides = [1, 1, 1]} : vector<18x16x384xbf16> to vector<16x16x384xbf16>
    %44 = vector.shape_cast %43 : vector<16x16x384xbf16> to vector<256x384xbf16>
    %c0_17 = arith.constant 0 : index
    %c0_18 = arith.constant 0 : index
    %c0_19 = arith.constant 0 : index
    %45 = vector.load %arg6[%c0_17, %c0_18, %c0_19] : memref<3x384x32xbf16, #tpu.memory_space<vmem>>, vector<1x384x32xbf16>
    %46 = vector.shape_cast %45 : vector<1x384x32xbf16> to vector<384x32xbf16>
    %cst_20 = arith.constant dense<0.000000e+00> : vector<256x32xf32>
    %47 = tpu.matmul %44, %46, %cst_20 {dimension_numbers = #tpu.dot_dimension_numbers<[1], [0], [0], [1], [0, 0, 1, 1], [], []>} : vector<256x384xbf16>, vector<384x32xbf16>, vector<256x32xf32> -> vector<256x32xf32>
    %48 = arith.addf %42, %47 : vector<256x32xf32>
    %49 = vector.extract_strided_slice %41 {offsets = [1, 0, 0], sizes = [16, 16, 384], strides = [1, 1, 1]} : vector<18x16x384xbf16> to vector<16x16x384xbf16>
    %50 = vector.shape_cast %49 : vector<16x16x384xbf16> to vector<256x384xbf16>
    %c1 = arith.constant 1 : index
    %c0_21 = arith.constant 0 : index
    %c0_22 = arith.constant 0 : index
    %51 = vector.load %arg6[%c1, %c0_21, %c0_22] : memref<3x384x32xbf16, #tpu.memory_space<vmem>>, vector<1x384x32xbf16>
    %52 = vector.shape_cast %51 : vector<1x384x32xbf16> to vector<384x32xbf16>
    %cst_23 = arith.constant dense<0.000000e+00> : vector<256x32xf32>
    %53 = tpu.matmul %50, %52, %cst_23 {dimension_numbers = #tpu.dot_dimension_numbers<[1], [0], [0], [1], [0, 0, 1, 1], [], []>} : vector<256x384xbf16>, vector<384x32xbf16>, vector<256x32xf32> -> vector<256x32xf32>
    %54 = arith.addf %48, %53 : vector<256x32xf32>
    %55 = vector.extract_strided_slice %41 {offsets = [2, 0, 0], sizes = [16, 16, 384], strides = [1, 1, 1]} : vector<18x16x384xbf16> to vector<16x16x384xbf16>
    %56 = vector.shape_cast %55 : vector<16x16x384xbf16> to vector<256x384xbf16>
    %c2 = arith.constant 2 : index
    %c0_24 = arith.constant 0 : index
    %c0_25 = arith.constant 0 : index
    %57 = vector.load %arg6[%c2, %c0_24, %c0_25] : memref<3x384x32xbf16, #tpu.memory_space<vmem>>, vector<1x384x32xbf16>
    %58 = vector.shape_cast %57 : vector<1x384x32xbf16> to vector<384x32xbf16>
    %cst_26 = arith.constant dense<0.000000e+00> : vector<256x32xf32>
    %59 = tpu.matmul %56, %58, %cst_26 {dimension_numbers = #tpu.dot_dimension_numbers<[1], [0], [0], [1], [0, 0, 1, 1], [], []>} : vector<256x384xbf16>, vector<384x32xbf16>, vector<256x32xf32> -> vector<256x32xf32>
    %60 = arith.addf %54, %59 : vector<256x32xf32>
    %c0_27 = arith.constant 0 : index
    %c0_28 = arith.constant 0 : index
    %61 = vector.load %arg7[%c0_27, %c0_28] : memref<1x32xf32, #tpu.memory_space<vmem>>, vector<1x32xf32>
    %62 = vector.broadcast %61 : vector<1x32xf32> to vector<256x32xf32>
    %63 = arith.mulf %60, %62 : vector<256x32xf32>
    %c0_29 = arith.constant 0 : index
    %c0_30 = arith.constant 0 : index
    %64 = vector.load %arg8[%c0_29, %c0_30] : memref<1x32xf32, #tpu.memory_space<vmem>>, vector<1x32xf32>
    %65 = vector.broadcast %64 : vector<1x32xf32> to vector<256x32xf32>
    %66 = arith.addf %63, %65 : vector<256x32xf32>
    %cst_31 = arith.constant 0.000000e+00 : f32
    %67 = vector.broadcast %cst_31 : f32 to vector<256x32xf32>
    %68 = arith.maximumf %66, %67 : vector<256x32xf32>
    %69 = vector.shape_cast %68 : vector<256x32xf32> to vector<16x16x32xf32>
    %c0_32 = arith.constant 0 : index
    %c0_33 = arith.constant 0 : index
    %c0_34 = arith.constant 0 : index
    %c0_35 = arith.constant 0 : index
    %70 = vector.load %arg9[%c0_32, %c0_33, %c0_34, %c0_35] : memref<1x16x16x32xf32, #tpu.memory_space<vmem>>, vector<1x16x16x32xf32>
    %71 = vector.shape_cast %70 : vector<1x16x16x32xf32> to vector<16x16x32xf32>
    %72 = vector.shape_cast %69 : vector<16x16x32xf32> to vector<1x16x16x32xf32>
    tpu.vector_store %arg9[%c0_32, %c0_33, %c0_34, %c0_35], %72 {strides = array<i32>} : memref<1x16x16x32xf32, #tpu.memory_space<vmem>>, vector<1x16x16x32xf32>,
    return
  }
  func.func @transform_0(%arg0: i32, %arg1: i32) -> (i32, i32, i32, i32, i32) {
    %c0_i32 = arith.constant 0 : i32
    %c0_i32_0 = arith.constant 0 : i32
    %c0_i32_1 = arith.constant 0 : i32
    %c0_i32_2 = arith.constant 0 : i32
    return %arg0, %arg1, %c0_i32, %c0_i32_0, %c0_i32_1 : i32, i32, i32, i32, i32
  }
  func.func @transform_1(%arg0: i32, %arg1: i32) -> (i32, i32) {
    %c0_i32 = arith.constant 0 : i32
    %c0_i32_0 = arith.constant 0 : i32
    %c0_i32_1 = arith.constant 0 : i32
    return %c0_i32, %c0_i32_0 : i32, i32
  }
  func.func @transform_2(%arg0: i32, %arg1: i32) -> (i32, i32) {
    %c0_i32 = arith.constant 0 : i32
    %c0_i32_0 = arith.constant 0 : i32
    %c0_i32_1 = arith.constant 0 : i32
    return %c0_i32, %c0_i32_0 : i32, i32
  }
  func.func @transform_3(%arg0: i32, %arg1: i32) -> (i32, i32) {
    %c0_i32 = arith.constant 0 : i32
    %c0_i32_0 = arith.constant 0 : i32
    %c0_i32_1 = arith.constant 0 : i32
    return %c0_i32, %c0_i32_0 : i32, i32
  }
  func.func @transform_4(%arg0: i32, %arg1: i32) -> (i32, i32, i32) {
    %c0_i32 = arith.constant 0 : i32
    %c0_i32_0 = arith.constant 0 : i32
    %c0_i32_1 = arith.constant 0 : i32
    %c0_i32_2 = arith.constant 0 : i32
    return %c0_i32, %c0_i32_0, %c0_i32_1 : i32, i32, i32
  }
  func.func @transform_5(%arg0: i32, %arg1: i32) -> (i32, i32) {
    %c0_i32 = arith.constant 0 : i32
    %c0_i32_0 = arith.constant 0 : i32
    %c0_i32_1 = arith.constant 0 : i32
    return %c0_i32, %c0_i32_0 : i32, i32
  }
  func.func @transform_6(%arg0: i32, %arg1: i32) -> (i32, i32) {
    %c0_i32 = arith.constant 0 : i32
    %c0_i32_0 = arith.constant 0 : i32
    %c0_i32_1 = arith.constant 0 : i32
    return %c0_i32, %c0_i32_0 : i32, i32
  }
  func.func @transform_7(%arg0: i32, %arg1: i32) -> (i32, i32, i32, i32) {
    %c0_i32 = arith.constant 0 : i32
    %c0_i32_0 = arith.constant 0 : i32
    %c0_i32_1 = arith.constant 0 : i32
    return %arg0, %arg1, %c0_i32, %c0_i32_0 : i32, i32, i32, i32
  }
}

</mosaic_0001>

<bundles_post_ra>
// kernel: inconv_forward.1
= control target key start
LH: loop header
LB: loop body
LE: loop exit
PB: predicated region body
PF: predicated region fallthrough
CT: control target
= control target key end

     0   :  { %12 = vsyncpa [#allocation3], 0  ;;  %s10688_s0 = inlined_call_operand.vmem [shape: bf16[2,1,18,18,36], index: 0, kind: input, shape index: {}]   ;;  %s10689_s1 = inlined_call_operand.vmem [shape: bf16[36,128], index: 1, kind: input, shape index: {}]   ;;  %s10690_s2 = inlined_call_operand.vmem [shape: f32[1,128], index: 2, kind: input, shape index: {}]   ;;  %s10691_s3 = inlined_call_operand.vmem [shape: f32[1,128], index: 3, kind: input, shape index: {}]   ;;  %s10692_s4 = inlined_call_operand.vmem [shape: bf16[3,384,32], index: 4, kind: input, shape index: {}]   ;;  %s10693_s5 = inlined_call_operand.vmem [shape: f32[1,32], index: 5, kind: input, shape index: {}]   ;;  %s10694_s6 = inlined_call_operand.vmem [shape: f32[1,32], index: 6, kind: input, shape index: {}]   ;;  %s10695_s7 = inlined_call_operand.hbm [shape: f32[2,16,16,32], index: 7, kind: output, shape index: {}]  }
   0x1   :  { %14 = vsyncpa [#allocation3 + $0x1], 0  ;;  %s8420_s24 = smov 0   ;;  %s8422_s25 = smov 0  }
   0x2   :  { %s8424_s26 = smov 0   ;;  %s8426_s27 = smov 0  }
   0x3   :  { %s8428_s28 = smov 0   ;;  %s8430_s29 = smov 0  }
   0x4 LB: > { %s7027_s30 = sadd.s32 4294967295, %s8368_s29   ;;  %s7028_s8 = sadd.s32 4294967294, %s8368_s29   ;;  %s8368_s29 = sphi %s8430_s29, %s20_s29   ;;  %s8364_s28 = sphi %s8428_s28, %s10775_s28   ;;  %s8360_s27 = sphi %s8426_s27, %s10774_s27   ;;  %s8356_s26 = sphi %s8424_s26, %s10773_s26   ;;  %s8352_s25 = sphi %s8422_s25, %s10772_s25   ;;  %s8348_s24 = sphi %s8420_s24, %s10771_s24  }
   0x5   : > { %s32_s9 = sadd.s32 1, %s8364_s28  ;;  %s195_s10 = sadd.s32 1, %s8356_s26 }
   0x6   : > { %p34_p0 = scmp.ge.s32.totalorder %s32_s9, 2  ;;  %p205_p1 = scmp.ne.s32.totalorder %s8356_s26, %s8352_s25 }
   0x7   : > { %p206_p2 = scmp.eq.s32.totalorder %s7027_s30, 1  ;;  %p211_p3 = scmp.ne.s32.totalorder %s8352_s25, %s8348_s24 }
   0x8   : > { %s10777_s9 = smov (%p34_p0, %s32_s9), 0  ;;  %p212_p5 = scmp.eq.s32.totalorder %s7028_s8, 1 }
   0x9   : > { %p8460_p4 = por %p206_p2, %p205_p1  ;;  %s190_s12 = ssub.s32 %s8364_s28, %s10777_s9 }
   0xa   : > { %p7031_p6 = scmp.ge.s32.totalorder %s8368_s29, 1  ;;  %p193_p7 = scmp.eq.s32.totalorder %s190_s12, 0 }
   0xb   : > { %p8467_p8 = por %p212_p5, %p211_p3  ;;  %p260_p9 = scmp.lt.s32.totalorder %s8368_s29, 3 }
   0xc   : > { %s8473_s14 = scalar_select %p193_p7, %s8356_s26, %s195_s10  }
   0xd   : > { %p261_p10 = pnand %p7031_p6, %p260_p9 }
   0xf   : > { %264 = sbr.rel (%p261_p10) target bundleno = 898 (0x382), region = 48 }
  0x14   : > { %v8212_v0 = vld [vmem:[%s10689_s1 + $0x10] ss:$0 sps:$4 sm:$0x33]   ;;  %v427_v1 = vlaneseq  ;;  %v8370_v2 = vmov 0.0   ;;  %vm2611_vm0 = vcmask 1041408   ;;  %v8213_v4 = vld [vmem:[%s10689_s1 + $0x8] sm:$0xff]  }
  0x15   : > { %7881 = vmatprep.subr.bf16.mxu0 %v8370_v2  ;;  %v2613_v3 = vsel %vm2611_vm0, %v8212_v0, 0  ;;  %p296_p11 = scmp.lt.s32.totalorder %s8360_s27, 1  ;;  %vm8371_vm1 = vmmov 0   ;;  %v8372_v6 = vmov 1966171168   ;;  %v8214_v9 = vld [vmem:[%s10689_s1] sm:$0xff]  }
  0x16   : > { %7882 = vmatpush3.bf16.msra.mxu0 %v2613_v3  ;;  %v8483_v5 = vshrl.u32 %v427_v1, 7  ;;  %7887 = vmatprep.mubr.msk.bf16.mxu0 %vm8371_vm1, %v8370_v2  ;;  %v425_v7 = vunpack.c.l.s4 %v8372_v6  ;;  %vm2547_vm2 = vcmask 293888   ;;  %vm5136_vm5 = vcmask 1046528   ;;  %s293_s18 = sand.u32 1, %s8352_s25  }
  0x17   : > { %7883 = vmatprep.subr.bf16.mxu0 %v8370_v2  ;;  %s297_s19 = scalar_select %p296_p11, %s8360_s27, 1  ;;  %vm4865_vm6 = vsmask.f32 7424  ;;  %vm8375_vm7 = vmmov 1   ;;  %vm6895_vm9 = vcmask 261120  }
  0x18   : > { %v426_v8 = vunpack.c.0.s8 %v425_v7  ;;  %s7032_s23 = sshll.u32 %s293_s18, 8 }
  0x19   : > { %s8147_s22 = smul.u32 216, %s297_s19  ;;  %s10475_s30 = scalar_lea.vmem [#allocation2], %s7032_s23 }
  0x1a   : > { %7884 = vmatpush3.bf16.msra.mxu0 %v8213_v4  ;;  %v8494_v10 = vsub.s32 %v426_v8, %v8483_v5  ;;  %s6945_s10 = sshll.u32 %s10475_s30, 4  ;;  %s8377_s19 = smov [#allocation2]   ;;  %s10635_s10 = int_to_ptr.vmem [resolvable:$true] %s6945_s10 }
  0x1b   : > { %7885 = vmatprep.subr.bf16.mxu0 %v8370_v2  ;;  %s8499_s8 = scalar_lea.vmem %s10688_s0, %s8147_s22  ;;  %s8292_s17 = scalar_lea.vmem %s10635_s10, 4096 }
  0x1c   : > { %v7034_v11 = vld.sshfl [vmem:[%s8499_s8] sm:$0x33 pattern:$0x75316420]  ;;  %p8293_p12 = scmp.ne.s32.totalorder %s10635_s10, %s8292_s17  ;;  %s8296_s20 = sshll.u32 %s8377_s19, 4  ;;  %s8297_s20 = int_to_ptr.vmem [resolvable:$false] %s8296_s20 }
  0x1d   : > { %v7035_v12 = vld.sshfl [vmem:[%s8499_s8 + $0x4] sm:$0x33 pattern:$0x75316420]  ;;  %v423_v13 = vcombine.high %v7034_v11, %v7034_v11  ;;  %v430_v14 = vrot.slane %v7034_v11, %v8494_v10  ;;  %s8298_s21 = scalar_lea.vmem %s8297_s20, 8192  ;;  %p8299_p1 = scmp.lt.s32.totalorder %s10635_s10, %s8297_s20 }
  0x1e   : > { %7886 = vmatpush3.bf16.msra.mxu0 %v8214_v9  ;;  %v447_v15 = vcombine.high %v7035_v12, %v7035_v12  ;;  %v454_v16 = vrot.slane %v7035_v12, %v8494_v10  ;;  %v7036_v17 = vld.sshfl [vmem:[%s8499_s8 + $0x8] sm:$0x1 pattern:$0x75316420]  ;;  %p8294_p13 = pnand %p8293_p12, %p8460_p4  ;;  %p8300_p2 = scmp.lt.s32.totalorder %s8298_s21, %s8292_s17 }
  0x1f   : > { %v437_v18 = vrot.slane %v423_v13, %v8494_v10  ;;  %v7037_v19 = vld.sshfl [vmem:[%s8499_s8 + $0xc] sm:$0x33 pattern:$0x75316420]  ;;  %v477_v22 = vrot.slane %v7036_v17, %v8494_v10 }
  0x20   : > { %v461_v20 = vrot.slane %v447_v15, %v8494_v10  ;;  %v7038_v21 = vld.sshfl [vmem:[%s8499_s8 + $0x10] sm:$0x33 pattern:$0x75316420]  ;;  %v485_v23 = vcombine.high %v7037_v19, %v7037_v19  ;;  %v492_v24 = vrot.slane %v7037_v19, %v8494_v10  ;;  %p8295_p0 = pneg %p8294_p13  ;;  %p8301_p3 = por %p8300_p2, %p8299_p1 }
  0x21   : > { %v1537_v25 = vcombine.low %v430_v14, %v437_v18  ;;  %v7088_v26 = vcombine.high %v430_v14, %v437_v18  ;;  %v509_v27 = vcombine.high %v7038_v21, %v7038_v21  ;;  %v516_v28 = vrot.slane %v7038_v21, %v8494_v10  ;;  %v7039_v37 = vld.sshfl [vmem:[%s8499_s8 + $0x14] sm:$0x1 pattern:$0x75316420] }
  0x22   : > { %v1539_v29 = vcombine.low %v454_v16, %v461_v20  ;;  %v7089_v30 = vcombine.high %v454_v16, %v461_v20  ;;  %v499_v31 = vrot.slane %v485_v23, %v8494_v10  ;;  %v500_v32 = vcombine.high %v492_v24, %v492_v24  ;;  %v7040_v42 = vld.sshfl [vmem:[%s8499_s8 + $0x18] sm:$0x33 pattern:$0x75316420]  ;;  %p8302_p5 = pnand %p8301_p3, %p8295_p0 }
  0x23   : > { %v1547_v33 = vrot.slane %v1537_v25, %v8494_v10  ;;  %v1554_v34 = vrot.slane %v7088_v26, %v8494_v10  ;;  %v523_v35 = vrot.slane %v509_v27, %v8494_v10  ;;  %v524_v36 = vcombine.high %v516_v28, %v516_v28  ;;  %v7041_v46 = vld.sshfl [vmem:[%s8499_s8 + $0x1c] sm:$0x33 pattern:$0x75316420] }
  0x24   : > { %v1561_v38 = vrot.slane %v1539_v29, %v8494_v10  ;;  %v1568_v39 = vrot.slane %v7089_v30, %v8494_v10  ;;  %v501_v40 = vcombine.high %v499_v31, %v499_v31  ;;  %v1586_v41 = vcombine.low %v477_v22, %v492_v24  ;;  %v7042_v56 = vld.sshfl [vmem:[%s8499_s8 + $0x20] sm:$0x1 pattern:$0x75316420] }
  0x25   : > { %v1569_v43 = vcombine.low %v1547_v33, %v1554_v34  ;;  %v1587_v44 = vcombine.low %v499_v31, %v500_v32  ;;  %v1589_v45 = vcombine.low %v523_v35, %v524_v36  ;;  %v525_v47 = vcombine.high %v523_v35, %v523_v35  ;;  %v7043_v1 = vld.sshfl [vmem:[%s8499_s8 + $0x24] sm:$0x33 pattern:$0x75316420] }
  0x26   : > { %v1570_v48 = vcombine.low %v1561_v38, %v1568_v39  ;;  %v1588_v49 = vcombine.low %v501_v40, %v516_v28  ;;  %v1596_v50 = vrot.slane %v1586_v41, %v8494_v10  ;;  %v539_v51 = vrot.slane %v7039_v37, %v8494_v10  ;;  %v7044_v7 = vld.sshfl [vmem:[%s8499_s8 + $0x28] sm:$0x33 pattern:$0x75316420] }
  0x27   : > { %v1577_v52 = vrot.slane %v1569_v43, %v8494_v10  ;;  %v1603_v53 = vrot.slane %v1587_v44, %v8494_v10  ;;  %v1617_v54 = vrot.slane %v1589_v45, %v8494_v10  ;;  %v547_v55 = vcombine.high %v7040_v42, %v7040_v42  ;;  %v7045_v25 = vld.sshfl [vmem:[%s8499_s8 + $0x2c] sm:$0x1 pattern:$0x75316420] }
  0x28   : > { %v1584_v57 = vrot.slane %v1570_v48, %v8494_v10  ;;  %v1610_v58 = vrot.slane %v1588_v49, %v8494_v10  ;;  %v554_v59 = vrot.slane %v7040_v42, %v8494_v10  ;;  %v571_v60 = vcombine.high %v7041_v46, %v7041_v46  ;;  %v7046_v28 = vld.sshfl [vmem:[%s8499_s8 + $0x30] sm:$0x33 pattern:$0x75316420] }
  0x29   : > { %v1618_v61 = vcombine.low %v1596_v50, %v1603_v53  ;;  %v561_v62 = vrot.slane %v547_v55, %v8494_v10  ;;  %v578_v63 = vrot.slane %v7041_v46, %v8494_v10  ;;  %v1635_v0 = vcombine.low %v525_v47, %v539_v51  ;;  %v7047_v44 = vld.sshfl [vmem:[%s8499_s8 + $0x34] sm:$0x33 pattern:$0x75316420] }
  0x2a   : > { %v1585_v3 = vcombine.low %v1577_v52, %v1584_v57  ;;  %v1619_v4 = vcombine.low %v1610_v58, %v1617_v54  ;;  %v585_v6 = vrot.slane %v571_v60, %v8494_v10  ;;  %v601_v8 = vrot.slane %v7042_v56, %v8494_v10  ;;  %v7049_v49 = vld.sshfl [vmem:[%s8499_s8 + $0x3c] sm:$0x33 pattern:$0x75316420] }
  0x2b   : > { %v1626_v9 = vrot.slane %v1618_v61, %v8494_v10  ;;  %v1636_v11 = vcombine.low %v554_v59, %v561_v62  ;;  %v7090_v12 = vcombine.high %v554_v59, %v561_v62  ;;  %v1645_v13 = vrot.slane %v1635_v0, %v8494_v10  ;;  %v7048_v55 = vld.sshfl [vmem:[%s8499_s8 + $0x38] sm:$0x1 pattern:$0x75316420] }
  0x2c   : > { %7888 = vmatmul.mubr.msk.bf16.vlgmr.msra.gmra.mxu0 %vm2547_vm2, %v1585_v3  ;;  %v1633_v14 = vrot.slane %v1619_v4, %v8494_v10  ;;  %v1638_v15 = vcombine.low %v578_v63, %v585_v6  ;;  %v609_v16 = vcombine.high %v7043_v1, %v7043_v1  ;;  %v616_v17 = vrot.slane %v7043_v1, %v8494_v10  ;;  %v7050_v62 = vld.sshfl [vmem:[%s8499_s8 + $0x40] sm:$0x33 pattern:$0x75316420] }
  0x2d   : > { %7891 = vmatprep.mubr.msk.bf16.mxu0 %vm8371_vm1, %v8370_v2  ;;  %v1652_v18 = vrot.slane %v1636_v11, %v8494_v10  ;;  %v1659_v19 = vrot.slane %v7090_v12, %v8494_v10  ;;  %v640_v20 = vrot.slane %v7044_v7, %v8494_v10  ;;  %v7091_v24 = vcombine.high %v578_v63, %v585_v6 }
  0x2e   : > { %v1666_v21 = vrot.slane %v1638_v15, %v8494_v10  ;;  %v623_v22 = vrot.slane %v609_v16, %v8494_v10  ;;  %v624_v23 = vcombine.high %v616_v17, %v616_v17  ;;  %v1685_v27 = vcombine.low %v601_v8, %v616_v17 }
  0x2f   : > { %v1667_v26 = vcombine.low %v1645_v13, %v1652_v18  ;;  %v633_v29 = vcombine.high %v7044_v7, %v7044_v7  ;;  %v1634_v30 = vcombine.low %v1626_v9, %v1633_v14  ;;  %v648_v35 = vcombine.high %v640_v20, %v640_v20  ;;  %v7052_v13 = vld.sshfl [vmem:[%s8499_s8 + $0x48] sm:$0x33 pattern:$0x75316420] }
  0x30   : > { %v1668_v31 = vcombine.low %v1659_v19, %v1666_v21  ;;  %v625_v32 = vcombine.high %v623_v22, %v623_v22  ;;  %v1686_v33 = vcombine.low %v623_v22, %v624_v23  ;;  %v1694_v37 = vrot.slane %v7091_v24, %v8494_v10  ;;  %v7051_v24 = vld.sshfl [vmem:[%s8499_s8 + $0x44] sm:$0x1 pattern:$0x75316420] }
  0x31   : > { %v647_v34 = vrot.slane %v633_v29, %v8494_v10  ;;  %v663_v38 = vrot.slane %v7045_v25, %v8494_v10  ;;  %v671_v39 = vcombine.high %v7046_v28, %v7046_v28  ;;  %v1675_v40 = vrot.slane %v1667_v26, %v8494_v10 }
  0x32   : > { %v1687_v36 = vcombine.low %v625_v32, %v640_v20  ;;  %v1701_v41 = vrot.slane %v1685_v27, %v8494_v10  ;;  %v678_v43 = vrot.slane %v7046_v28, %v8494_v10  ;;  %v1682_v45 = vrot.slane %v1668_v31, %v8494_v10 }
  0x33   : > { %v649_v42 = vcombine.high %v647_v34, %v647_v34  ;;  %v1708_v46 = vrot.slane %v1686_v33, %v8494_v10  ;;  %v685_v48 = vrot.slane %v671_v39, %v8494_v10  ;;  %v1733_v50 = vcombine.low %v647_v34, %v648_v35 }
  0x34   : > { %7892 = vmatmul.mubr.msk.bf16.gmra.mxu0 %vm2547_vm2, %v1634_v30  ;;  %v1715_v47 = vrot.slane %v1687_v36, %v8494_v10  ;;  %v695_v52 = vcombine.high %v7047_v44, %v7047_v44  ;;  %v733_v56 = vcombine.high %v7049_v49, %v7049_v49  ;;  %v740_v57 = vrot.slane %v7049_v49, %v8494_v10 }
  0x35   : > { %7895 = vmatprep.mubr.msk.bf16.mxu0 %vm8371_vm1, %v8370_v2  ;;  %v1734_v51 = vcombine.low %v649_v42, %v663_v38  ;;  %v1735_v53 = vcombine.low %v678_v43, %v685_v48  ;;  %v7092_v54 = vcombine.high %v678_v43, %v685_v48  ;;  %v1683_v58 = vcombine.low %v1675_v40, %v1682_v45  ;;  %v7056_v48 = vld.sshfl [vmem:[%s8499_s8 + $0x58] sm:$0x33 pattern:$0x75316420] }
  0x36   : > { %v1716_v59 = vcombine.low %v1694_v37, %v1701_v41  ;;  %v1717_v60 = vcombine.low %v1708_v46, %v1715_v47  ;;  %v1743_v61 = vrot.slane %v1733_v50, %v8494_v10  ;;  %v702_v0 = vrot.slane %v7047_v44, %v8494_v10  ;;  %v7053_v37 = vld.sshfl [vmem:[%s8499_s8 + $0x4c] sm:$0x33 pattern:$0x75316420] }
  0x37   : > { %v1750_v63 = vrot.slane %v1734_v51, %v8494_v10  ;;  %v709_v1 = vrot.slane %v695_v52, %v8494_v10  ;;  %v725_v3 = vrot.slane %v7048_v55, %v8494_v10  ;;  %v1757_v4 = vrot.slane %v1735_v53, %v8494_v10  ;;  %v7054_v41 = vld.sshfl [vmem:[%s8499_s8 + $0x50] sm:$0x1 pattern:$0x75316420] }
  0x38   : > { %v1764_v6 = vrot.slane %v7092_v54, %v8494_v10  ;;  %v747_v7 = vrot.slane %v733_v56, %v8494_v10  ;;  %v748_v8 = vcombine.high %v740_v57, %v740_v57  ;;  %v1724_v9 = vrot.slane %v1716_v59, %v8494_v10  ;;  %v7055_v47 = vld.sshfl [vmem:[%s8499_s8 + $0x54] sm:$0x33 pattern:$0x75316420] }
  0x39   : > { %v1731_v11 = vrot.slane %v1717_v60, %v8494_v10  ;;  %v757_v12 = vcombine.high %v7050_v62, %v7050_v62  ;;  %v1782_v14 = vcombine.low %v702_v0, %v709_v1  ;;  %v7093_v15 = vcombine.high %v702_v0, %v709_v1 }
  0x3a   : > { %v764_v16 = vrot.slane %v7050_v62, %v8494_v10  ;;  %v1765_v17 = vcombine.low %v1743_v61, %v1750_v63  ;;  %v1766_v18 = vcombine.low %v1757_v4, %v1764_v6  ;;  %v1784_v19 = vcombine.low %v725_v3, %v740_v57  ;;  %v7057_v3 = vld.sshfl [vmem:[%s8499_s8 + $0x5c] sm:$0x1 pattern:$0x75316420] }
  0x3b   : > { %v1785_v20 = vcombine.low %v747_v7, %v748_v8  ;;  %v1732_v21 = vcombine.low %v1724_v9, %v1731_v11  ;;  %v771_v22 = vrot.slane %v757_v12, %v8494_v10  ;;  %v795_v23 = vcombine.high %v7052_v13, %v7052_v13  ;;  %v7058_v11 = vld.sshfl [vmem:[%s8499_s8 + $0x60] sm:$0x33 pattern:$0x75316420] }
  0x3c   : > { %7896 = vmatmul.mubr.msk.bf16.gmra.mxu0 %vm2547_vm2, %v1683_v58  ;;  %v1792_v25 = vrot.slane %v1782_v14, %v8494_v10  ;;  %v1799_v26 = vrot.slane %v7093_v15, %v8494_v10  ;;  %v749_v27 = vcombine.high %v747_v7, %v747_v7  ;;  %v772_v28 = vcombine.high %v764_v16, %v764_v16  ;;  %v7059_v12 = vld.sshfl [vmem:[%s8499_s8 + $0x64] sm:$0x33 pattern:$0x75316420] }
  0x3d   : > { %7899 = vmatprep.mubr.msk.bf16.mxu0 %vm8371_vm1, %v8370_v2  ;;  %v1773_v29 = vrot.slane %v1765_v17, %v8494_v10  ;;  %v1780_v30 = vrot.slane %v1766_v18, %v8494_v10  ;;  %v1806_v31 = vrot.slane %v1784_v19, %v8494_v10  ;;  %v1813_v32 = vrot.slane %v1785_v20, %v8494_v10 }
  0x3e   : > { %v773_v33 = vcombine.high %v771_v22, %v771_v22  ;;  %v787_v34 = vrot.slane %v7051_v24, %v8494_v10  ;;  %v802_v35 = vrot.slane %v7052_v13, %v8494_v10  ;;  %v809_v36 = vrot.slane %v795_v23, %v8494_v10 }
  0x3f   : > { %v1814_v38 = vcombine.low %v1792_v25, %v1799_v26  ;;  %v1831_v39 = vcombine.low %v749_v27, %v764_v16  ;;  %v1832_v40 = vcombine.low %v771_v22, %v772_v28  ;;  %v819_v42 = vcombine.high %v7053_v37, %v7053_v37  ;;  %v7061_v26 = vld.sshfl [vmem:[%s8499_s8 + $0x6c] sm:$0x33 pattern:$0x75316420] }
  0x40   : > { %v1781_v43 = vcombine.low %v1773_v29, %v1780_v30  ;;  %v1815_v44 = vcombine.low %v1806_v31, %v1813_v32  ;;  %v1833_v45 = vcombine.low %v773_v33, %v787_v34  ;;  %v1834_v46 = vcombine.low %v802_v35, %v809_v36 }
  0x41   : > { %v1822_v49 = vrot.slane %v1814_v38, %v8494_v10  ;;  %v1841_v50 = vrot.slane %v1831_v39, %v8494_v10  ;;  %v1848_v51 = vrot.slane %v1832_v40, %v8494_v10  ;;  %v826_v52 = vrot.slane %v7053_v37, %v8494_v10  ;;  %v7062_v38 = vld.sshfl [vmem:[%s8499_s8 + $0x70] sm:$0x33 pattern:$0x75316420] }
  0x42   : > { %v833_v53 = vrot.slane %v819_v42, %v8494_v10  ;;  %v849_v54 = vrot.slane %v7054_v41, %v8494_v10  ;;  %v864_v55 = vrot.slane %v7055_v47, %v8494_v10  ;;  %v857_v56 = vcombine.high %v7055_v47, %v7055_v47 }
  0x43   : > { %v1829_v57 = vrot.slane %v1815_v44, %v8494_v10  ;;  %v1855_v58 = vrot.slane %v1833_v45, %v8494_v10  ;;  %v1862_v59 = vrot.slane %v1834_v46, %v8494_v10  ;;  %v881_v60 = vcombine.high %v7056_v48, %v7056_v48 }
  0x44   : > { %7900 = vmatmul.mubr.msk.bf16.gmra.mxu0 %vm2547_vm2, %v1732_v21  ;;  %v1863_v61 = vcombine.low %v1841_v50, %v1848_v51  ;;  %v7094_v62 = vcombine.high %v802_v35, %v809_v36  ;;  %v1881_v63 = vcombine.low %v826_v52, %v833_v53  ;;  %v7095_v0 = vcombine.high %v826_v52, %v833_v53 }
  0x45   : > { %7903 = vmatprep.mubr.msk.bf16.mxu0 %vm8371_vm1, %v8370_v2  ;;  %v1883_v1 = vcombine.low %v849_v54, %v864_v55  ;;  %v871_v4 = vrot.slane %v857_v56, %v8494_v10  ;;  %v1830_v6 = vcombine.low %v1822_v49, %v1829_v57  ;;  %v1864_v7 = vcombine.low %v1855_v58, %v1862_v59 }
  0x46   : > { %v888_v8 = vrot.slane %v7056_v48, %v8494_v10  ;;  %v895_v9 = vrot.slane %v881_v60, %v8494_v10  ;;  %v1871_v13 = vrot.slane %v1863_v61, %v8494_v10  ;;  %v1890_v14 = vrot.slane %v7094_v62, %v8494_v10  ;;  %v7060_v48 = vld.sshfl [vmem:[%s8499_s8 + $0x68] sm:$0x1 pattern:$0x75316420] }
  0x47   : > { %v872_v15 = vcombine.high %v864_v55, %v864_v55  ;;  %v1897_v16 = vrot.slane %v1881_v63, %v8494_v10  ;;  %v1904_v17 = vrot.slane %v7095_v0, %v8494_v10  ;;  %v1911_v18 = vrot.slane %v1883_v1, %v8494_v10 }
  0x48   : > { %v873_v19 = vcombine.high %v871_v4, %v871_v4  ;;  %v1878_v20 = vrot.slane %v1864_v7, %v8494_v10  ;;  %v896_v21 = vcombine.high %v888_v8, %v888_v8  ;;  %v897_v22 = vcombine.high %v895_v9, %v895_v9 }
  0x49   : > { %v911_v23 = vrot.slane %v7057_v3, %v8494_v10  ;;  %v919_v24 = vcombine.high %v7058_v11, %v7058_v11  ;;  %v943_v25 = vcombine.high %v7059_v12, %v7059_v12  ;;  %v1912_v27 = vcombine.low %v1890_v14, %v1897_v16  ;;  %v7063_v14 = vld.sshfl [vmem:[%s8499_s8 + $0x74] sm:$0x1 pattern:$0x75316420] }
  0x4a   : > { %v1913_v28 = vcombine.low %v1904_v17, %v1911_v18  ;;  %v1929_v29 = vcombine.low %v871_v4, %v872_v15  ;;  %v1879_v30 = vcombine.low %v1871_v13, %v1878_v20  ;;  %v1930_v31 = vcombine.low %v873_v19, %v888_v8  ;;  %v7064_v4 = vld.sshfl [vmem:[%s8499_s8 + $0x78] sm:$0x33 pattern:$0x75316420] }
  0x4b   : > { %v1931_v32 = vcombine.low %v895_v9, %v896_v21  ;;  %v1932_v33 = vcombine.low %v897_v22, %v911_v23  ;;  %v926_v34 = vrot.slane %v7058_v11, %v8494_v10  ;;  %v933_v35 = vrot.slane %v919_v24, %v8494_v10  ;;  %v7067_v17 = vld.sshfl [vmem:[%s8499_s8 + $0x84] sm:$0x33 pattern:$0x75316420] }
  0x4c   : > { %7904 = vmatmul.mubr.msk.bf16.gmra.mxu0 %vm2547_vm2, %v1781_v43  ;;  %v950_v36 = vrot.slane %v7059_v12, %v8494_v10  ;;  %v957_v37 = vrot.slane %v943_v25, %v8494_v10  ;;  %v1920_v39 = vrot.slane %v1912_v27, %v8494_v10  ;;  %v1939_v40 = vrot.slane %v1929_v29, %v8494_v10 }
  0x4d   : > { %7907 = vmatprep.mubr.msk.bf16.mxu0 %vm8371_vm1, %v8370_v2  ;;  %v981_v41 = vcombine.high %v7061_v26, %v7061_v26  ;;  %v1927_v42 = vrot.slane %v1913_v28, %v8494_v10  ;;  %v1946_v43 = vrot.slane %v1930_v31, %v8494_v10  ;;  %v1953_v44 = vrot.slane %v1931_v32, %v8494_v10 }
  0x4e   : > { %v1960_v45 = vrot.slane %v1932_v33, %v8494_v10  ;;  %v1978_v46 = vcombine.low %v926_v34, %v933_v35  ;;  %v7096_v47 = vcombine.high %v926_v34, %v933_v35  ;;  %v1980_v49 = vcombine.low %v950_v36, %v957_v37 }
  0x4f   : > { %v7097_v50 = vcombine.high %v950_v36, %v957_v37  ;;  %v988_v51 = vrot.slane %v7061_v26, %v8494_v10  ;;  %v995_v52 = vrot.slane %v981_v41, %v8494_v10  ;;  %v1005_v53 = vcombine.high %v7062_v38, %v7062_v38 }
  0x50   : > { %v1012_v54 = vrot.slane %v7062_v38, %v8494_v10  ;;  %v1928_v55 = vcombine.low %v1920_v39, %v1927_v42  ;;  %v1961_v56 = vcombine.low %v1939_v40, %v1946_v43  ;;  %v1962_v57 = vcombine.low %v1953_v44, %v1960_v45  ;;  %v7066_v38 = vld.sshfl [vmem:[%s8499_s8 + $0x80] sm:$0x1 pattern:$0x75316420] }
  0x51   : > { %v1988_v58 = vrot.slane %v1978_v46, %v8494_v10  ;;  %v1995_v59 = vrot.slane %v7096_v47, %v8494_v10  ;;  %v2002_v60 = vrot.slane %v1980_v49, %v8494_v10  ;;  %v2009_v61 = vrot.slane %v7097_v50, %v8494_v10  ;;  %v7068_v43 = vld.sshfl [vmem:[%s8499_s8 + $0x88] sm:$0x33 pattern:$0x75316420] }
  0x52   : > { %v973_v62 = vrot.slane %v7060_v48, %v8494_v10  ;;  %v996_v63 = vcombine.high %v988_v51, %v988_v51  ;;  %v997_v0 = vcombine.high %v995_v52, %v995_v52  ;;  %v1019_v1 = vrot.slane %v1005_v53, %v8494_v10  ;;  %v8215_v53 = vld [vmem:[%s10692_s4 + $0x138] sm:$0xff]  }
  0x53   : > { %v1020_v3 = vcombine.high %v1012_v54, %v1012_v54  ;;  %v1969_v7 = vrot.slane %v1961_v56, %v8494_v10  ;;  %v1976_v8 = vrot.slane %v1962_v57, %v8494_v10  ;;  %v2010_v9 = vcombine.low %v1988_v58, %v1995_v59  ;;  %v8216_v58 = vld [vmem:[%s10692_s4 + $0xf8] sm:$0xff]   ;;  %7473 = vmatprep.subr.bf16.mxu1 %v8215_v53 }
  0x54   : > { %7908 = vmatmul.mubr.msk.bf16.gmra.mxu0 %vm2547_vm2, %v1830_v6  ;;  %v7065_v6 = vld.sshfl [vmem:[%s8499_s8 + $0x7c] sm:$0x33 pattern:$0x75316420]  ;;  %v2011_v11 = vcombine.low %v2002_v60, %v2009_v61  ;;  %v2027_v12 = vcombine.low %v973_v62, %v988_v51  ;;  %v2028_v13 = vcombine.low %v995_v52, %v996_v63  ;;  %v2029_v15 = vcombine.low %v997_v0, %v1012_v54 }
  0x55   : > { %7911 = vmatprep.mubr.msk.bf16.mxu0 %vm8371_vm1, %v8370_v2  ;;  %v2030_v16 = vcombine.low %v1019_v1, %v1020_v3  ;;  %v1977_v18 = vcombine.low %v1969_v7, %v1976_v8  ;;  %v1043_v19 = vcombine.high %v7064_v4, %v7064_v4  ;;  %v1067_v20 = vcombine.high %v7065_v6, %v7065_v6  ;;  %v7070_v52 = vld.sshfl [vmem:[%s8499_s8 + $0x90] sm:$0x33 pattern:$0x75316420] }
  0x56   : > { %v2018_v21 = vrot.slane %v2010_v9, %v8494_v10  ;;  %v2025_v22 = vrot.slane %v2011_v11, %v8494_v10  ;;  %v2037_v23 = vrot.slane %v2027_v12, %v8494_v10  ;;  %v2044_v24 = vrot.slane %v2028_v13, %v8494_v10  ;;  %v7069_v0 = vld.sshfl [vmem:[%s8499_s8 + $0x8c] sm:$0x1 pattern:$0x75316420]  ;;  %7474 = vmatpush3.bf16.msra.mxu1 %v8216_v58  ;;  %v8218_v8 = vld [vmem:[%s10692_s4 + $0xf0] sm:$0xff]   ;;  %v8712_v9 = vld [vmem:[%s10692_s4 + $0x178] sm:$0xff]  }
  0x57   : > { %v1021_v25 = vcombine.high %v1019_v1, %v1019_v1  ;;  %v2051_v26 = vrot.slane %v2029_v15, %v8494_v10  ;;  %v2058_v27 = vrot.slane %v2030_v16, %v8494_v10  ;;  %v1035_v28 = vrot.slane %v7063_v14, %v8494_v10  ;;  %v8217_v1 = vld [vmem:[%s10692_s4 + $0x130] sm:$0xff]   ;;  %7971 = vmatprep.subr.bf16.mxu0 %v8712_v9 }
  0x58   : > { %v1050_v29 = vrot.slane %v7064_v4, %v8494_v10  ;;  %v1074_v31 = vrot.slane %v7065_v6, %v8494_v10  ;;  %v1081_v32 = vrot.slane %v1067_v20, %v8494_v10  ;;  %v1105_v33 = vcombine.high %v7067_v17, %v7067_v17  ;;  %7475 = vmatprep.subr.bf16.mxu1 %v8217_v1  ;;  %v7071_v16 = vld.sshfl [vmem:[%s8499_s8 + $0x94] sm:$0x33 pattern:$0x75316420] }
  0x59   : > { %v2059_v34 = vcombine.low %v2037_v23, %v2044_v24  ;;  %v2026_v35 = vcombine.low %v2018_v21, %v2025_v22  ;;  %v2060_v36 = vcombine.low %v2051_v26, %v2058_v27  ;;  %v2076_v37 = vcombine.low %v1021_v25, %v1035_v28  ;;  %v7073_v23 = vld.sshfl [vmem:[%s8499_s8 + $0x9c] sm:$0x33 pattern:$0x75316420]  ;;  %v8220_v24 = vld [vmem:[%s10692_s4 + $0x128] sm:$0xff]   ;;  %v8738_v28 = vld [vmem:[%s10692_s4 + $0x170] sm:$0xff]   ;;  %7972 = vmatpush3.bf16.msra.mxu0 %v8712_v9 }
  0x5a   : > { %v1112_v39 = vrot.slane %v7067_v17, %v8494_v10  ;;  %v2079_v42 = vcombine.low %v1074_v31, %v1081_v32  ;;  %v1119_v44 = vrot.slane %v1105_v33, %v8494_v10  ;;  %v1097_v46 = vrot.slane %v7066_v38, %v8494_v10  ;;  %7476 = vmatpush3.bf16.msra.mxu1 %v8218_v8  ;;  %v8221_v27 = vld [vmem:[%s10692_s4 + $0xe8] sm:$0xff]  }
  0x5b   : > { %v2067_v45 = vrot.slane %v2059_v34, %v8494_v10  ;;  %v1129_v47 = vcombine.high %v7068_v43, %v7068_v43  ;;  %v2074_v48 = vrot.slane %v2060_v36, %v8494_v10  ;;  %v2086_v49 = vrot.slane %v2076_v37, %v8494_v10  ;;  %7477 = vmatprep.subr.bf16.mxu1 %v8220_v24 }
  0x5c   : > { %7912 = vmatmul.mubr.msk.bf16.gmra.mxu0 %vm2547_vm2, %v1879_v30  ;;  %v1057_v30 = vrot.slane %v1043_v19, %v8494_v10  ;;  %v1120_v50 = vcombine.high %v1112_v39, %v1112_v39  ;;  %v1136_v51 = vrot.slane %v7068_v43, %v8494_v10  ;;  %v2107_v56 = vrot.slane %v2079_v42, %v8494_v10  ;;  %v8223_v42 = vld [vmem:[%s10692_s4 + $0x120] sm:$0xff]  }
  0x5d   : > { %7915 = vmatprep.mubr.msk.bf16.mxu0 %vm8371_vm1, %v8370_v2  ;;  %v1121_v57 = vcombine.high %v1119_v44, %v1119_v44  ;;  %v1143_v59 = vrot.slane %v1129_v47, %v8494_v10  ;;  %v1167_v60 = vcombine.high %v7070_v52, %v7070_v52  ;;  %v2075_v61 = vcombine.low %v2067_v45, %v2074_v48  ;;  %v8224_v47 = vld [vmem:[%s10692_s4 + $0xe0] sm:$0xff]   ;;  %v8762_v48 = vld [vmem:[%s10692_s4 + $0x168] sm:$0xff]  }
  0x5e   : > { %v2077_v40 = vcombine.low %v1050_v29, %v1057_v30  ;;  %v7098_v41 = vcombine.high %v1050_v29, %v1057_v30  ;;  %v7099_v62 = vcombine.high %v1074_v31, %v1081_v32  ;;  %v2126_v63 = vcombine.low %v1097_v46, %v1112_v39  ;;  %v7072_v32 = vld.sshfl [vmem:[%s8499_s8 + $0x98] sm:$0x1 pattern:$0x75316420]  ;;  %7478 = vmatpush3.bf16.msra.mxu1 %v8221_v27  ;;  %v8232_v27 = vld [vmem:[%s10692_s4 + $0x108] sm:$0xff]  }
  0x5f   : > { %v2127_v6 = vcombine.low %v1119_v44, %v1120_v50  ;;  %v2128_v7 = vcombine.low %v1121_v57, %v1136_v51  ;;  %v1144_v11 = vcombine.high %v1136_v51, %v1136_v51  ;;  %v1145_v12 = vcombine.high %v1143_v59, %v1143_v59  ;;  %7973 = vmatprep.subr.bf16.mxu0 %v8738_v28  ;;  %v8226_v57 = vld [vmem:[%s10692_s4 + $0x118] sm:$0xff]  }
  0x60   : > { %v2093_v54 = vrot.slane %v2077_v40, %v8494_v10  ;;  %v1159_v13 = vrot.slane %v7069_v0, %v8494_v10  ;;  %v1174_v14 = vrot.slane %v7070_v52, %v8494_v10  ;;  %v1181_v15 = vrot.slane %v1167_v60, %v8494_v10  ;;  %7974 = vmatpush3.bf16.msra.mxu0 %v8738_v28 }
  0x61   : > { %v2135_v17 = vrot.slane %v7099_v62, %v8494_v10  ;;  %v2149_v21 = vrot.slane %v2127_v6, %v8494_v10  ;;  %v2156_v22 = vrot.slane %v2128_v7, %v8494_v10  ;;  %v2174_v25 = vcombine.low %v1143_v59, %v1144_v11  ;;  %7479 = vmatprep.subr.bf16.mxu1 %v8223_v42  ;;  %v8781_v62 = vld [vmem:[%s10692_s4 + $0x160] sm:$0xff]   ;;  %v8229_v11 = vld [vmem:[%s10692_s4 + $0x110] sm:$0xff]  }
  0x62   : > { %v2108_v3 = vcombine.low %v2086_v49, %v2093_v54  ;;  %v1191_v26 = vcombine.high %v7071_v16, %v7071_v16  ;;  %v2175_v29 = vcombine.low %v1145_v12, %v1159_v13  ;;  %v2176_v30 = vcombine.low %v1174_v14, %v1181_v15  ;;  %7480 = vmatpush3.bf16.msra.mxu1 %v8224_v47 }
  0x63   : > { %v7100_v31 = vcombine.high %v1174_v14, %v1181_v15  ;;  %v1229_v33 = vcombine.high %v7073_v23, %v7073_v23  ;;  %v1236_v34 = vrot.slane %v7073_v23, %v8494_v10  ;;  %v2158_v37 = vcombine.low %v2149_v21, %v2156_v22  ;;  %7975 = vmatprep.subr.bf16.mxu0 %v8762_v48 }
  0x64   : > { %7916 = vmatmul.mubr.msk.bf16.gmra.mxu0 %vm2547_vm2, %v1928_v55  ;;  %v2100_v55 = vrot.slane %v7098_v41, %v8494_v10  ;;  %v2116_v19 = vrot.slane %v2108_v3, %v8494_v10  ;;  %v2184_v38 = vrot.slane %v2174_v25, %v8494_v10  ;;  %v1198_v39 = vrot.slane %v7071_v16, %v8494_v10  ;;  %v7074_v41 = vld.sshfl [vmem:[%s8499_s8 + $0xa0] sm:$0x33 pattern:$0x75316420] }
  0x65   : > { %7919 = vmatprep.mubr.msk.bf16.mxu0 %vm8371_vm1, %v8370_v2  ;;  %v1205_v40 = vrot.slane %v1191_v26, %v8494_v10  ;;  %v2191_v43 = vrot.slane %v2175_v29, %v8494_v10  ;;  %v2198_v44 = vrot.slane %v2176_v30, %v8494_v10  ;;  %v2205_v45 = vrot.slane %v7100_v31, %v8494_v10  ;;  %v7075_v3 = vld.sshfl [vmem:[%s8499_s8 + $0xa4] sm:$0x1 pattern:$0x75316420]  ;;  %v8233_v31 = vld [vmem:[%s10692_s4 + $0xc8] sm:$0xff]  }
  0x66   : > { %v2109_v4 = vcombine.low %v2100_v55, %v2107_v56  ;;  %v1221_v46 = vrot.slane %v7072_v32, %v8494_v10  ;;  %v1243_v49 = vrot.slane %v1229_v33, %v8494_v10  ;;  %v1244_v50 = vcombine.high %v1236_v34, %v1236_v34  ;;  %v7076_v56 = vld.sshfl [vmem:[%s8499_s8 + $0xa8] sm:$0x33 pattern:$0x75316420]  ;;  %7976 = vmatpush3.bf16.msra.mxu0 %v8762_v48  ;;  %v8825_v32 = vld [vmem:[%s10692_s4 + $0x150] sm:$0xff]  }
  0x67   : > { %v2172_v52 = vrot.slane %v2158_v37, %v8494_v10  ;;  %v1253_v53 = vcombine.high %v7074_v41, %v7074_v41  ;;  %v2223_v54 = vcombine.low %v1198_v39, %v1205_v40  ;;  %v7101_v55 = vcombine.high %v1198_v39, %v1205_v40  ;;  %7481 = vmatprep.subr.bf16.mxu1 %v8226_v57  ;;  %v7077_v16 = vld.sshfl [vmem:[%s8499_s8 + $0xac] sm:$0x33 pattern:$0x75316420] }
  0x68   : > { %v2123_v20 = vrot.slane %v2109_v4, %v8494_v10  ;;  %v2206_v58 = vcombine.low %v2184_v38, %v2191_v43  ;;  %v2207_v59 = vcombine.low %v2198_v44, %v2205_v45  ;;  %v2225_v60 = vcombine.low %v1221_v46, %v1236_v34  ;;  %7977 = vmatprep.subr.bf16.mxu0 %v8781_v62  ;;  %v7078_v25 = vld.sshfl [vmem:[%s8499_s8 + $0xb0] sm:$0x1 pattern:$0x75316420] }
  0x69   : > { %v1260_v0 = vrot.slane %v7074_v41, %v8494_v10  ;;  %v1267_v4 = vrot.slane %v1253_v53, %v8494_v10  ;;  %v1291_v6 = vcombine.high %v7076_v56, %v7076_v56  ;;  %v2233_v7 = vrot.slane %v2223_v54, %v8494_v10  ;;  %v7079_v30 = vld.sshfl [vmem:[%s8499_s8 + $0xb4] sm:$0x33 pattern:$0x75316420]  ;;  %v8235_v53 = vld [vmem:[%s10692_s4 + $0x100] sm:$0xff]  }
  0x6a   : > { %v2240_v8 = vrot.slane %v7101_v55, %v8494_v10  ;;  %v2214_v12 = vrot.slane %v2206_v58, %v8494_v10  ;;  %v2221_v13 = vrot.slane %v2207_v59, %v8494_v10  ;;  %v2247_v14 = vrot.slane %v2225_v60, %v8494_v10  ;;  %7978 = vmatpush3.bf16.msra.mxu0 %v8781_v62  ;;  %v7080_v43 = vld.sshfl [vmem:[%s8499_s8 + $0xb8] sm:$0x33 pattern:$0x75316420]  ;;  %v8236_v58 = vld [vmem:[%s10692_s4 + $0xc0] sm:$0xff]   ;;  %v8853_v59 = vld [vmem:[%s10692_s4 + $0x148] sm:$0xff]  }
  0x6b   : > { %v1245_v15 = vcombine.high %v1243_v49, %v1243_v49  ;;  %v1283_v21 = vrot.slane %v7075_v3, %v8494_v10  ;;  %v1269_v22 = vcombine.high %v1267_v4, %v1267_v4  ;;  %v1298_v23 = vrot.slane %v7076_v56, %v8494_v10 }
  0x6c   : > { %7920 = vmatmul.mubr.msk.bf16.gmra.mxu0 %vm2547_vm2, %v1977_v18  ;;  %v2142_v18 = vrot.slane %v2126_v63, %v8494_v10  ;;  %v2226_v63 = vcombine.low %v1243_v49, %v1244_v50  ;;  %v1305_v24 = vrot.slane %v1291_v6, %v8494_v10  ;;  %v1315_v26 = vcombine.high %v7077_v16, %v7077_v16 }
  0x6d   : > { %7923 = vmatprep.mubr.msk.bf16.mxu0 %vm8371_vm1, %v8370_v2  ;;  %v2255_v29 = vcombine.low %v2233_v7, %v2240_v8  ;;  %v2272_v34 = vcombine.low %v1245_v15, %v1260_v0  ;;  %v2274_v37 = vcombine.low %v1269_v22, %v1283_v21  ;;  %v1322_v39 = vrot.slane %v7077_v16, %v8494_v10  ;;  %v7082_v15 = vld.sshfl [vmem:[%s8499_s8 + $0xc0] sm:$0x33 pattern:$0x75316420] }
  0x6e   : > { %v2157_v36 = vcombine.low %v2135_v17, %v2142_v18  ;;  %v8230_v17 = vld [vmem:[%s10692_s4 + $0xd0] sm:$0xff]   ;;  %v8803_v18 = vld [vmem:[%s10692_s4 + $0x158] sm:$0xff]   ;;  %v2275_v38 = vcombine.low %v1298_v23, %v1305_v24  ;;  %v1329_v40 = vrot.slane %v1315_v26, %v8494_v10  ;;  %v1345_v41 = vrot.slane %v7078_v25, %v8494_v10  ;;  %v7083_v21 = vld.sshfl [vmem:[%s8499_s8 + $0xc4] sm:$0x33 pattern:$0x75316420] }
  0x6f   : > { %7979 = vmatprep.subr.bf16.mxu0 %v8803_v18  ;;  %v1360_v42 = vrot.slane %v7079_v30, %v8494_v10  ;;  %v1353_v44 = vcombine.high %v7079_v30, %v7079_v30  ;;  %v2263_v45 = vrot.slane %v2255_v29, %v8494_v10  ;;  %v2282_v47 = vrot.slane %v2272_v34, %v8494_v10 }
  0x70   : > { %v2165_v51 = vrot.slane %v2157_v36, %v8494_v10  ;;  %7980 = vmatpush3.bf16.msra.mxu0 %v8803_v18  ;;  %v2222_v36 = vcombine.low %v2214_v12, %v2221_v13  ;;  %v2296_v50 = vrot.slane %v2274_v37, %v8494_v10  ;;  %v7102_v54 = vcombine.high %v1298_v23, %v1305_v24 }
  0x71   : > { %7981 = vmatprep.subr.bf16.mxu0 %v8825_v32  ;;  %v2322_v55 = vcombine.low %v1322_v39, %v1329_v40  ;;  %v7103_v56 = vcombine.high %v1322_v39, %v1329_v40  ;;  %v2324_v57 = vcombine.low %v1345_v41, %v1360_v42  ;;  %v1367_v60 = vrot.slane %v1353_v44, %v8494_v10 }
  0x72   : > { %v2173_v1 = vcombine.low %v2165_v51, %v2172_v52  ;;  %v2303_v51 = vrot.slane %v2275_v38, %v8494_v10  ;;  %v1377_v52 = vcombine.high %v7080_v43, %v7080_v43  ;;  %v1368_v12 = vcombine.high %v1360_v42, %v1360_v42 }
  0x73   : > { %v2338_v6 = vrot.slane %v2322_v55, %v8494_v10  ;;  %v2345_v7 = vrot.slane %v7103_v56, %v8494_v10  ;;  %v2352_v8 = vrot.slane %v2324_v57, %v8494_v10  ;;  %v1369_v13 = vcombine.high %v1367_v60, %v1367_v60 }
  0x74   : > { %7924 = vmatmul.mubr.msk.bf16.gmra.mxu0 %vm2547_vm2, %v2026_v35  ;;  %v2124_v35 = vcombine.low %v2116_v19, %v2123_v20  ;;  %v2254_v19 = vrot.slane %v2226_v63, %v8494_v10  ;;  %v1268_v20 = vcombine.high %v1260_v0, %v1260_v0  ;;  %v2305_v0 = vcombine.low %v2296_v50, %v2303_v51 }
  0x75   : > { %7927 = vmatprep.mubr.msk.bf16.mxu0 %vm8371_vm1, %v8370_v2  ;;  %7982 = vmatpush3.bf16.msra.mxu0 %v8825_v32  ;;  %v1391_v3 = vrot.slane %v1377_v52, %v8494_v10  ;;  %v2354_v23 = vcombine.low %v2345_v7, %v2352_v8  ;;  %v2370_v24 = vcombine.low %v1367_v60, %v1368_v12 }
  0x76   : > { %v2256_v33 = vcombine.low %v2247_v14, %v2254_v19  ;;  %7983 = vmatprep.subr.bf16.mxu0 %v8853_v59  ;;  %v2319_v16 = vrot.slane %v2305_v0, %v8494_v10  ;;  %v1415_v26 = vcombine.high %v7082_v15, %v7082_v15  ;;  %v1422_v38 = vrot.slane %v7082_v15, %v8494_v10 }
  0x77   : > { %v1393_v19 = vcombine.high %v1391_v3, %v1391_v3  ;;  %v2368_v34 = vrot.slane %v2354_v23, %v8494_v10  ;;  %v1446_v40 = vrot.slane %v7083_v21, %v8494_v10 }
  0x78   : > { %v2270_v46 = vrot.slane %v2256_v33, %v8494_v10  ;;  %v1429_v39 = vrot.slane %v1415_v26, %v8494_v10 }
  0x79   : > { %7984 = vmatpush3.bf16.msra.mxu0 %v8853_v59 }
  0x7a   : > { %v2419_v50 = vcombine.low %v1422_v38, %v1429_v39  ;;  %v7104_v51 = vcombine.high %v1422_v38, %v1429_v39 }
  0x7c   : > { %7928 = vmatmul.mubr.msk.bf16.gmra.mxu0 %vm2547_vm2, %v2075_v61  ;;  %v8227_v61 = vld [vmem:[%s10692_s4 + $0xd8] sm:$0xff]  }
  0x7d   : > { %7931 = vmatprep.mubr.msk.bf16.mxu0 %vm8371_vm1, %v8370_v2  ;;  %7482 = vmatpush3.bf16.msra.mxu1 %v8227_v61  ;;  %v2271_v61 = vcombine.low %v2263_v45, %v2270_v46  ;;  %v8889_v45 = vld [vmem:[%s10692_s4 + $0x140] sm:$0xff]   ;;  %v7086_v46 = vld.sshfl [vmem:[%s8499_s8 + $0xd0] sm:$0x33 pattern:$0x75316420] }
  0x7e   : > { %7483 = vmatprep.subr.bf16.mxu1 %v8229_v11  ;;  %v7081_v11 = vld.sshfl [vmem:[%s8499_s8 + $0xbc] sm:$0x1 pattern:$0x75316420]  ;;  %7985 = vmatprep.subr.bf16.mxu0 %v8889_v45  ;;  %v1508_v60 = vrot.slane %v7086_v46, %v8494_v10 }
  0x7f   : > { %7986 = vmatpush3.bf16.msra.mxu0 %v8889_v45 }
  0x80   : > { %v1516_v12 = vcombine.high %v1508_v60, %v1508_v60 }
  0x81   : > { %7484 = vmatpush3.bf16.msra.mxu1 %v8230_v17 }
  0x82   : > { %7485 = vmatprep.subr.bf16.mxu1 %v8232_v27  ;;  %v1439_v27 = vcombine.high %v7083_v21, %v7083_v21 }
  0x84   : > { %7932 = vmatmul.mubr.msk.bf16.gmra.mxu0 %vm2547_vm2, %v2124_v35  ;;  %v2273_v35 = vcombine.low %v1267_v4, %v1268_v20  ;;  %v2331_v4 = vrot.slane %v7102_v54, %v8494_v10  ;;  %v1407_v20 = vrot.slane %v7081_v11, %v8494_v10  ;;  %v1453_v41 = vrot.slane %v1439_v27, %v8494_v10  ;;  %v7084_v54 = vld.sshfl [vmem:[%s8499_s8 + $0xc8] sm:$0x1 pattern:$0x75316420] }
  0x85   : > { %7935 = vmatprep.mubr.msk.bf16.mxu0 %vm8371_vm1, %v8370_v2  ;;  %7486 = vmatpush3.bf16.msra.mxu1 %v8233_v31  ;;  %v1469_v0 = vrot.slane %v7084_v54, %v8494_v10 }
  0x86   : > { %v2289_v49 = vrot.slane %v2273_v35, %v8494_v10  ;;  %7487 = vmatprep.subr.bf16.mxu1 %v8235_v53  ;;  %v2353_v22 = vcombine.low %v2331_v4, %v2338_v6  ;;  %v2373_v31 = vcombine.low %v1393_v19, %v1407_v20  ;;  %v7085_v35 = vld.sshfl [vmem:[%s8499_s8 + $0xcc] sm:$0x33 pattern:$0x75316420]  ;;  %v2421_v52 = vcombine.low %v1446_v40, %v1453_v41 }
  0x87   : > { %v1477_v44 = vcombine.high %v7085_v35, %v7085_v35  ;;  %v7105_v53 = vcombine.high %v1446_v40, %v1453_v41  ;;  %v1484_v55 = vrot.slane %v7085_v35, %v8494_v10  ;;  %v8239_v41 = vld [vmem:[%s10692_s4 + $0x78] sm:$0xff]  }
  0x88   : > { %v2304_v63 = vcombine.low %v2282_v47, %v2289_v49  ;;  %v2361_v33 = vrot.slane %v2353_v22, %v8494_v10  ;;  %7609 = vmatprep.subr.bf16.mxu0 %v8239_v41 }
  0x89   : > { %7488 = vmatpush3.bf16.msra.mxu1 %v8236_v58  ;;  %v1491_v57 = vrot.slane %v1477_v44, %v8494_v10  ;;  %v1501_v58 = vcombine.high %v7086_v46, %v7086_v46  ;;  %v2450_v4 = vrot.slane %v7105_v53, %v8494_v10  ;;  %v1492_v6 = vcombine.high %v1484_v55, %v1484_v55 }
  0x8a   : > { %8115 = vmatprep.subr.bf16.mxu1 %v8712_v9  ;;  %v2312_v14 = vrot.slane %v2304_v63, %v8494_v10  ;;  %v2369_v47 = vcombine.low %v2361_v33, %v2368_v34  ;;  %v2429_v63 = vrot.slane %v2419_v50, %v8494_v10  ;;  %v2468_v15 = vcombine.low %v1469_v0, %v1484_v55  ;;  %v8939_v50 = vld [vmem:[%s10690_s2] ss:$0 sm:$0xff] }
  0x8b   : > { %v1493_v8 = vcombine.high %v1491_v57, %v1491_v57  ;;  %v1515_v11 = vrot.slane %v1501_v58, %v8494_v10  ;;  %v8373_v44 = vmov 1983009808  }
  0x8c   : > { %7936 = vmatmul.mubr.msk.bf16.gmra.mxu0 %vm2547_vm2, %v2173_v1  ;;  %v1384_v1 = vrot.slane %v7080_v43, %v8494_v10  ;;  %v2320_v29 = vcombine.low %v2312_v14, %v2319_v16  ;;  %v2401_v43 = vrot.slane %v2373_v31, %v8494_v10  ;;  %v2478_v22 = vrot.slane %v2468_v15, %v8494_v10  ;;  %v7087_v31 = vld.sshfl [vmem:[%s8499_s8 + $0xd4] sm:$0x1 pattern:$0x75316420]  ;;  %s7448_s8 = sshll.u32 %s8360_s27, 12  ;;  %s10643_s27 = scalar_lea.sflag [#allocation3], %s293_s18 }
  0x8d   : > { %7939 = vmatprep.mubr.msk.bf16.mxu0 %vm8371_vm1, %v8370_v2  ;;  %v2470_v19 = vcombine.low %v1493_v8, %v1508_v60  ;;  %v2471_v20 = vcombine.low %v1515_v11, %v1516_v12  ;;  %v1517_v35 = vcombine.high %v1515_v11, %v1515_v11  ;;  %v3029_v46 = vunpack.c.l.s4 %v8373_v44  ;;  %s10633_s16 = scalar_lea.hbm %s10695_s7, %s7448_s8 }
  0x8e   : > { %v1392_v17 = vcombine.high %v1384_v1, %v1384_v1  ;;  %v2371_v25 = vcombine.low %v1369_v13, %v1384_v1  ;;  %v2436_v1 = vrot.slane %v7104_v51, %v8494_v10  ;;  %v8944_v51 = vld [vmem:[%s10691_s3] ss:$0 sm:$0xff]  ;;  %v3703_v11 = vadd.s32 16, %v8483_v5 }
  0x8f   : > { %v2499_v26 = vrot.slane %v2471_v20, %v8494_v10 }
  0x90   : > { %v2372_v30 = vcombine.low %v1391_v3, %v1392_v17  ;;  %v2387_v37 = vrot.slane %v2371_v25, %v8494_v10  ;;  %v2443_v3 = vrot.slane %v2421_v52, %v8494_v10  ;;  %v2451_v13 = vcombine.low %v2429_v63, %v2436_v1 }
  0x91   : > { %v2469_v17 = vcombine.low %v1491_v57, %v1492_v6  ;;  %v2492_v25 = vrot.slane %v2470_v19, %v8494_v10 }
  0x92   : > { %v2394_v42 = vrot.slane %v2372_v30, %v8494_v10  ;;  %v2452_v14 = vcombine.low %v2443_v3, %v2450_v4  ;;  %v2459_v21 = vrot.slane %v2451_v13, %v8494_v10 }
  0x93   : > { %v2501_v30 = vcombine.low %v2492_v25, %v2499_v26  ;;  %v8964_v26 = vadd.s32 4294967295, %v3703_v11 }
  0x94   : > { %7940 = vmatmul.mubr.msk.bf16.gmra.mxu0 %vm2547_vm2, %v2222_v36  ;;  %v2380_v36 = vrot.slane %v2370_v24, %v8494_v10  ;;  %v2403_v56 = vcombine.low %v2394_v42, %v2401_v43  ;;  %v2466_v23 = vrot.slane %v2452_v14, %v8494_v10  ;;  %v2485_v24 = vrot.slane %v2469_v17, %v8494_v10 }
  0x95   : > { %7943 = vmatprep.mubr.msk.bf16.mxu0 %vm8371_vm1, %v8370_v2  ;;  %v2515_v34 = vrot.slane %v2501_v30, %v8494_v10  ;;  %vm3820_vm4 = vcmp.lt.s32.totalorder %v8964_v26, 16 }
  0x96   : > { %v2402_v49 = vcombine.low %v2380_v36, %v2387_v37  ;;  %v2417_v7 = vrot.slane %v2403_v56, %v8494_v10  ;;  %v2467_v27 = vcombine.low %v2459_v21, %v2466_v23  ;;  %v1531_v36 = vrot.slane %v7087_v31, %v8494_v10 }
  0x98   : > { %v2517_v38 = vcombine.low %v1517_v35, %v1531_v36 }
  0x9a   : > { %v2524_v39 = vrot.slane %v2517_v38, %v8494_v10 }
  0x9c   : > { %7944 = vmatmul.mubr.msk.bf16.gmra.mxu0 %vm2547_vm2, %v2271_v61  ;;  %v2410_v61 = vrot.slane %v2402_v49, %v8494_v10  ;;  %v2531_v40 = vrot.slane %v2524_v39, %v8494_v10 }
  0x9d   : > { %7947 = vmatprep.mubr.msk.bf16.mxu0 %vm8371_vm1, %v8370_v2 }
  0x9e   : > { %v2418_v16 = vcombine.low %v2410_v61, %v2417_v7 }
  0xa4   : > { %7948 = vmatmul.mubr.msk.bf16.gmra.mxu0 %vm2547_vm2, %v2320_v29  ;;  %v2500_v29 = vcombine.low %v2478_v22, %v2485_v24  ;;  %v8961_v22 = vadd.s32 4294967295, %v8483_v5 }
  0xa5   : > { %7951 = vmatprep.mubr.msk.bf16.mxu0 %vm8371_vm1, %v8370_v2 }
  0xa6   : > { %v2508_v33 = vrot.slane %v2500_v29, %v8494_v10  ;;  %vm3761_vm3 = vcmp.ge.s32.totalorder %v8961_v22, 0 }
  0xa7   : > { %vm9055_vm8 = vmpackc.low %vm8375_vm7, %vm3761_vm3 }
  0xa8   : > { %v2516_v37 = vcombine.low %v2508_v33, %v2515_v34 }
  0xac   : > { %7952 = vmatmul.mubr.msk.bf16.gmra.mxu0 %vm2547_vm2, %v2369_v47 }
  0xad   : > { %7955 = vmatprep.mubr.msk.bf16.mxu0 %vm8371_vm1, %v8370_v2 }
  0xb4   : > { %7956 = vmatmul.mubr.msk.bf16.gmra.mxu0 %vm2547_vm2, %v2418_v16 }
  0xb5   : > { %7959 = vmatprep.mubr.msk.bf16.mxu0 %vm8371_vm1, %v8370_v2 }
  0xbc   : > { %7960 = vmatmul.mubr.msk.bf16.gmra.mxu0 %vm2547_vm2, %v2467_v27 }
  0xbd   : > { %7963 = vmatprep.mubr.msk.bf16.mxu0 %vm8371_vm1, %v8370_v2 }
  0xc4   : > { %7964 = vmatmul.mubr.msk.bf16.gmra.mxu0 %vm2547_vm2, %v2516_v37 }
  0xc5   : > { %7967 = vmatprep.mubr.msk.bf16.mxu0 %vm8371_vm1, %v8370_v2  ;;  %v3030_v2 = vunpack.c.0.s8 %v3029_v46 }
  0xc7   : > { %v8949_v55 = vsub.s32 %v3030_v2, %v8483_v5 }
  0xcc   : > { %7968 = vmatmul.mubr.msk.bf16.gmra.mxu0 %vm2547_vm2, %v2531_v40 }
  0xec   : > { %v2649_v42 = vpop.f32.mrf.mxu0 }
  0xee   : > { %v7889_v43 = vpop.f32.mrf.mxu0 }
  0xf0   : > { %v2652_v47 = vpop.f32.mrf.mxu0 }
  0xf2   : > { %v7890_v49 = vpop.f32.mrf.mxu0 }
  0xf4   : > { %v2657_v10 = vpop.f32.mrf.mxu0 }
  0xf5   : > { %v2824_v52 = vmul.f32 %v8939_v50, %v2657_v10 }
  0xf6   : > { %v7893_v53 = vpop.f32.mrf.mxu0 }
  0xf7   : > { %v2872_v54 = vadd.f32 %v8944_v51, %v2824_v52 }
  0xf8   : > { %v2660_v56 = vpop.f32.mrf.mxu0 }
  0xf9   : > { %v2913_v57 = vmax.f32 %v2872_v54, 0.0  ;;  %v2825_v58 = vmul.f32 %v8939_v50, %v2660_v56 }
  0xfa   : > { %v7894_v60 = vpop.f32.mrf.mxu0 }
  0xfb   : > { %v3027_v61 = vcombine.high %v2913_v57, %v2913_v57  ;;  %v3034_v63 = vrot.slane %v2913_v57, %v8949_v55  ;;  %v2873_v0 = vadd.f32 %v8944_v51, %v2825_v58 }
  0xfc   : > { %v2665_v1 = vpop.f32.mrf.mxu0 }
  0xfd   : > { %v3041_v3 = vrot.slane %v3027_v61, %v8949_v55  ;;  %v3042_v4 = vcombine.high %v3034_v63, %v3034_v63  ;;  %v2914_v6 = vmax.f32 %v2873_v0, 0.0  ;;  %v2826_v7 = vmul.f32 %v8939_v50, %v2665_v1 }
  0xfe   : > { %v7897_v8 = vpop.f32.mrf.mxu0 }
  0xff   : > { %v4024_v12 = vcombine.low %v3042_v4, %v3041_v3  ;;  %v3043_v13 = vcombine.high %v3041_v3, %v3041_v3  ;;  %v3044_v14 = vcombine.high %v2914_v6, %v2914_v6  ;;  %v3051_v15 = vrot.slane %v2914_v6, %v8949_v55 }
 0x100   : > { %v2874_v16 = vadd.f32 %v8944_v51, %v2826_v7  ;;  %v2668_v17 = vpop.f32.mrf.mxu0 }
 0x101   : > { %v3058_v19 = vrot.slane %v3044_v14, %v8949_v55  ;;  %v3059_v20 = vcombine.high %v3051_v15, %v3051_v15  ;;  %v4025_v21 = vcombine.low %v3043_v13, %v3051_v15  ;;  %v2827_v24 = vmul.f32 %v8939_v50, %v2668_v17 }
 0x102   : > { %v2915_v23 = vmax.f32 %v2874_v16, 0.0  ;;  %v7898_v25 = vpop.f32.mrf.mxu0  ;;  %v4032_v27 = vrot.slane %v4024_v12, %v8949_v55  ;;  %v8374_v12 = vmov 0  }
 0x103   : > { %v4039_v29 = vrot.slane %v4025_v21, %v8949_v55  ;;  %v4041_v30 = vcombine.low %v3059_v20, %v3058_v19  ;;  %v3060_v31 = vcombine.high %v3058_v19, %v3058_v19  ;;  %v2875_v35 = vadd.f32 %v8944_v51, %v2827_v24 }
 0x104   : > { %v3061_v33 = vcombine.high %v2915_v23, %v2915_v23  ;;  %v3068_v34 = vrot.slane %v2915_v23, %v8949_v55  ;;  %v2673_v36 = vpop.f32.mrf.mxu0  ;;  %v8997_v13 = vrot.slane %v8374_v12, 1 }
 0x105   : > { %v8970_v5 = vcombine.low %v4032_v27, %v4039_v29  ;;  %v2828_v37 = vmul.f32 %v8939_v50, %v2673_v36  ;;  %v2916_v41 = vmax.f32 %v2875_v35, 0.0  ;;  %v4049_v43 = vrot.slane %v4041_v30, %v8949_v55 }
 0x106   : > { %v3075_v38 = vrot.slane %v3061_v33, %v8949_v55  ;;  %v3076_v39 = vcombine.high %v3068_v34, %v3068_v34  ;;  %v4042_v40 = vcombine.low %v3060_v31, %v3068_v34  ;;  %v7901_v42 = vpop.f32.mrf.mxu0  ;;  %10729 = vst [vmem:[#allocation5_spill] sm:$0xff] %v8997_v13 }
 0x107   : > { %v2876_v44 = vadd.f32 %v8944_v51, %v2828_v37  ;;  %v3078_v2 = vcombine.high %v2916_v41, %v2916_v41  ;;  %v3085_v52 = vrot.slane %v2916_v41, %v8949_v55  ;;  %v4778_v56 = vsel %vm3761_vm3, %v8970_v5, 0.0 }
 0x108   : > { %v3077_v46 = vcombine.high %v3075_v38, %v3075_v38  ;;  %v4056_v47 = vrot.slane %v4042_v40, %v8949_v55  ;;  %v4064_v49 = vrot.slane %v3076_v39, %v8949_v55  ;;  %v2676_v10 = vpop.f32.mrf.mxu0 }
 0x109   : > { %v2917_v53 = vmax.f32 %v2876_v44, 0.0  ;;  %v2829_v54 = vmul.f32 %v8939_v50, %v2676_v10  ;;  %v3092_v60 = vrot.slane %v3078_v2, %v8949_v55  ;;  %v3093_v0 = vcombine.high %v3085_v52, %v3085_v52 }
 0x10a   : > { %v8985_v57 = vcombine.low %v4049_v43, %v4056_v47  ;;  %v4065_v58 = vcombine.low %v3075_v38, %v3077_v46  ;;  %v7902_v61 = vpop.f32.mrf.mxu0  ;;  %v4780_v63 = vsel %vm3820_vm4, %v4064_v49, 0.0 }
 0x10b   : > { %v3095_v1 = vcombine.high %v2917_v53, %v2917_v53  ;;  %v3102_v3 = vrot.slane %v2917_v53, %v8949_v55  ;;  %v2877_v4 = vadd.f32 %v8944_v51, %v2829_v54  ;;  %v3094_v6 = vcombine.high %v3092_v60, %v3092_v60 }
 0x10c   : > { %v2681_v7 = vpop.f32.mrf.mxu0  ;;  %v8993_v8 = vpack.c.bf16 %v8985_v57, %v4778_v56  ;;  %v8995_v11 = vpack.c.bf16 %v4780_v63, %v4780_v63  ;;  %v4066_v14 = vcombine.low %v3085_v52, %v3093_v0  ;;  %v4073_v19 = vrot.slane %v4065_v58, %v8949_v55 }
 0x10d   : > { %v3109_v15 = vrot.slane %v3095_v1, %v8949_v55  ;;  %v3110_v16 = vcombine.high %v3102_v3, %v3102_v3  ;;  %v2918_v17 = vmax.f32 %v2877_v4, 0.0  ;;  %v4082_v20 = vcombine.low %v3092_v60, %v3094_v6 }
 0x10e   : > { %v2830_v21 = vmul.f32 %v8939_v50, %v2681_v7  ;;  %v7905_v23 = vpop.f32.mrf.mxu0  ;;  %v5140_v24 = vrot.slane %v8993_v8, 1  ;;  %v4080_v25 = vrot.slane %v4066_v14, %v8949_v55  ;;  %v5141_v36 = vrot.slane %v8995_v11, 1 }
 0x10f   : > { %v4083_v27 = vcombine.low %v3102_v3, %v3110_v16  ;;  %v4105_v29 = vrot.slane %v3109_v15, %v8949_v55  ;;  %v3111_v30 = vcombine.high %v3109_v15, %v3109_v15  ;;  %v3112_v31 = vcombine.high %v2918_v17, %v2918_v17 }
 0x110   : > { %v3119_v33 = vrot.slane %v2918_v17, %v8949_v55  ;;  %v2878_v34 = vadd.f32 %v8944_v51, %v2830_v21  ;;  %v2684_v35 = vpop.f32.mrf.mxu0  ;;  %v9008_v37 = vcombine.low %v4073_v19, %v4080_v25  ;;  %v4090_v46 = vrot.slane %v4082_v20, %v8949_v55 }
 0x111   : > { %v4097_v38 = vrot.slane %v4083_v27, %v8949_v55  ;;  %v4783_v39 = vsel %vm3820_vm4, %v4105_v29, 0.0  ;;  %v2831_v40 = vmul.f32 %v8939_v50, %v2684_v35  ;;  %v3126_v41 = vrot.slane %v3112_v31, %v8949_v55 }
 0x112   : > { %v3127_v42 = vcombine.high %v3119_v33, %v3119_v33  ;;  %v4106_v43 = vcombine.low %v3111_v30, %v3119_v33  ;;  %v7906_v44 = vpop.f32.mrf.mxu0  ;;  %v9016_v47 = vpack.c.bf16 %v4783_v39, %v4783_v39  ;;  %v2919_v49 = vmax.f32 %v2878_v34, 0.0 }
 0x113   : > { %v2879_v2 = vadd.f32 %v8944_v51, %v2831_v40  ;;  %v4781_v10 = vsel %vm3761_vm3, %v9008_v37, 0.0  ;;  %v3128_v53 = vcombine.high %v3126_v41, %v3126_v41  ;;  %v9023_v54 = vsel %vm5136_vm5, %v5140_v24, %v5141_v36 }
 0x114   : > { %v4107_v52 = vcombine.low %v3127_v42, %v3126_v41  ;;  %v2689_v56 = vpop.f32.mrf.mxu0  ;;  %v9025_v58 = vcombine.low %v4090_v46, %v4097_v38  ;;  %v3129_v60 = vcombine.high %v2919_v49, %v2919_v49  ;;  %v3136_v61 = vrot.slane %v2919_v49, %v8949_v55  ;;  %7987 = vmatprep.mubr.bf16.mxu0 %v9023_v54 }
 0x115   : > { %v2920_v63 = vmax.f32 %v2879_v2, 0.0  ;;  %v4114_v0 = vrot.slane %v4106_v43, %v8949_v55  ;;  %v2832_v3 = vmul.f32 %v8939_v50, %v2689_v56  ;;  %v4881_v4 = vshll.u32 %v8993_v8, 16 }
 0x116   : > { %v4121_v1 = vrot.slane %v4107_v52, %v8949_v55  ;;  %v7909_v6 = vpop.f32.mrf.mxu0  ;;  %v9034_v7 = vrot.slane %v3129_v60, %v8949_v55  ;;  %v3144_v12 = vcombine.high %v3136_v61, %v3136_v61  ;;  %v4123_v14 = vcombine.low %v3128_v53, %v3136_v61 }
 0x117   : > { %v3146_v15 = vcombine.high %v2920_v63, %v2920_v63  ;;  %v3153_v16 = vrot.slane %v2920_v63, %v8949_v55  ;;  %v2880_v17 = vadd.f32 %v8944_v51, %v2832_v3  ;;  %v4879_v19 = vshrl.u32 %v8993_v8, 16  ;;  %v8240_v3 = vld [vmem:[%s10692_s4 + $0x38] sm:$0xff]  }
 0x118   : > { %v4883_v20 = vrot.slane %v4881_v4, 1  ;;  %v2692_v21 = vpop.f32.mrf.mxu0  ;;  %v9040_v23 = vpack.c.bf16 %v9025_v58, %v4781_v10  ;;  %v9042_v24 = vcombine.low %v4114_v0, %v4121_v1  ;;  %v4124_v25 = vcombine.low %v3144_v12, %v9034_v7 }
 0x119   : > { %v3160_v27 = vrot.slane %v3146_v15, %v8949_v55  ;;  %v3161_v29 = vcombine.high %v3153_v16, %v3153_v16  ;;  %v2921_v30 = vmax.f32 %v2880_v17, 0.0  ;;  %v4886_v33 = vshll.u32 %v8995_v11, 16 }
 0x11a   : > { %v4884_v31 = vor.u32 %v4883_v20, %v4879_v19  ;;  %v7910_v34 = vpop.f32.mrf.mxu0  ;;  %v3145_v8 = vcombine.high %v9034_v7, %v9034_v7  ;;  %v4131_v35 = vrot.slane %v4123_v14, %v8949_v55  ;;  %v2833_v38 = vmul.f32 %v8939_v50, %v2692_v21  ;;  %v8241_v14 = vld [vmem:[%s10692_s4 + $0x70] sm:$0xff]   ;;  %v8244_v7 = vld [vmem:[%s10692_s4 + $0x28] sm:$0xff]  }
 0x11b   : > { %v3162_v36 = vcombine.high %v3160_v27, %v3160_v27  ;;  %v4138_v39 = vrot.slane %v4124_v25, %v8949_v55  ;;  %v3163_v40 = vcombine.high %v2921_v30, %v2921_v30  ;;  %v3170_v41 = vrot.slane %v2921_v30, %v8949_v55  ;;  %v8242_v34 = vld [vmem:[%s10692_s4 + $0x30] sm:$0xff]  }
 0x11c   : > { %v4888_v42 = vrot.slane %v4886_v33, 1  ;;  %v2697_v43 = vpop.f32.mrf.mxu0  ;;  %v4147_v44 = vcombine.low %v3153_v16, %v3161_v29  ;;  %v2881_v49 = vadd.f32 %v8944_v51, %v2833_v38  ;;  %v5143_v2 = vrot.slane %v9040_v23, 1 }
 0x11d   : > { %v4148_v46 = vcombine.low %v3160_v27, %v3162_v36  ;;  %v3177_v10 = vrot.slane %v3163_v40, %v8949_v55  ;;  %v3178_v52 = vcombine.high %v3170_v41, %v3170_v41  ;;  %v9067_v56 = vpack.c.bf16 %v8985_v57, %v8970_v5  ;;  %v8243_v40 = vld [vmem:[%s10692_s4 + $0x68] sm:$0xff]  }
 0x11e   : > { %v9063_v53 = vsel %vm4865_vm6, %v4884_v31, %v4888_v42  ;;  %v7913_v60 = vpop.f32.mrf.mxu0  ;;  %v2922_v63 = vmax.f32 %v2881_v49, 0.0  ;;  %v5144_v0 = vrot.slane %v9016_v47, 1  ;;  %v2834_v1 = vmul.f32 %v8939_v50, %v2697_v43 }
 0x11f   : > { %v4162_v61 = vrot.slane %v4148_v46, %v8949_v55  ;;  %5482 = vmatprep.mubr.bf16.mxu1 %v9063_v53  ;;  %v9076_v4 = vcombine.low %v4131_v35, %v4138_v39  ;;  %v3179_v6 = vcombine.high %v3177_v10, %v3177_v10  ;;  %v9078_v12 = vcombine.low %v3170_v41, %v3178_v52 }
 0x120   : > { %7209 = vmatmul.mubr.msk.bf16.vlgmr.msra.gmra.mxu1 %vm9055_vm8, %v9067_v56  ;;  %v4893_v5 = vshll.u32 %v9040_v23, 16  ;;  %v2700_v57 = vpop.f32.mrf.mxu0  ;;  %v4155_v15 = vrot.slane %v4147_v44, %v8949_v55  ;;  %v3180_v16 = vcombine.high %v2922_v63, %v2922_v63  ;;  %v9089_v17 = vrot.slane %v2922_v63, %v8949_v55 }
 0x121   : > { %v9092_v19 = vsel %vm5136_vm5, %v5143_v2, %v5144_v0  ;;  %8123 = vmatpush3.bf16.msra.mxu1 %v8712_v9  ;;  %v9095_v20 = vcombine.low %v3177_v10, %v3179_v6  ;;  %v2882_v21 = vadd.f32 %v8944_v51, %v2834_v1  ;;  %v4891_v25 = vshrl.u32 %v9040_v23, 16  ;;  %v8245_v1 = vld [vmem:[%s10692_s4 + $0x60] sm:$0xff]  }
 0x122   : > { %7988 = vmatmul.mubr.bf16.vlgmr.msra.gmra.mxu0 %v9092_v19  ;;  %v4895_v27 = vrot.slane %v4893_v5, 1  ;;  %v7914_v29 = vpop.f32.mrf.mxu0  ;;  %8116 = vmatprep.subr.bf16.mxu1 %v8738_v28  ;;  %v9101_v30 = vcombine.low %v4155_v15, %v4162_v61  ;;  %v3194_v31 = vrot.slane %v3180_v16, %v8949_v55  ;;  %v3195_v33 = vcombine.high %v9089_v17, %v9089_v17 }
 0x123   : > { %v4898_v9 = vshll.u32 %v9016_v47, 16  ;;  %7610 = vmatpush3.bf16.msra.mxu0 %v8240_v3  ;;  %v4172_v23 = vrot.slane %v9078_v12, %v8949_v55  ;;  %v4187_v35 = vrot.slane %v9089_v17, %v8949_v55  ;;  %v2923_v36 = vmax.f32 %v2882_v21, 0.0  ;;  %v8251_v17 = vld [vmem:[%s10692_s4 + $0x48] sm:$0xff]  }
 0x124   : > { %v4896_v38 = vor.u32 %v4895_v27, %v4891_v25  ;;  %v2705_v39 = vpop.f32.mrf.mxu0  ;;  %7611 = vmatprep.subr.bf16.mxu0 %v8241_v14  ;;  %v4179_v47 = vrot.slane %v9095_v20, %v8949_v55  ;;  %v3196_v41 = vcombine.high %v3194_v31, %v3194_v31  ;;  %v2835_v43 = vmul.f32 %v8939_v50, %v2700_v57 }
 0x125   : > { %v4900_v42 = vrot.slane %v4898_v9, 1  ;;  %8124 = vmatpush3.bf16.msra.mxu1 %v8738_v28  ;;  %v4188_v44 = vcombine.low %v3195_v33, %v3194_v31  ;;  %v3197_v46 = vcombine.high %v2923_v36, %v2923_v36  ;;  %v3204_v49 = vrot.slane %v2923_v36, %v8949_v55  ;;  %v8246_v31 = vld [vmem:[%s10692_s4 + $0x20] sm:$0xff]  }
 0x126   : > { %v4146_v2 = vrot.slane %v3145_v8, %v8949_v55  ;;  %v7917_v10 = vpop.f32.mrf.mxu0  ;;  %8117 = vmatprep.subr.bf16.mxu1 %v8762_v48  ;;  %v9132_v60 = vpack.c.bf16 %v9025_v58, %v9008_v37  ;;  %v2883_v28 = vadd.f32 %v8944_v51, %v2835_v43  ;;  %v4784_v61 = vsel %vm3761_vm3, %v9042_v24, 0.0 }
 0x127   : > { %v9128_v52 = vsel %vm4865_vm6, %v4896_v38, %v4900_v42  ;;  %7612 = vmatpush3.bf16.msra.mxu0 %v8242_v34  ;;  %v3211_v8 = vrot.slane %v3197_v46, %v8949_v55  ;;  %v3212_v63 = vcombine.high %v3204_v49, %v3204_v49  ;;  %v4189_v0 = vcombine.low %v3196_v41, %v3204_v49  ;;  %v8247_v38 = vld [vmem:[%s10692_s4 + $0x58] sm:$0xff]  }
 0x128   : > { %10732 = vst [vmem:[#allocation6_spill] sm:$0xff] %v9128_v52  ;;  %10733 = vst [vmem:[#allocation7_spill] sm:$0xff] %v9132_v60  ;;  %5490 = vmatprep.mubr.bf16.mxu1 %v9128_v52  ;;  %v4786_v37 = vsel %vm3820_vm4, %v4146_v2, 0.0  ;;  %v2708_v58 = vpop.f32.mrf.mxu0  ;;  %7613 = vmatprep.subr.bf16.mxu0 %v8243_v40  ;;  %v2924_v3 = vmax.f32 %v2883_v28, 0.0  ;;  %v4835_v6 = vpack.c.bf16 %v9076_v4, %v4784_v61  ;;  %v8248_v10 = vld [vmem:[%s10692_s4 + $0x18] sm:$0xff]  }
 0x129   : > { %7212 = vmatmul.mubr.msk.bf16.gmra.mxu1 %vm9055_vm8, %v9132_v60  ;;  %v4836_v12 = vpack.c.bf16 %v4786_v37, %v4786_v37  ;;  %v2836_v5 = vmul.f32 %v8939_v50, %v2705_v39  ;;  %v4196_v57 = vrot.slane %v4188_v44, %v8949_v55  ;;  %v4203_v14 = vrot.slane %v4189_v0, %v8949_v55 }
 0x12a   : > { %v9155_v15 = vcombine.low %v3212_v63, %v3211_v8  ;;  %v3213_v16 = vcombine.high %v3211_v8, %v3211_v8  ;;  %v7918_v20 = vpop.f32.mrf.mxu0  ;;  %8125 = vmatpush3.bf16.msra.mxu1 %v8762_v48  ;;  %v3214_v21 = vcombine.high %v2924_v3, %v2924_v3  ;;  %v9159_v25 = vrot.slane %v2924_v3, %v8949_v55  ;;  %v8249_v63 = vld [vmem:[%s10692_s4 + $0x50] sm:$0xff]  }
 0x12b   : > { %v5146_v27 = vrot.slane %v4835_v6, 1  ;;  %v5147_v29 = vrot.slane %v4836_v12, 1  ;;  %7614 = vmatpush3.bf16.msra.mxu0 %v8244_v7  ;;  %8118 = vmatprep.subr.bf16.mxu1 %v8781_v62  ;;  %v9165_v33 = vcombine.low %v4172_v23, %v4179_v47  ;;  %v9167_v9 = vcombine.low %v4196_v57, %v4203_v14 }
 0x12c   : > { %v2884_v34 = vadd.f32 %v8944_v51, %v2836_v5  ;;  %v9172_v48 = vpack.c.bf16 %v9076_v4, %v9042_v24  ;;  %v2713_v36 = vpop.f32.mrf.mxu0  ;;  %7615 = vmatprep.subr.bf16.mxu0 %v8245_v1  ;;  %v4213_v39 = vrot.slane %v9155_v15, %v8949_v55  ;;  %v3228_v23 = vrot.slane %v3214_v21, %v8949_v55 }
 0x12d   : > { %v9181_v40 = vcombine.low %v3213_v16, %v9159_v25  ;;  %v9184_v47 = vsel %vm5136_vm5, %v5146_v27, %v5147_v29  ;;  %v4905_v4 = vshll.u32 %v4835_v6, 16  ;;  %v4910_v41 = vshll.u32 %v4836_v12, 16 }
 0x12e   : > { %7991 = vmatprep.mubr.bf16.mxu0 %v9184_v47  ;;  %v2925_v24 = vmax.f32 %v2884_v34, 0.0  ;;  %v2837_v42 = vmul.f32 %v8939_v50, %v2708_v58  ;;  %v7921_v43 = vpop.f32.mrf.mxu0  ;;  %8126 = vmatpush3.bf16.msra.mxu1 %v8781_v62  ;;  %v3229_v44 = vcombine.high %v9159_v25, %v9159_v25  ;;  %v3230_v46 = vcombine.high %v3228_v23, %v3228_v23  ;;  %v8250_v25 = vld [vmem:[%s10692_s4 + $0x10] sm:$0xff]  }
 0x12f   : > { %v4903_v49 = vshrl.u32 %v4835_v6, 16  ;;  %v2838_v2 = vmul.f32 %v8939_v50, %v2713_v36  ;;  %7616 = vmatpush3.bf16.msra.mxu0 %v8246_v31  ;;  %v4220_v28 = vrot.slane %v9181_v40, %v8949_v55  ;;  %v4907_v8 = vrot.slane %v4905_v4, 1  ;;  %8119 = vmatprep.subr.bf16.mxu1 %v8803_v18 }
 0x130   : > { %v3231_v61 = vcombine.high %v2925_v24, %v2925_v24  ;;  %v3238_v7 = vrot.slane %v2925_v24, %v8949_v55  ;;  %v2716_v62 = vpop.f32.mrf.mxu0  ;;  %7617 = vmatprep.subr.bf16.mxu0 %v8247_v38  ;;  %v4229_v0 = vcombine.low %v3228_v23, %v3230_v46  ;;  %v4912_v37 = vrot.slane %v4910_v41, 1 }
 0x131   : > { %v2885_v58 = vadd.f32 %v8944_v51, %v2837_v42  ;;  %v2886_v1 = vadd.f32 %v8944_v51, %v2838_v2  ;;  %v4908_v12 = vor.u32 %v4907_v8, %v4903_v49  ;;  %v4787_v5 = vsel %vm3761_vm3, %v9101_v30, 0.0 }
 0x132   : > { %v3245_v3 = vrot.slane %v3231_v61, %v8949_v55  ;;  %v3246_v6 = vcombine.high %v3238_v7, %v3238_v7  ;;  %v7922_v57 = vpop.f32.mrf.mxu0  ;;  %8127 = vmatpush3.bf16.msra.mxu1 %v8803_v18  ;;  %v4237_v14 = vrot.slane %v4229_v0, %v8949_v55  ;;  %v4789_v21 = vsel %vm3820_vm4, %v4187_v35, 0.0  ;;  %v8252_v0 = vld [vmem:[%s10692_s4 + $0x8] sm:$0xff]  }
 0x133   : > { %v2926_v16 = vmax.f32 %v2885_v58, 0.0  ;;  %v2927_v20 = vmax.f32 %v2886_v1, 0.0  ;;  %7618 = vmatpush3.bf16.msra.mxu0 %v8248_v10  ;;  %8120 = vmatprep.subr.bf16.mxu1 %v8825_v32  ;;  %v9220_v18 = vsel %vm4865_vm6, %v4908_v12, %v4912_v37  ;;  %v9223_v31 = vpack.c.bf16 %v9165_v33, %v4787_v5 }
 0x134   : > { %v3247_v27 = vcombine.high %v3245_v3, %v3245_v3  ;;  %v4230_v29 = vcombine.low %v3238_v7, %v3246_v6  ;;  %10734 = vst [vmem:[#allocation8_spill] sm:$0xff] %v9220_v18  ;;  %v2721_v34 = vpop.f32.mrf.mxu0  ;;  %7619 = vmatprep.subr.bf16.mxu0 %v8249_v63  ;;  %5498 = vmatprep.mubr.bf16.mxu1 %v9220_v18 }
 0x135   : > { %v3248_v35 = vcombine.high %v2926_v16, %v2926_v16  ;;  %v3255_v36 = vrot.slane %v2926_v16, %v8949_v55  ;;  %v3265_v38 = vcombine.high %v2927_v20, %v2927_v20  ;;  %v3272_v23 = vrot.slane %v2927_v20, %v8949_v55  ;;  %7215 = vmatmul.mubr.msk.bf16.gmra.mxu1 %vm9055_vm8, %v9172_v48 }
 0x136   : > { %v4244_v40 = vrot.slane %v4230_v29, %v8949_v55  ;;  %v9232_v24 = vcombine.low %v3245_v3, %v3247_v27  ;;  %v4838_v4 = vpack.c.bf16 %v4789_v21, %v4789_v21  ;;  %v5149_v41 = vrot.slane %v9223_v31, 1  ;;  %v7925_v42 = vpop.f32.mrf.mxu0  ;;  %8128 = vmatpush3.bf16.msra.mxu1 %v8825_v32  ;;  %v8254_v27 = vld [vmem:[%s10692_s4] sm:$0xff]  }
 0x137   : > { %v9239_v43 = vrot.slane %v3248_v35, %v8949_v55  ;;  %v3263_v46 = vcombine.high %v3255_v36, %v3255_v36  ;;  %v3279_v49 = vrot.slane %v3265_v38, %v8949_v55  ;;  %v3280_v2 = vcombine.high %v3272_v23, %v3272_v23  ;;  %7620 = vmatpush3.bf16.msra.mxu0 %v8250_v25 }
 0x138   : > { %v9245_v10 = vcombine.low %v4213_v39, %v4220_v28  ;;  %v4228_v61 = vrot.slane %v3229_v44, %v8949_v55  ;;  %v5150_v7 = vrot.slane %v4838_v4, 1  ;;  %v2839_v8 = vmul.f32 %v8939_v50, %v2716_v62  ;;  %v2724_v63 = vpop.f32.mrf.mxu0  ;;  %7621 = vmatprep.subr.bf16.mxu0 %v8251_v17  ;;  %v8253_v44 = vld [vmem:[%s10692_s4 + $0x40] sm:$0xff]   ;;  %8121 = vmatprep.subr.bf16.mxu1 %v8853_v59 }
 0x139   : > { %v9253_v37 = vcombine.low %v4237_v14, %v4244_v40  ;;  %v4247_v58 = vcombine.low %v3255_v36, %v3263_v46  ;;  %v3264_v15 = vcombine.high %v9239_v43, %v9239_v43  ;;  %v4271_v39 = vcombine.low %v3280_v2, %v3279_v49 }
 0x13a   : > { %v4254_v28 = vrot.slane %v9232_v24, %v8949_v55  ;;  %v4269_v62 = vrot.slane %v9239_v43, %v8949_v55  ;;  %v9266_v32 = vsel %vm5136_vm5, %v5149_v41, %v5150_v7  ;;  %v2887_v1 = vadd.f32 %v8944_v51, %v2839_v8  ;;  %v7926_v3 = vpop.f32.mrf.mxu0  ;;  %8129 = vmatpush3.bf16.msra.mxu1 %v8853_v59 }
 0x13b   : > { %10735 = vst [vmem:[#allocation9_spill] sm:$0xff] %v9266_v32  ;;  %v4270_v6 = vcombine.low %v3264_v15, %v3272_v23  ;;  %7992 = vmatmul.mubr.bf16.gmra.mxu0 %v9266_v32  ;;  %v3281_v12 = vcombine.high %v3279_v49, %v3279_v49  ;;  %v4915_v5 = vshrl.u32 %v9223_v31, 16  ;;  %v4917_v57 = vshll.u32 %v9223_v31, 16  ;;  %8122 = vmatprep.subr.bf16.mxu1 %v8889_v45 }
 0x13c   : > { %v4261_v14 = vrot.slane %v4247_v58, %v8949_v55  ;;  %v2928_v16 = vmax.f32 %v2887_v1, 0.0  ;;  %v4922_v20 = vshll.u32 %v4838_v4, 16  ;;  %v2840_v21 = vmul.f32 %v8939_v50, %v2721_v34  ;;  %v2729_v25 = vpop.f32.mrf.mxu0  ;;  %7622 = vmatpush3.bf16.msra.mxu0 %v8252_v0  ;;  %v8255_v34 = vld [vmem:[%s10692_s4 + $0xb8] sm:$0xff]  }
 0x13d   : > { %v4278_v29 = vrot.slane %v4270_v6, %v8949_v55  ;;  %v4285_v17 = vrot.slane %v4271_v39, %v8949_v55  ;;  %v4919_v35 = vrot.slane %v4917_v57, 1  ;;  %v9282_v31 = vpack.c.bf16 %v9165_v33, %v9101_v30  ;;  %7623 = vmatprep.subr.bf16.mxu0 %v8253_v44 }
 0x13e   : > { %v3282_v36 = vcombine.high %v2928_v16, %v2928_v16  ;;  %v3289_v38 = vrot.slane %v2928_v16, %v8949_v55  ;;  %v2888_v59 = vadd.f32 %v8944_v51, %v2840_v21  ;;  %v4790_v23 = vsel %vm3761_vm3, %v9167_v9, 0.0  ;;  %v7929_v40 = vpop.f32.mrf.mxu0  ;;  %8130 = vmatpush3.bf16.msra.mxu1 %v8889_v45 }
 0x13f   : > { %10736 = vst [vmem:[#allocation10_spill] sm:$0xff] %v9282_v31  ;;  %v4920_v24 = vor.u32 %v4919_v35, %v4915_v5  ;;  %v4924_v30 = vrot.slane %v4922_v20, 1  ;;  %v4792_v33 = vsel %vm3820_vm4, %v4228_v61, 0.0  ;;  %v4839_v4 = vpack.c.bf16 %v9245_v10, %v4790_v23  ;;  %8019 = vmatprep.subr.bf16.mxu1 %v8255_v34 }
 0x140   : > { %v9297_v41 = vrot.slane %v3282_v36, %v8949_v55  ;;  %v3297_v42 = vcombine.high %v3289_v38, %v3289_v38  ;;  %v4287_v46 = vcombine.low %v3281_v12, %v3289_v38  ;;  %v2929_v49 = vmax.f32 %v2888_v59, 0.0  ;;  %v2732_v2 = vpop.f32.mrf.mxu0  ;;  %7624 = vmatpush3.bf16.msra.mxu0 %v8254_v27 }
 0x141   : > { %v9301_v7 = vsel %vm4865_vm6, %v4920_v24, %v4924_v30  ;;  %v4840_v8 = vpack.c.bf16 %v4792_v33, %v4792_v33  ;;  %v5152_v0 = vrot.slane %v4839_v4, 1  ;;  %v2841_v58 = vmul.f32 %v8939_v50, %v2724_v63 }
 0x142   : > { %10737 = vst [vmem:[#allocation11_spill] sm:$0xff] %v9301_v7  ;;  %v9304_v61 = vcombine.low %v4254_v28, %v4261_v14  ;;  %v9306_v15 = vcombine.low %v4278_v29, %v4285_v17  ;;  %v4288_v39 = vcombine.low %v3297_v42, %v9297_v41  ;;  %5506 = vmatprep.mubr.bf16.mxu1 %v9301_v7  ;;  %v7930_v1 = vpop.f32.mrf.mxu0  ;;  %v4927_v12 = vshrl.u32 %v4839_v4, 16 }
 0x143   : > { %v3299_v44 = vcombine.high %v2929_v49, %v2929_v49  ;;  %v4295_v45 = vrot.slane %v4287_v46, %v8949_v55  ;;  %7218 = vmatmul.mubr.msk.bf16.gmra.mxu1 %vm9055_vm8, %v9282_v31  ;;  %v3306_v3 = vrot.slane %v2929_v49, %v8949_v55  ;;  %v5153_v63 = vrot.slane %v4840_v8, 1 }
 0x144   : > { %v2889_v28 = vadd.f32 %v8944_v51, %v2841_v58  ;;  %v4929_v5 = vshll.u32 %v4839_v4, 16  ;;  %v4934_v57 = vshll.u32 %v4840_v8, 16  ;;  %v2737_v14 = vpop.f32.mrf.mxu0  ;;  %v4302_v16 = vrot.slane %v4288_v39, %v8949_v55 }
 0x145   : > { %v3313_v6 = vrot.slane %v3299_v44, %v8949_v55  ;;  %v3314_v20 = vcombine.high %v3306_v3, %v3306_v3  ;;  %v9319_v21 = vsel %vm5136_vm5, %v5152_v0, %v5153_v63  ;;  %v9324_v34 = vpack.c.bf16 %v9245_v10, %v9167_v9 }
 0x146   : > { %10738 = vst [vmem:[#allocation12_spill] sm:$0xff] %v9319_v21  ;;  %v2930_v27 = vmax.f32 %v2889_v28, 0.0  ;;  %7995 = vmatprep.mubr.bf16.mxu0 %v9319_v21  ;;  %v4931_v17 = vrot.slane %v4929_v5, 1  ;;  %v4936_v35 = vrot.slane %v4934_v57, 1  ;;  %v7933_v36 = vpop.f32.mrf.mxu0  ;;  %v2842_v40 = vmul.f32 %v8939_v50, %v2729_v25 }
 0x147   : > { %v3315_v29 = vcombine.high %v3313_v6, %v3313_v6  ;;  %v4311_v38 = vcombine.low %v3306_v3, %v3314_v20  ;;  %v4793_v33 = vsel %vm3761_vm3, %v9253_v37, 0.0  ;;  %v4795_v9 = vsel %vm3820_vm4, %v4269_v62, 0.0 }
 0x148   : > { %v3316_v59 = vcombine.high %v2930_v27, %v2930_v27  ;;  %v3323_v23 = vrot.slane %v2930_v27, %v8949_v55  ;;  %v4932_v30 = vor.u32 %v4931_v17, %v4927_v12  ;;  %v2740_v10 = vpop.f32.mrf.mxu0  ;;  %v2890_v25 = vadd.f32 %v8944_v51, %v2842_v40 }
 0x149   : > { %v4312_v24 = vcombine.low %v3313_v6, %v3315_v29  ;;  %v4319_v4 = vrot.slane %v4311_v38, %v8949_v55  ;;  %v4841_v0 = vpack.c.bf16 %v9304_v61, %v4793_v33  ;;  %v4842_v58 = vpack.c.bf16 %v4795_v9, %v4795_v9 }
 0x14a   : > { %v3330_v42 = vrot.slane %v3316_v59, %v8949_v55  ;;  %v3331_v46 = vcombine.high %v3323_v23, %v3323_v23  ;;  %v9341_v8 = vsel %vm4865_vm6, %v4932_v30, %v4936_v35  ;;  %v7934_v43 = vpop.f32.mrf.mxu0  ;;  %v2931_v62 = vmax.f32 %v2890_v25, 0.0 }
 0x14b   : > { %v4326_v49 = vrot.slane %v4312_v24, %v8949_v55  ;;  %10739 = vst [vmem:[#allocation13_spill] sm:$0xff] %v9341_v8  ;;  %5514 = vmatprep.mubr.bf16.mxu1 %v9341_v8  ;;  %v2843_v1 = vmul.f32 %v8939_v50, %v2732_v2  ;;  %v3298_v3 = vcombine.high %v9297_v41, %v9297_v41  ;;  %v5155_v28 = vrot.slane %v4841_v0, 1 }
 0x14c   : > { %v3332_v39 = vcombine.high %v3330_v42, %v3330_v42  ;;  %v9344_v44 = vcombine.low %v3323_v23, %v3331_v46  ;;  %v9350_v63 = vcombine.low %v4295_v45, %v4302_v16  ;;  %7221 = vmatmul.mubr.msk.bf16.gmra.mxu1 %vm9055_vm8, %v9324_v34  ;;  %v5156_v6 = vrot.slane %v4842_v58, 1  ;;  %v9355_v12 = vpop.f32.mrf.mxu0 }
 0x14d   : > { %v9357_v5 = vcombine.low %v4319_v4, %v4326_v49  ;;  %v3333_v20 = vcombine.high %v2931_v62, %v2931_v62  ;;  %v9360_v27 = vrot.slane %v2931_v62, %v8949_v55  ;;  %v2891_v41 = vadd.f32 %v8944_v51, %v2843_v1 }
 0x14e   : > { %v4329_v57 = vcombine.low %v3330_v42, %v3332_v39  ;;  %v9363_v2 = vsel %vm5136_vm5, %v5155_v28, %v5156_v6  ;;  %v4941_v45 = vshll.u32 %v4841_v0, 16  ;;  %v4946_v16 = vshll.u32 %v4842_v58, 16  ;;  %v7937_v29 = vpop.f32.mrf.mxu0 }
 0x14f   : > { %10740 = vst [vmem:[#allocation14_spill] sm:$0xff] %v9363_v2  ;;  %v4336_v17 = vrot.slane %v9344_v44, %v8949_v55  ;;  %v3347_v35 = vrot.slane %v3333_v20, %v8949_v55  ;;  %v3348_v36 = vcombine.high %v9360_v27, %v9360_v27  ;;  %7996 = vmatmul.mubr.bf16.gmra.mxu0 %v9363_v2  ;;  %v4939_v38 = vshrl.u32 %v4841_v0, 16 }
 0x150   : > { %v4343_v59 = vrot.slane %v4329_v57, %v8949_v55  ;;  %v2932_v23 = vmax.f32 %v2891_v41, 0.0  ;;  %v4943_v40 = vrot.slane %v4941_v45, 1  ;;  %v4948_v24 = vrot.slane %v4946_v16, 1  ;;  %v9373_v30 = vpop.f32.mrf.mxu0 }
 0x151   : > { %v4352_v33 = vcombine.low %v3348_v36, %v3347_v35  ;;  %v3349_v9 = vcombine.high %v3347_v35, %v3347_v35  ;;  %v9377_v4 = vpack.c.bf16 %v9304_v61, %v9253_v37  ;;  %v2844_v42 = vmul.f32 %v8939_v50, %v2737_v14 }
 0x152   : > { %v3350_v46 = vcombine.high %v2932_v23, %v2932_v23  ;;  %v3357_v25 = vrot.slane %v2932_v23, %v8949_v55  ;;  %v4944_v49 = vor.u32 %v4943_v40, %v4939_v38  ;;  %v4310_v0 = vrot.slane %v3298_v3, %v8949_v55  ;;  %v7938_v58 = vpop.f32.mrf.mxu0  ;;  %v9397_v3 = vld [vmem:[%s10692_s4 + $0x238] sm:$0xff]  }
 0x153   : > { %v4360_v43 = vrot.slane %v4352_v33, %v8949_v55  ;;  %v2892_v39 = vadd.f32 %v8944_v51, %v2844_v42  ;;  %v4796_v44 = vsel %vm3761_vm3, %v9306_v15, 0.0  ;;  %v2845_v37 = vmul.f32 %v8939_v50, %v2740_v10  ;;  %8067 = vmatprep.subr.bf16.mxu0 %v9397_v3 }
 0x154   : > { %v3364_v61 = vrot.slane %v3350_v46, %v8949_v55  ;;  %v3365_v14 = vcombine.high %v3357_v25, %v3357_v25  ;;  %v4353_v62 = vcombine.low %v3349_v9, %v3357_v25  ;;  %v9390_v1 = vsel %vm4865_vm6, %v4944_v49, %v4948_v24  ;;  %v9392_v28 = vpop.f32.mrf.mxu0 }
 0x155   : > { %5522 = vmatprep.mubr.bf16.mxu1 %v9390_v1  ;;  %v2933_v6 = vmax.f32 %v2892_v39, 0.0  ;;  %v4798_v50 = vsel %vm3820_vm4, %v4310_v0, 0.0  ;;  %v4843_v10 = vpack.c.bf16 %v9350_v63, %v4796_v44  ;;  %v2893_v57 = vadd.f32 %v8944_v51, %v2845_v37 }
 0x156   : > { %v4367_v20 = vrot.slane %v4353_v62, %v8949_v55  ;;  %v4369_v41 = vcombine.low %v3365_v14, %v3364_v61  ;;  %7224 = vmatmul.mubr.msk.bf16.gmra.mxu1 %vm9055_vm8, %v9377_v4  ;;  %v3366_v45 = vcombine.high %v3364_v61, %v3364_v61  ;;  %v4844_v16 = vpack.c.bf16 %v4798_v50, %v4798_v50  ;;  %v7941_v29 = vpop.f32.mrf.mxu0 }
 0x157   : > { %v3367_v35 = vcombine.high %v2933_v6, %v2933_v6  ;;  %v3374_v36 = vrot.slane %v2933_v6, %v8949_v55  ;;  %v5158_v38 = vrot.slane %v4843_v10, 1  ;;  %v2934_v23 = vmax.f32 %v2893_v57, 0.0 }
 0x158   : > { %v9410_v40 = vcombine.low %v4336_v17, %v4343_v59  ;;  %v4351_v51 = vrot.slane %v9360_v27, %v8949_v55  ;;  %v9414_v24 = vcombine.low %v4360_v43, %v4367_v20  ;;  %v5159_v33 = vrot.slane %v4844_v16, 1  ;;  %v9416_v9 = vpop.f32.mrf.mxu0 }
 0x159   : > { %v3381_v42 = vrot.slane %v3367_v35, %v8949_v55  ;;  %v3382_v46 = vcombine.high %v3374_v36, %v3374_v36  ;;  %v4370_v25 = vcombine.low %v3366_v45, %v3374_v36  ;;  %v3384_v49 = vcombine.high %v2934_v23, %v2934_v23  ;;  %v9440_v45 = vld [vmem:[%s10690_s2] ss:$0 sm:$0xff] }
 0x15a   : > { %v4377_v0 = vrot.slane %v4369_v41, %v8949_v55  ;;  %v9421_v58 = vsel %vm5136_vm5, %v5158_v38, %v5159_v33  ;;  %v3391_v17 = vrot.slane %v2934_v23, %v8949_v55  ;;  %v4953_v59 = vshll.u32 %v4843_v10, 16  ;;  %v7942_v39 = vpop.f32.mrf.mxu0 }
 0x15b   : > { %10741 = vst [vmem:[#allocation15_spill] sm:$0xff] %v9421_v58  ;;  %v9427_v27 = vsel %vm3761_vm3, %v9414_v24, 0.0  ;;  %v3383_v43 = vcombine.high %v3381_v42, %v3381_v42  ;;  %7999 = vmatprep.mubr.bf16.mxu0 %v9421_v58  ;;  %v3398_v44 = vrot.slane %v3384_v49, %v8949_v55  ;;  %v4951_v37 = vshrl.u32 %v4843_v10, 16 }
 0x15c   : > { %v4384_v61 = vrot.slane %v4370_v25, %v8949_v55  ;;  %v3399_v14 = vcombine.high %v3391_v17, %v3391_v17  ;;  %v4955_v62 = vrot.slane %v4953_v59, 1  ;;  %v4958_v6 = vshll.u32 %v4844_v16, 16  ;;  %v9432_v50 = vpop.f32.mrf.mxu0 }
 0x15d   : > { %v9435_v57 = vrot.slane %v3382_v46, %v8949_v55  ;;  %v4393_v20 = vcombine.low %v3381_v42, %v3383_v43  ;;  %v3400_v41 = vcombine.high %v3398_v44, %v3398_v44  ;;  %v2846_v10 = vmul.f32 %v9440_v45, %v9355_v12  ;;  %v9453_v42 = vld [vmem:[%s10691_s3] ss:$0 sm:$0xff] }
 0x15e   : > { %v4394_v29 = vcombine.low %v3391_v17, %v3399_v14  ;;  %v4956_v35 = vor.u32 %v4955_v62, %v4951_v37  ;;  %v4960_v36 = vrot.slane %v4958_v6, 1  ;;  %v2847_v16 = vmul.f32 %v9440_v45, %v9373_v30  ;;  %v7945_v38 = vpop.f32.mrf.mxu0 }
 0x15f   : > { %v4410_v23 = vcombine.low %v3398_v44, %v3400_v41  ;;  %v9448_v33 = vpack.c.bf16 %v9350_v63, %v9306_v15  ;;  %v2894_v46 = vadd.f32 %v9453_v42, %v2846_v10  ;;  %v4799_v12 = vsel %vm3761_vm3, %v9357_v5, 0.0 }
 0x160   : > { %v4408_v25 = vrot.slane %v4394_v29, %v8949_v55  ;;  %v9461_v30 = vsel %vm4865_vm6, %v4956_v35, %v4960_v36  ;;  %v2895_v49 = vadd.f32 %v9453_v42, %v2847_v16  ;;  %v4801_v15 = vsel %vm3820_vm4, %v4351_v51, 0.0  ;;  %v9466_v63 = vpop.f32.mrf.mxu0 }
 0x161   : > { %v9468_v17 = vcombine.low %v4377_v0, %v4384_v61  ;;  %5530 = vmatprep.mubr.bf16.mxu1 %v9461_v30  ;;  %v2935_v59 = vmax.f32 %v2894_v46, 0.0  ;;  %v4845_v39 = vpack.c.bf16 %v9410_v40, %v4799_v12  ;;  %v4846_v43 = vpack.c.bf16 %v4801_v15, %v4801_v15 }
 0x162   : > { %v4401_v44 = vrot.slane %v4393_v20, %v8949_v55  ;;  %v4418_v37 = vrot.slane %v4410_v23, %v8949_v55  ;;  %7227 = vmatmul.mubr.msk.bf16.gmra.mxu1 %vm9055_vm8, %v9448_v33  ;;  %v2936_v14 = vmax.f32 %v2895_v49, 0.0  ;;  %v2848_v51 = vmul.f32 %v9440_v45, %v9392_v28  ;;  %v7946_v0 = vpop.f32.mrf.mxu0 }
 0x163   : > { %v3401_v61 = vcombine.high %v2935_v59, %v2935_v59  ;;  %v3408_v62 = vrot.slane %v2935_v59, %v8949_v55  ;;  %v5161_v6 = vrot.slane %v4845_v39, 1  ;;  %v5162_v41 = vrot.slane %v4846_v43, 1 }
 0x164   : > { %v9480_v10 = vcombine.low %v4401_v44, %v4408_v25  ;;  %v3418_v29 = vcombine.high %v2936_v14, %v2936_v14  ;;  %v3425_v20 = vrot.slane %v2936_v14, %v8949_v55  ;;  %v2896_v35 = vadd.f32 %v9453_v42, %v2848_v51  ;;  %v9484_v36 = vpop.f32.mrf.mxu0 }
 0x165   : > { %v3415_v16 = vrot.slane %v3401_v61, %v8949_v55  ;;  %v3416_v38 = vcombine.high %v3408_v62, %v3408_v62  ;;  %v9488_v28 = vsel %vm5136_vm5, %v5161_v6, %v5162_v41  ;;  %v9492_v23 = vpack.c.bf16 %v9410_v40, %v9357_v5 }
 0x166   : > { %10742 = vst [vmem:[#allocation16_spill] sm:$0xff] %v9488_v28  ;;  %v3432_v46 = vrot.slane %v3418_v29, %v8949_v55  ;;  %v3433_v12 = vcombine.high %v3425_v20, %v3425_v20  ;;  %8000 = vmatmul.mubr.bf16.gmra.mxu0 %v9488_v28  ;;  %v2937_v25 = vmax.f32 %v2896_v35, 0.0  ;;  %v4965_v49 = vshll.u32 %v4845_v39, 16  ;;  %v7949_v15 = vpop.f32.mrf.mxu0 }
 0x167   : > { %v4411_v59 = vcombine.low %v3408_v62, %v3416_v38  ;;  %v3417_v44 = vcombine.high %v3415_v16, %v3415_v16  ;;  %v4963_v14 = vshrl.u32 %v4845_v39, 16  ;;  %v4970_v51 = vshll.u32 %v4846_v43, 16  ;;  %5948 = vmatprep.mubr.bf16.mxu0 %v8997_v13 }
 0x168   : > { %v4435_v0 = vcombine.low %v3433_v12, %v3432_v46  ;;  %v3434_v61 = vcombine.high %v3432_v46, %v3432_v46  ;;  %v3435_v6 = vcombine.high %v2937_v25, %v2937_v25  ;;  %v3442_v5 = vrot.slane %v2937_v25, %v8949_v55  ;;  %v9498_v40 = vpop.f32.mrf.mxu0 }
 0x169   : > { %v4425_v41 = vrot.slane %v4411_v59, %v8949_v55  ;;  %v4433_v29 = vrot.slane %v3415_v16, %v8949_v55  ;;  %v4434_v35 = vcombine.low %v3417_v44, %v3425_v20  ;;  %v4967_v28 = vrot.slane %v4965_v49, 1 }
 0x16a   : > { %v4449_v62 = vrot.slane %v4435_v0, %v8949_v55  ;;  %v9504_v39 = vrot.slane %v3435_v6, %v8949_v55  ;;  %v3450_v43 = vcombine.high %v3442_v5, %v3442_v5  ;;  %v4451_v38 = vcombine.low %v3434_v61, %v3442_v5  ;;  %v7950_v12 = vpop.f32.mrf.mxu0 }
 0x16b   : > { %v9506_v46 = vcombine.low %v4418_v37, %v4425_v41  ;;  %v4968_v15 = vor.u32 %v4967_v28, %v4963_v14  ;;  %v4972_v25 = vrot.slane %v4970_v51, 1  ;;  %v2849_v13 = vmul.f32 %v9440_v45, %v9416_v9  ;;  %v8263_v51 = vld [vmem:[%s10692_s4 + $0x230] sm:$0xff]  }
 0x16c   : > { %v4442_v59 = vrot.slane %v4434_v35, %v8949_v55  ;;  %v4452_v16 = vcombine.low %v3450_v43, %v9504_v39  ;;  %v2850_v49 = vmul.f32 %v9440_v45, %v9432_v50  ;;  %v9516_v44 = vpop.f32.mrf.mxu0  ;;  %v4459_v37 = vrot.slane %v4451_v38, %v8949_v55 }
 0x16d   : > { %v9520_v28 = vsel %vm4865_vm6, %v4968_v15, %v4972_v25  ;;  %v2897_v14 = vadd.f32 %v9453_v42, %v2849_v13  ;;  %v4804_v9 = vsel %vm3820_vm4, %v9435_v57, 0.0  ;;  %v4805_v50 = vsel %vm3761_vm3, %v9480_v10, 0.0 }
 0x16e   : > { %v9532_v0 = vcombine.low %v4442_v59, %v4449_v62  ;;  %5538 = vmatprep.mubr.bf16.mxu1 %v9520_v28  ;;  %v10699_v61 = vmov 0.0|0.0   ;;  %v2898_v13 = vadd.f32 %v9453_v42, %v2850_v49  ;;  %v9539_v57 = vpack.c.bf16 %v9468_v17, %v9427_v27  ;;  %v7953_v6 = vpop.f32.mrf.mxu0 }
 0x16f   : > { %5949 = vmatmul.mubr.bf16.vlgmr.msra.gmra.mxu0 %v10699_v61  ;;  %v4466_v5 = vrot.slane %v4452_v16, %v8949_v55  ;;  %7230 = vmatmul.mubr.msk.bf16.gmra.mxu1 %vm9055_vm8, %v9492_v23  ;;  %v2938_v41 = vmax.f32 %v2897_v14, 0.0  ;;  %v9546_v35 = vpack.c.bf16 %v4804_v9, %v4804_v9  ;;  %v4807_v62 = vsel %vm3820_vm4, %v4433_v29, 0.0  ;;  %v9566_v16 = vld [vmem:[%s10692_s4 + $0x228] sm:$0xff]  }
 0x170   : > { %5956 = vmatprep.mubr.bf16.mxu0 %v9063_v53  ;;  %v2939_v43 = vmax.f32 %v2898_v13, 0.0  ;;  %v4975_v38 = vshrl.u32 %v9539_v57, 16  ;;  %v4977_v27 = vshll.u32 %v9539_v57, 16  ;;  %v9554_v12 = vpack.c.bf16 %v9468_v17, %v9414_v24  ;;  %v9556_v15 = vpop.f32.mrf.mxu0  ;;  %8068 = vmatpush3.bf16.msra.mxu0 %v9397_v3  ;;  %10743 = vst [vmem:[#allocation17_spill] sm:$0xff] %v9566_v16 }
 0x171   : > { %v3452_v25 = vcombine.high %v2938_v41, %v2938_v41  ;;  %v3459_v53 = vrot.slane %v2938_v41, %v8949_v55  ;;  %v4982_v59 = vshll.u32 %v9546_v35, 16  ;;  %v2851_v29 = vmul.f32 %v9440_v45, %v9466_v63  ;;  %8069 = vmatprep.subr.bf16.mxu0 %v8263_v51 }
 0x172   : > { %v3469_v24 = vcombine.high %v2939_v43, %v2939_v43  ;;  %v3476_v17 = vrot.slane %v2939_v43, %v8949_v55  ;;  %v4979_v49 = vrot.slane %v4977_v27, 1  ;;  %v2852_v3 = vmul.f32 %v9440_v45, %v9484_v36  ;;  %v7954_v14 = vpop.f32.mrf.mxu0 }
 0x173   : > { %v3466_v9 = vrot.slane %v3452_v25, %v8949_v55  ;;  %v3467_v13 = vcombine.high %v3459_v53, %v3459_v53  ;;  %v4984_v6 = vrot.slane %v4982_v59, 1  ;;  %v2899_v63 = vadd.f32 %v9453_v42, %v2851_v29 }
 0x174   : > { %v3483_v41 = vrot.slane %v3469_v24, %v8949_v55  ;;  %v3484_v61 = vcombine.high %v3476_v17, %v3476_v17  ;;  %v4980_v20 = vor.u32 %v4979_v49, %v4975_v38  ;;  %v2900_v58 = vadd.f32 %v9453_v42, %v2852_v3  ;;  %v9575_v2 = vpop.f32.mrf.mxu0  ;;  %8070 = vmatpush3.bf16.msra.mxu0 %v8263_v51 }
 0x175   : > { %v9577_v43 = vcombine.low %v4459_v37, %v4466_v5  ;;  %v3468_v27 = vcombine.high %v3466_v9, %v3466_v9  ;;  %v4475_v36 = vcombine.low %v3459_v53, %v3467_v13  ;;  %v2940_v14 = vmax.f32 %v2899_v63, 0.0  ;;  %8071 = vmatprep.subr.bf16.mxu0 %v9566_v16  ;;  %v9589_v37 = vld [vmem:[%s10692_s4 + $0x220] sm:$0xff]  }
 0x176   : > { %v3485_v25 = vcombine.high %v3483_v41, %v3483_v41  ;;  %v4492_v59 = vcombine.low %v3476_v17, %v3484_v61  ;;  %v9581_v29 = vsel %vm4865_vm6, %v4980_v20, %v4984_v6  ;;  %v2941_v38 = vmax.f32 %v2900_v58, 0.0  ;;  %v7957_v24 = vpop.f32.mrf.mxu0  ;;  %10744 = vst [vmem:[#allocation18_spill] sm:$0xff] %v9589_v37 }
 0x177   : > { %7281 = vmatmul.mubr.msk.bf16.gmra.mxu0 %vm9055_vm8, %v9067_v56  ;;  %v4476_v51 = vcombine.low %v3466_v9, %v3468_v27  ;;  %5546 = vmatprep.mubr.bf16.mxu1 %v9581_v29  ;;  %v3486_v5 = vcombine.high %v2940_v14, %v2940_v14  ;;  %v9593_v61 = vrot.slane %v2940_v14, %v8949_v55  ;;  %v4808_v56 = vsel %vm3761_vm3, %v9532_v0, 0.0  ;;  %v9625_v14 = vld [vmem:[%s10692_s4 + $0x218] sm:$0xff]  }
 0x178   : > { %v9596_v20 = vpack.c.bf16 %v9506_v46, %v4805_v50  ;;  %v4483_v58 = vrot.slane %v4475_v36, %v8949_v55  ;;  %v4493_v53 = vcombine.low %v3483_v41, %v3485_v25  ;;  %7233 = vmatmul.mubr.msk.bf16.gmra.mxu1 %vm9055_vm8, %v9554_v12  ;;  %5964 = vmatprep.mubr.bf16.mxu0 %v9128_v52  ;;  %v9606_v49 = vpop.f32.mrf.mxu0 }
 0x179   : > { %v3503_v17 = vcombine.high %v2941_v38, %v2941_v38  ;;  %v4490_v3 = vrot.slane %v4476_v51, %v8949_v55  ;;  %v4500_v50 = vrot.slane %v4492_v59, %v8949_v55  ;;  %v3500_v9 = vrot.slane %v3486_v5, %v8949_v55  ;;  %8072 = vmatpush3.bf16.msra.mxu0 %v9566_v16 }
 0x17a   : > { %v3501_v13 = vcombine.high %v9593_v61, %v9593_v61  ;;  %v4507_v6 = vrot.slane %v4493_v53, %v8949_v55  ;;  %v3510_v63 = vrot.slane %v2941_v38, %v8949_v55  ;;  %v9619_v27 = vpack.c.bf16 %v4807_v62, %v4807_v62  ;;  %v7958_v36 = vpop.f32.mrf.mxu0  ;;  %8073 = vmatprep.subr.bf16.mxu0 %v9589_v37 }
 0x17b   : > { %v9617_v41 = vrot.slane %v3503_v17, %v8949_v55  ;;  %10745 = vst [vmem:[#allocation19_spill] sm:$0xff] %v9625_v14  ;;  %v9627_v25 = vcombine.low %v4483_v58, %v4490_v3  ;;  %v3502_v24 = vcombine.high %v3500_v9, %v3500_v9  ;;  %v4989_v51 = vshll.u32 %v9596_v20, 16 }
 0x17c   : > { %v4516_v59 = vcombine.low %v3501_v13, %v3500_v9  ;;  %v3518_v5 = vcombine.high %v3510_v63, %v3510_v63  ;;  %v4987_v62 = vshrl.u32 %v9596_v20, 16  ;;  %v4994_v53 = vshll.u32 %v9619_v27, 16  ;;  %v9634_v17 = vpop.f32.mrf.mxu0 }
 0x17d   : > { %v9636_v36 = vcombine.low %v4500_v50, %v4507_v6  ;;  %v4517_v16 = vcombine.low %v3502_v24, %v3510_v63  ;;  %v4991_v52 = vrot.slane %v4989_v51, 1  ;;  %v9640_v58 = vpack.c.bf16 %v9506_v46, %v9480_v10  ;;  %8074 = vmatpush3.bf16.msra.mxu0 %v9589_v37  ;;  %v9661_v46 = vld [vmem:[%s10692_s4 + $0x210] sm:$0xff]  }
 0x17e   : > { %v9646_v3 = vsel %vm3761_vm3, %v9627_v25, 0.0  ;;  %v4524_v9 = vrot.slane %v4516_v59, %v8949_v55  ;;  %v9650_v13 = vcombine.low %v3518_v5, %v9617_v41  ;;  %v2853_v50 = vmul.f32 %v9440_v45, %v9498_v40  ;;  %v7961_v10 = vpop.f32.mrf.mxu0  ;;  %8075 = vmatprep.subr.bf16.mxu0 %v9625_v14  ;;  %10746 = vst [vmem:[#allocation20_spill] sm:$0xff] %v9661_v46 }
 0x17f   : > { %7284 = vmatmul.mubr.msk.bf16.gmra.mxu0 %vm9055_vm8, %v9132_v60  ;;  %v4992_v6 = vor.u32 %v4991_v52, %v4987_v62  ;;  %v4996_v63 = vrot.slane %v4994_v53, 1  ;;  %v2854_v59 = vmul.f32 %v9440_v45, %v9516_v44  ;;  %v10747_v40 = vcombine.high %v9504_v39, %v9504_v39 }
 0x180   : > { %5972 = vmatprep.mubr.bf16.mxu0 %v9220_v18  ;;  %v4531_v51 = vrot.slane %v4517_v16, %v8949_v55  ;;  %v2901_v5 = vadd.f32 %v9453_v42, %v2853_v50  ;;  %v3519_v10 = vcombine.high %v9617_v41, %v9617_v41  ;;  %v9675_v52 = vpack.c.bf16 %v9577_v43, %v4808_v56  ;;  %v9677_v62 = vpop.f32.mrf.mxu0 }
 0x181   : > { %v4474_v24 = vrot.slane %v10747_v40, %v8949_v55  ;;  %v9682_v53 = vsel %vm4865_vm6, %v4992_v6, %v4996_v63  ;;  %v2902_v39 = vadd.f32 %v9453_v42, %v2854_v59  ;;  %8076 = vmatpush3.bf16.msra.mxu0 %v9625_v14  ;;  %v9694_v40 = vpack.c.bf16 %v9577_v43, %v9532_v0  ;;  %v9708_v0 = vld [vmem:[%s10692_s4 + $0x208] sm:$0xff]  }
 0x182   : > { %5554 = vmatprep.mubr.bf16.mxu1 %v9682_v53  ;;  %v2942_v41 = vmax.f32 %v2901_v5, 0.0  ;;  %v5001_v50 = vshll.u32 %v9675_v52, 16  ;;  %v7962_v6 = vpop.f32.mrf.mxu0  ;;  %8077 = vmatprep.subr.bf16.mxu0 %v9661_v46  ;;  %v4999_v59 = vshrl.u32 %v9675_v52, 16  ;;  %v2856_v5 = vmul.f32 %v9440_v45, %v9575_v2  ;;  %10748 = vst [vmem:[#allocation21_spill] sm:$0xff] %v9708_v0 }
 0x183   : > { %v4810_v16 = vsel %vm3820_vm4, %v4474_v24, 0.0  ;;  %7236 = vmatmul.mubr.msk.bf16.gmra.mxu1 %vm9055_vm8, %v9640_v58  ;;  %v2943_v63 = vmax.f32 %v2902_v39, 0.0  ;;  %v2855_v24 = vmul.f32 %v9440_v45, %v9556_v15  ;;  %v9718_v37 = vcombine.low %v4524_v9, %v4531_v51 }
 0x184   : > { %v9689_v56 = vpack.c.bf16 %v4810_v16, %v4810_v16  ;;  %v3520_v43 = vcombine.high %v2942_v41, %v2942_v41  ;;  %v3527_v16 = vrot.slane %v2942_v41, %v8949_v55  ;;  %v5003_v6 = vrot.slane %v5001_v50, 1  ;;  %v9712_v39 = vpop.f32.mrf.mxu0 }
 0x185   : > { %v3537_v44 = vcombine.high %v2943_v63, %v2943_v63  ;;  %v3544_v14 = vrot.slane %v2943_v63, %v8949_v55  ;;  %v2903_v15 = vadd.f32 %v9453_v42, %v2855_v24  ;;  %v2904_v2 = vadd.f32 %v9453_v42, %v2856_v5  ;;  %8078 = vmatpush3.bf16.msra.mxu0 %v9661_v46 }
 0x186   : > { %v5006_v38 = vshll.u32 %v9689_v56, 16  ;;  %v3534_v18 = vrot.slane %v3520_v43, %v8949_v55  ;;  %v4534_v60 = vcombine.low %v3519_v10, %v3527_v16  ;;  %v5004_v41 = vor.u32 %v5003_v6, %v4999_v59  ;;  %v7965_v50 = vpop.f32.mrf.mxu0  ;;  %8079 = vmatprep.subr.bf16.mxu0 %v9708_v0  ;;  %v9731_v43 = vld [vmem:[%s10692_s4 + $0x200] sm:$0xff]  }
 0x187   : > { %7287 = vmatmul.mubr.msk.bf16.gmra.mxu0 %vm9055_vm8, %v9172_v48  ;;  %v3551_v21 = vrot.slane %v3537_v44, %v8949_v55  ;;  %v3552_v63 = vcombine.high %v3544_v14, %v3544_v14  ;;  %v2944_v24 = vmax.f32 %v2903_v15, 0.0  ;;  %v3535_v9 = vcombine.high %v3527_v16, %v3527_v16  ;;  %10749 = vst [vmem:[#allocation22_spill] sm:$0xff] %v9731_v43 }
 0x188   : > { %v5008_v32 = vrot.slane %v5006_v38, 1  ;;  %5980 = vmatprep.mubr.bf16.mxu0 %v9301_v7  ;;  %v3536_v51 = vcombine.high %v3534_v18, %v3534_v18  ;;  %v4548_v5 = vrot.slane %v4534_v60, %v8949_v55  ;;  %v2945_v10 = vmax.f32 %v2904_v2, 0.0  ;;  %v2804_v59 = vpop.f32.mrf.mxu0 }
 0x189   : > { %v3553_v6 = vcombine.high %v3551_v21, %v3551_v21  ;;  %v4558_v44 = vcombine.low %v3544_v14, %v3552_v63  ;;  %v3554_v15 = vcombine.high %v2944_v24, %v2944_v24  ;;  %8080 = vmatpush3.bf16.msra.mxu0 %v9708_v0  ;;  %v9740_v16 = vsel %vm3761_vm3, %v9718_v37, 0.0 }
 0x18a   : > { %v9734_v38 = vsel %vm4865_vm6, %v5004_v41, %v5008_v32  ;;  %v4557_v60 = vcombine.low %v3534_v18, %v3536_v51  ;;  %v3561_v2 = vrot.slane %v2944_v24, %v8949_v55  ;;  %v3571_v50 = vcombine.high %v2945_v10, %v2945_v10  ;;  %v7966_v59 = vpop.f32.mrf.mxu0  ;;  %8081 = vmatprep.subr.bf16.mxu0 %v9731_v43 }
 0x18b   : > { %5562 = vmatprep.mubr.bf16.mxu1 %v9734_v38  ;;  %v4572_v14 = vrot.slane %v4558_v44, %v8949_v55  ;;  %v4574_v63 = vcombine.low %v3551_v21, %v3553_v6  ;;  %v9749_v32 = vrot.slane %v3554_v15, %v8949_v55  ;;  %v3578_v41 = vrot.slane %v2945_v10, %v8949_v55 }
 0x18c   : > { %7239 = vmatmul.mubr.msk.bf16.gmra.mxu1 %vm9055_vm8, %v9694_v40  ;;  %v4565_v18 = vrot.slane %v4557_v60, %v8949_v55  ;;  %v3569_v51 = vcombine.high %v3561_v2, %v3561_v2  ;;  %v3585_v0 = vrot.slane %v3571_v50, %v8949_v55  ;;  %v2857_v24 = vmul.f32 %v9440_v45, %v9606_v49  ;;  %v2809_v59 = vpop.f32.mrf.mxu0 }
 0x18d   : > { %v10750_v21 = vrot.slane %v9650_v13, %v8949_v55  ;;  %v4556_v44 = vrot.slane %v3535_v9, %v8949_v55  ;;  %v3570_v10 = vcombine.high %v9749_v32, %v9749_v32  ;;  %v3586_v15 = vcombine.high %v3578_v41, %v3578_v41  ;;  %8082 = vmatpush3.bf16.msra.mxu0 %v9731_v43 }
 0x18e   : > { %v9766_v60 = vcombine.low %v4565_v18, %v4572_v14  ;;  %v4582_v49 = vrot.slane %v4574_v63, %v8949_v55  ;;  %v4575_v50 = vcombine.low %v3561_v2, %v3569_v51  ;;  %v2905_v59 = vadd.f32 %v9453_v42, %v2857_v24  ;;  %v7969_v13 = vpop.f32.mrf.mxu0 }
 0x18f   : > { %v9760_v6 = vcombine.low %v10750_v21, %v4548_v5  ;;  %7290 = vmatmul.mubr.msk.bf16.gmra.mxu0 %vm9055_vm8, %v9282_v31  ;;  %v4598_v5 = vcombine.low %v3570_v10, %v3578_v41  ;;  %v4599_v9 = vcombine.low %v3586_v15, %v3585_v0  ;;  %v10751_v21 = vrot.slane %v9593_v61, %v8949_v55 }
 0x190   : > { %v9780_v14 = vpack.c.bf16 %v9636_v36, %v9646_v3  ;;  %5988 = vmatprep.mubr.bf16.mxu0 %v9341_v8  ;;  %v4589_v2 = vrot.slane %v4575_v50, %v8949_v55  ;;  %v2946_v63 = vmax.f32 %v2905_v59, 0.0  ;;  %v3587_v18 = vcombine.high %v3585_v0, %v3585_v0  ;;  %v2812_v41 = vpop.f32.mrf.mxu0 }
 0x191   : > { %v4813_v43 = vsel %vm3820_vm4, %v10751_v21, 0.0  ;;  %v4817_v61 = vsel %vm3761_vm3, %v9766_v60, 0.0  ;;  %v4597_v24 = vrot.slane %v9749_v32, %v8949_v55  ;;  %v4613_v10 = vrot.slane %v4599_v9, %v8949_v55 }
 0x192   : > { %v9784_v51 = vpack.c.bf16 %v4813_v43, %v4813_v43  ;;  %v5013_v3 = vshll.u32 %v9780_v14, 16  ;;  %v4606_v15 = vrot.slane %v4598_v5, %v8949_v55  ;;  %v3588_v13 = vcombine.high %v2946_v63, %v2946_v63  ;;  %v7970_v43 = vpop.f32.mrf.mxu0 }
 0x193   : > { %v3595_v50 = vrot.slane %v2946_v63, %v8949_v55  ;;  %v9796_v59 = vcombine.low %v4582_v49, %v4589_v2  ;;  %v5011_v21 = vshrl.u32 %v9780_v14, 16  ;;  %v2858_v32 = vmul.f32 %v9440_v45, %v9634_v17 }
 0x194   : > { %v5018_v0 = vshll.u32 %v9784_v51, 16  ;;  %v5015_v41 = vrot.slane %v5013_v3, 1  ;;  %v9801_v46 = vcombine.low %v4606_v15, %v4613_v10  ;;  %v9804_v9 = vrot.slane %v3588_v13, %v8949_v55 }
 0x195   : > { %v3603_v5 = vcombine.high %v3595_v50, %v3595_v50  ;;  %v4615_v8 = vcombine.low %v3587_v18, %v3595_v50  ;;  %v2906_v7 = vadd.f32 %v9453_v42, %v2858_v32  ;;  %v2859_v49 = vmul.f32 %v9440_v45, %v9677_v62 }
 0x196   : > { %v5016_v31 = vor.u32 %v5015_v41, %v5011_v21  ;;  %v5020_v63 = vrot.slane %v5018_v0, 1  ;;  %v3604_v2 = vcombine.high %v9804_v9, %v9804_v9  ;;  %v9814_v17 = vpack.c.bf16 %v9636_v36, %v9627_v25 }
 0x197   : > { %v4616_v3 = vcombine.low %v3603_v5, %v9804_v9  ;;  %v4816_v10 = vsel %vm3820_vm4, %v4556_v44, 0.0  ;;  %7293 = vmatmul.mubr.msk.bf16.gmra.mxu0 %vm9055_vm8, %v9324_v34  ;;  %v2947_v62 = vmax.f32 %v2906_v7, 0.0  ;;  %v2907_v15 = vadd.f32 %v9453_v42, %v2859_v49 }
 0x198   : > { %v9822_v18 = vsel %vm4865_vm6, %v5016_v31, %v5020_v63  ;;  %v9827_v13 = vpack.c.bf16 %v9760_v6, %v9740_v16  ;;  %5996 = vmatprep.mubr.bf16.mxu0 %v9390_v1  ;;  %v4623_v25 = vrot.slane %v4615_v8, %v8949_v55  ;;  %v9833_v44 = vpack.c.bf16 %v4816_v10, %v4816_v10 }
 0x199   : > { %v4630_v36 = vrot.slane %v4616_v3, %v8949_v55  ;;  %5570 = vmatprep.mubr.bf16.mxu1 %v9822_v18  ;;  %v2860_v31 = vmul.f32 %v9440_v45, %v9712_v39  ;;  %v3605_v7 = vcombine.high %v2947_v62, %v2947_v62  ;;  %v3612_v16 = vrot.slane %v2947_v62, %v8949_v55 }
 0x19a   : > { %7242 = vmatmul.mubr.msk.bf16.gmra.mxu1 %vm9055_vm8, %v9814_v17  ;;  %v2948_v50 = vmax.f32 %v2907_v15, 0.0  ;;  %v5023_v0 = vshrl.u32 %v9827_v13, 16  ;;  %v5025_v43 = vshll.u32 %v9827_v13, 16  ;;  %v5030_v21 = vshll.u32 %v9833_v44, 16 }
 0x19b   : > { %v9842_v8 = vcombine.low %v4623_v25, %v4630_v36  ;;  %v2908_v41 = vadd.f32 %v9453_v42, %v2860_v31  ;;  %v3619_v45 = vrot.slane %v3605_v7, %v8949_v55  ;;  %v3620_v39 = vcombine.high %v3612_v16, %v3612_v16 }
 0x19c   : > { %v3622_v32 = vcombine.high %v2948_v50, %v2948_v50  ;;  %v3629_v9 = vrot.slane %v2948_v50, %v8949_v55  ;;  %v5027_v5 = vrot.slane %v5025_v43, 1  ;;  %v5032_v63 = vrot.slane %v5030_v21, 1 }
 0x19d   : > { %v2949_v49 = vmax.f32 %v2908_v41, 0.0  ;;  %v4819_v3 = vsel %vm3820_vm4, %v4597_v24, 0.0  ;;  %v3621_v10 = vcombine.high %v3619_v45, %v3619_v45  ;;  %v4639_v62 = vcombine.low %v3612_v16, %v3620_v39 }
 0x19e   : > { %v3636_v15 = vrot.slane %v3622_v32, %v8949_v55  ;;  %v3637_v25 = vcombine.high %v3629_v9, %v3629_v9  ;;  %v5028_v36 = vor.u32 %v5027_v5, %v5023_v0  ;;  %v9857_v31 = vpack.c.bf16 %v9796_v59, %v4817_v61 }
 0x19f   : > { %v3646_v42 = vrot.slane %v2949_v49, %v8949_v55  ;;  %7296 = vmatmul.mubr.msk.bf16.gmra.mxu0 %vm9055_vm8, %v9377_v4  ;;  %v9859_v7 = vpack.c.bf16 %v4819_v3, %v4819_v3  ;;  %v4820_v24 = vsel %vm3761_vm3, %v9801_v46, 0.0  ;;  %v4640_v16 = vcombine.low %v3619_v45, %v3621_v10 }
 0x1a0   : > { %v3638_v50 = vcombine.high %v3636_v15, %v3636_v15  ;;  %v4656_v43 = vcombine.low %v3629_v9, %v3637_v25  ;;  %6004 = vmatprep.mubr.bf16.mxu0 %v9461_v30  ;;  %v4647_v0 = vrot.slane %v4639_v62, %v8949_v55  ;;  %v9867_v21 = vsel %vm4865_vm6, %v5028_v36, %v5032_v63 }
 0x1a1   : > { %v9871_v61 = vpack.c.bf16 %v9760_v6, %v9718_v37  ;;  %v5037_v41 = vshll.u32 %v9857_v31, 16  ;;  %v4654_v39 = vrot.slane %v4640_v16, %v8949_v55  ;;  %5578 = vmatprep.mubr.bf16.mxu1 %v9867_v21  ;;  %v4679_v45 = vrot.slane %v3646_v42, %v8949_v55 }
 0x1a2   : > { %v4657_v32 = vcombine.low %v3636_v15, %v3638_v50  ;;  %v5042_v9 = vshll.u32 %v9859_v7, 16  ;;  %v5035_v5 = vshrl.u32 %v9857_v31, 16  ;;  %v4638_v37 = vrot.slane %v3604_v2, %v8949_v55 }
 0x1a3   : > { %7245 = vmatmul.mubr.msk.bf16.gmra.mxu1 %vm9055_vm8, %v9871_v61  ;;  %v5039_v63 = vrot.slane %v5037_v41, 1  ;;  %v9884_v6 = vpack.c.bf16 %v9842_v8, %v4820_v24  ;;  %v4655_v49 = vcombine.low %v4647_v0, %v4654_v39  ;;  %v4664_v3 = vrot.slane %v4656_v43, %v8949_v55 }
 0x1a4   : > { %v4671_v10 = vrot.slane %v4657_v32, %v8949_v55  ;;  %v5044_v62 = vrot.slane %v5042_v9, 1  ;;  %v4822_v25 = vsel %vm3820_vm4, %v4638_v37, 0.0  ;;  %v4825_v50 = vsel %vm3820_vm4, %v4679_v45, 0.0 }
 0x1a5   : > { %v5040_v15 = vor.u32 %v5039_v63, %v5035_v5  ;;  %v5047_v36 = vshrl.u32 %v9884_v6, 16  ;;  %v5049_v42 = vshll.u32 %v9884_v6, 16  ;;  %v4823_v2 = vsel %vm3761_vm3, %v4655_v49, 0.0 }
 0x1a6   : > { %v4672_v16 = vcombine.low %v4664_v3, %v4671_v10  ;;  %v9894_v24 = vpack.c.bf16 %v4822_v25, %v4822_v25  ;;  %v9904_v0 = vpack.c.bf16 %v4825_v50, %v4825_v50  ;;  %v5164_v41 = vrot.slane %v9539_v57, 1 }
 0x1a7   : > { %v9899_v55 = vsel %vm4865_vm6, %v5040_v15, %v5044_v62  ;;  %7299 = vmatmul.mubr.msk.bf16.gmra.mxu0 %vm9055_vm8, %v9448_v33  ;;  %v5051_v43 = vrot.slane %v5049_v42, 1  ;;  %v9910_v22 = vpack.c.bf16 %v9796_v59, %v9766_v60  ;;  %v5165_v32 = vrot.slane %v9546_v35, 1 }
 0x1a8   : > { %5586 = vmatprep.mubr.bf16.mxu1 %v9899_v55  ;;  %6012 = vmatprep.mubr.bf16.mxu0 %v9520_v28  ;;  %v5054_v26 = vshll.u32 %v9894_v24, 16  ;;  %v9914_v39 = vpack.c.bf16 %v4672_v16, %v4823_v2  ;;  %v5066_v9 = vshll.u32 %v9904_v0, 16  ;;  %v5167_v5 = vrot.slane %v9596_v20, 1 }
 0x1a9   : > { %v5052_v45 = vor.u32 %v5051_v43, %v5047_v36  ;;  %v5168_v57 = vrot.slane %v9619_v27, 1  ;;  %v9922_v60 = vsel %vm5136_vm5, %v5164_v41, %v5165_v32  ;;  %v9941_v62 = vpack.c.bf16 %v9842_v8, %v9801_v46  ;;  %v8258_v43 = vld [vmem:[%s10692_s4 + $0xa0] sm:$0xff]  }
 0x1aa   : > { %v5056_v63 = vrot.slane %v5054_v26, 1  ;;  %v5061_v37 = vshll.u32 %v9914_v39, 16  ;;  %v5059_v20 = vshrl.u32 %v9914_v39, 16  ;;  %v5068_v27 = vrot.slane %v5066_v9, 1 }
 0x1ab   : > { %7248 = vmatmul.mubr.msk.bf16.gmra.mxu1 %vm9055_vm8, %v9910_v22  ;;  %v9928_v59 = vsel %vm5136_vm5, %v5167_v5, %v5168_v57  ;;  %v9954_v25 = vpack.c.bf16 %v4672_v16, %v4655_v49  ;;  %v5170_v46 = vrot.slane %v9675_v52, 1  ;;  %v5171_v8 = vrot.slane %v9689_v56, 1  ;;  %v8256_v49 = vld [vmem:[%s10692_s4 + $0xb0] sm:$0xff]   ;;  %v8289_v52 = vld [vmem:[%s10692_s4 + $0xb8] sm:$0xff]   ;;  %v8257_v56 = vld [vmem:[%s10692_s4 + $0xa8] sm:$0xff]  }
 0x1ac   : > { %v9931_v35 = vsel %vm4865_vm6, %v5052_v45, %v5056_v63  ;;  %v5063_v3 = vrot.slane %v5061_v37, 1  ;;  %v5173_v42 = vrot.slane %v9780_v14, 1  ;;  %v5176_v2 = vrot.slane %v9827_v13, 1  ;;  %v8260_v45 = vld [vmem:[%s10692_s4 + $0x90] sm:$0xff]   ;;  %v8264_v63 = vld [vmem:[%s10692_s4 + $0x80] sm:$0xff]  }
 0x1ad   : > { %5594 = vmatprep.mubr.bf16.mxu1 %v9931_v35  ;;  %v9971_v36 = vsel %vm5136_vm5, %v5170_v46, %v5171_v8  ;;  %v5177_v16 = vrot.slane %v9833_v44, 1  ;;  %v5174_v50 = vrot.slane %v9784_v51, 1  ;;  %v8259_v51 = vld [vmem:[%s10692_s4 + $0x98] sm:$0xff]   ;;  %v5179_v44 = vrot.slane %v9857_v31, 1  ;;  %v8272_v46 = vld [vmem:[%s10692_s4 + $0x1b0] sm:$0xff]  }
 0x1ae   : > { %v5064_v10 = vor.u32 %v5063_v3, %v5059_v20  ;;  %v5182_v41 = vrot.slane %v9884_v6, 1  ;;  %v5183_v26 = vrot.slane %v9894_v24, 1  ;;  %v5180_v32 = vrot.slane %v9859_v7, 1  ;;  %v8262_v7 = vld [vmem:[%s10692_s4 + $0x88] sm:$0xff]   ;;  %v8270_v20 = vld [vmem:[%s10692_s4 + $0x1f0] sm:$0xff]  }
 0x1af   : > { %7302 = vmatmul.mubr.msk.bf16.gmra.mxu0 %vm9055_vm8, %v9492_v23  ;;  %v9992_v14 = vsel %vm5136_vm5, %v5173_v42, %v5174_v50  ;;  %v9996_v13 = vsel %vm5136_vm5, %v5176_v2, %v5177_v16  ;;  %v5185_v24 = vrot.slane %v9914_v39, 1  ;;  %v5186_v9 = vrot.slane %v9904_v0, 1  ;;  %v8266_v0 = vld [vmem:[%s10692_s4 + $0x1f8] sm:$0xff]   ;;  %v8276_v16 = vld [vmem:[%s10692_s4 + $0x1a8] sm:$0xff]  }
 0x1b0   : > { %6020 = vmatprep.mubr.bf16.mxu0 %v9581_v29  ;;  %v9944_v15 = vsel %vm4865_vm6, %v5064_v10, %v5068_v27  ;;  %v10014_v31 = vsel %vm5136_vm5, %v5179_v44, %v5180_v32  ;;  %v10018_v6 = vsel %vm5136_vm5, %v5182_v41, %v5183_v26  ;;  %v10752_v5 = vmov 0.0|0.0   ;;  %v8268_v39 = vld [vmem:[%s10692_s4 + $0x1b8] sm:$0xff]   ;;  %v10753_v26 = vld [vmem:[#allocation9_spill] sm:$0xff] }
 0x1b1   : > { %v10031_v57 = vrot.slane %v10752_v5, 1  ;;  %v10037_v37 = vsel %vm5136_vm5, %v5185_v24, %v5186_v9 }
 0x1b3   : > { %7251 = vmatmul.mubr.msk.bf16.gmra.mxu1 %vm9055_vm8, %v9941_v62 }
 0x1b4   : > { %5602 = vmatprep.mubr.bf16.mxu1 %v9944_v15 }
 0x1b7   : > { %7305 = vmatmul.mubr.msk.bf16.gmra.mxu0 %vm9055_vm8, %v9554_v12 }
 0x1b8   : > { %6028 = vmatprep.mubr.bf16.mxu0 %v9682_v53 }
 0x1bb   : > { %7254 = vmatmul.mubr.msk.bf16.gmra.mxu1 %vm9055_vm8, %v9954_v25 }
 0x1bc   : > { %8003 = vmatprep.mubr.bf16.mxu1 %v9922_v60 }
 0x1bf   : > { %7308 = vmatmul.mubr.msk.bf16.gmra.mxu0 %vm9055_vm8, %v9640_v58 }
 0x1c0   : > { %6036 = vmatprep.mubr.bf16.mxu0 %v9734_v38 }
 0x1c3   : > { %8004 = vmatmul.mubr.bf16.vlgmr.msra.gmra.mxu1 %v9928_v59 }
 0x1c4   : > { %8020 = vmatpush3.bf16.msra.mxu1 %v8289_v52  ;;  %8007 = vmatprep.mubr.bf16.mxu1 %v9971_v36 }
 0x1c5   : > { %8021 = vmatprep.subr.bf16.mxu1 %v8256_v49 }
 0x1c7   : > { %7311 = vmatmul.mubr.msk.bf16.gmra.mxu0 %vm9055_vm8, %v9694_v40 }
 0x1c8   : > { %8022 = vmatpush3.bf16.msra.mxu1 %v8256_v49  ;;  %6044 = vmatprep.mubr.bf16.mxu0 %v9822_v18  ;;  %v8274_v49 = vld [vmem:[%s10692_s4 + $0x1e8] sm:$0xff]  }
 0x1c9   : > { %8023 = vmatprep.subr.bf16.mxu1 %v8257_v56 }
 0x1cb   : > { %8008 = vmatmul.mubr.bf16.gmra.mxu1 %v9992_v14 }
 0x1cc   : > { %8024 = vmatpush3.bf16.msra.mxu1 %v8257_v56  ;;  %8011 = vmatprep.mubr.bf16.mxu1 %v9996_v13 }
 0x1cd   : > { %8025 = vmatprep.subr.bf16.mxu1 %v8258_v43 }
 0x1cf   : > { %7314 = vmatmul.mubr.msk.bf16.gmra.mxu0 %vm9055_vm8, %v9814_v17 }
 0x1d0   : > { %8026 = vmatpush3.bf16.msra.mxu1 %v8258_v43  ;;  %6052 = vmatprep.mubr.bf16.mxu0 %v9867_v21  ;;  %v8277_v43 = vld [vmem:[%s10692_s4 + $0x1e0] sm:$0xff]  }
 0x1d1   : > { %8027 = vmatprep.subr.bf16.mxu1 %v8259_v51 }
 0x1d3   : > { %8012 = vmatmul.mubr.bf16.gmra.mxu1 %v10014_v31 }
 0x1d4   : > { %8028 = vmatpush3.bf16.msra.mxu1 %v8259_v51  ;;  %8015 = vmatprep.mubr.bf16.mxu1 %v10018_v6 }
 0x1d5   : > { %8029 = vmatprep.subr.bf16.mxu1 %v8260_v45 }
 0x1d7   : > { %7317 = vmatmul.mubr.msk.bf16.gmra.mxu0 %vm9055_vm8, %v9871_v61 }
 0x1d8   : > { %8030 = vmatpush3.bf16.msra.mxu1 %v8260_v45  ;;  %6060 = vmatprep.mubr.bf16.mxu0 %v9899_v55 }
 0x1d9   : > { %8031 = vmatprep.subr.bf16.mxu1 %v8262_v7 }
 0x1db   : > { %8016 = vmatmul.mubr.bf16.gmra.mxu1 %v10037_v37 }
 0x1dc   : > { %8032 = vmatpush3.bf16.msra.mxu1 %v8262_v7  ;;  %8035 = vmatprep.mubr.bf16.mxu1 %v10031_v57  ;;  %v8279_v7 = vld [vmem:[%s10692_s4 + $0x1d8] sm:$0xff]  }
 0x1dd   : > { %8033 = vmatprep.subr.bf16.mxu1 %v8264_v63 }
 0x1df   : > { %7320 = vmatmul.mubr.msk.bf16.gmra.mxu0 %vm9055_vm8, %v9910_v22 }
 0x1e0   : > { %8034 = vmatpush3.bf16.msra.mxu1 %v8264_v63  ;;  %6068 = vmatprep.mubr.bf16.mxu0 %v9931_v35  ;;  %v7489_v3 = vpop.f32.mrf.mxu1 }
 0x1e1   : > { %7745 = vmatprep.subr.bf16.mxu1 %v8266_v0  ;;  %v8280_v0 = vld [vmem:[%s10692_s4 + $0x198] sm:$0xff]  }
 0x1e2   : > { %v7490_v27 = vpop.f32.mrf.mxu1  ;;  %v7989_v10 = vpop.f32.mrf.mxu0 }
 0x1e3   : > { %8036 = vmatmul.mubr.bf16.vlgmr.msra.gmra.mxu1 %v9023_v54  ;;  %v7491_v8 = vadd.f32 %v7490_v27, %v7489_v3  ;;  %v10754_v3 = vld [vmem:[#allocation12_spill] sm:$0xff] }
 0x1e4   : > { %7746 = vmatpush3.bf16.msra.mxu1 %v8268_v39  ;;  %8039 = vmatprep.mubr.bf16.mxu1 %v9092_v19  ;;  %v7492_v52 = vpop.f32.mrf.mxu1  ;;  %v5645_v56 = vpop.f32.mrf.mxu0 }
 0x1e5   : > { %7747 = vmatprep.subr.bf16.mxu1 %v8270_v20  ;;  %v10062_v42 = vadd.f32 %v7491_v8, %v5645_v56  ;;  %v8281_v20 = vld [vmem:[%s10692_s4 + $0x1d0] sm:$0xff]   ;;  %v8285_v56 = vld [vmem:[%s10692_s4 + $0x1c0] sm:$0xff]  }
 0x1e6   : > { %v7493_v54 = vpop.f32.mrf.mxu1  ;;  %v7990_v2 = vpop.f32.mrf.mxu0 }
 0x1e7   : > { %7323 = vmatmul.mubr.msk.bf16.gmra.mxu0 %vm9055_vm8, %v9941_v62  ;;  %v7494_v50 = vadd.f32 %v7493_v54, %v7492_v52 }
 0x1e8   : > { %7748 = vmatpush3.bf16.msra.mxu1 %v8272_v46  ;;  %8083 = vmatprep.mubr.bf16.mxu0 %v9092_v19  ;;  %v5648_v51 = vpop.f32.mrf.mxu0  ;;  %v8278_v19 = vld [vmem:[%s10692_s4 + $0x1a0] sm:$0xff]   ;;  %v8283_v46 = vld [vmem:[%s10692_s4 + $0x1c8] sm:$0xff]  }
 0x1e9   : > { %7749 = vmatprep.subr.bf16.mxu1 %v8274_v49  ;;  %v7495_v44 = vpop.f32.mrf.mxu1  ;;  %v10074_v41 = vadd.f32 %v7494_v50, %v5648_v51  ;;  %v8284_v49 = vld [vmem:[%s10692_s4 + $0x188] sm:$0xff]   ;;  %v10757_v50 = vld [vmem:[#allocation16_spill] sm:$0xff]  ;;  %v8286_v51 = vld [vmem:[%s10692_s4 + $0x180] sm:$0xff]  }
 0x1eb   : > { %8040 = vmatmul.mubr.bf16.gmra.mxu1 %v9184_v47  ;;  %v7496_v32 = vpop.f32.mrf.mxu1 }
 0x1ec   : > { %8043 = vmatprep.mubr.bf16.mxu1 %v10753_v26  ;;  %7750 = vmatpush3.bf16.msra.mxu1 %v8276_v16  ;;  %v7497_v45 = vadd.f32 %v7496_v32, %v7495_v44 }
 0x1ed   : > { %7751 = vmatprep.subr.bf16.mxu1 %v8277_v43  ;;  %v7498_v24 = vpop.f32.mrf.mxu1 }
 0x1ee   : > { %v10085_v9 = vadd.f32 %v7989_v10, %v7497_v45  ;;  %v8282_v10 = vld [vmem:[%s10692_s4 + $0x190] sm:$0xff]  }
 0x1ef   : > { %8084 = vmatmul.mubr.bf16.vlgmr.msra.gmra.mxu0 %v9184_v47  ;;  %v7499_v63 = vpop.f32.mrf.mxu1  ;;  %v10755_v47 = vld [vmem:[#allocation14_spill] sm:$0xff] }
 0x1f0   : > { %8087 = vmatprep.mubr.bf16.mxu0 %v10753_v26  ;;  %7752 = vmatpush3.bf16.msra.mxu1 %v8278_v19  ;;  %v7500_v39 = vadd.f32 %v7499_v63, %v7498_v24 }
 0x1f1   : > { %7753 = vmatprep.subr.bf16.mxu1 %v8279_v7  ;;  %v8290_v7 = vld [vmem:[%s10692_s4 + $0x238] sm:$0xff]  }
 0x1f2   : > { %v10095_v27 = vadd.f32 %v7990_v2, %v7500_v39  ;;  %v10756_v2 = vld [vmem:[#allocation15_spill] sm:$0xff] }
 0x1f3   : > { %8044 = vmatmul.mubr.bf16.gmra.mxu1 %v10754_v3 }
 0x1f4   : > { %8047 = vmatprep.mubr.bf16.mxu1 %v10755_v47  ;;  %7754 = vmatpush3.bf16.msra.mxu1 %v8280_v0 }
 0x1f5   : > { %7755 = vmatprep.subr.bf16.mxu1 %v8281_v20  ;;  %v7501_v8 = vpop.f32.mrf.mxu1 }
 0x1f7   : > { %8088 = vmatmul.mubr.bf16.gmra.mxu0 %v10754_v3  ;;  %v7502_v52 = vpop.f32.mrf.mxu1 }
 0x1f8   : > { %8091 = vmatprep.mubr.bf16.mxu0 %v10755_v47  ;;  %7756 = vmatpush3.bf16.msra.mxu1 %v8282_v10  ;;  %v7503_v54 = vadd.f32 %v7502_v52, %v7501_v8 }
 0x1f9   : > { %7757 = vmatprep.subr.bf16.mxu1 %v8283_v46  ;;  %v7504_v16 = vpop.f32.mrf.mxu1 }
 0x1fb   : > { %8048 = vmatmul.mubr.bf16.gmra.mxu1 %v10756_v2  ;;  %v7993_v43 = vpop.f32.mrf.mxu0  ;;  %v7505_v44 = vpop.f32.mrf.mxu1 }
 0x1fc   : > { %8051 = vmatprep.mubr.bf16.mxu1 %v10757_v50  ;;  %7758 = vmatpush3.bf16.msra.mxu1 %v8284_v49  ;;  %v7506_v26 = vadd.f32 %v7505_v44, %v7504_v16 }
 0x1fd   : > { %7759 = vmatprep.subr.bf16.mxu1 %v8285_v56  ;;  %v5661_v19 = vpop.f32.mrf.mxu0 }
 0x1fe   : > { %v10118_v32 = vadd.f32 %v7503_v54, %v5661_v19 }
 0x1ff   : > { %8092 = vmatmul.mubr.bf16.gmra.mxu0 %v10756_v2  ;;  %v7994_v45 = vpop.f32.mrf.mxu0 }
 0x200   : > { %8095 = vmatprep.mubr.bf16.mxu0 %v10757_v50  ;;  %7760 = vmatpush3.bf16.msra.mxu1 %v8286_v51 }
 0x201   : > { %8131 = vmatprep.subr.bf16.mxu1 %v8290_v7  ;;  %v5664_v24 = vpop.f32.mrf.mxu0 }
 0x202   : > { %v10125_v63 = vadd.f32 %v7506_v26, %v5664_v24 }
 0x203   : > { %8052 = vmatmul.mubr.bf16.gmra.mxu1 %v9922_v60  ;;  %v7507_v0 = vpop.f32.mrf.mxu1 }
 0x204   : > { %8055 = vmatprep.mubr.bf16.mxu1 %v9928_v59 }
 0x205   : > { %v7508_v39 = vpop.f32.mrf.mxu1 }
 0x206   : > { %v7509_v20 = vadd.f32 %v7508_v39, %v7507_v0 }
 0x207   : > { %8096 = vmatmul.mubr.bf16.gmra.mxu0 %v9922_v60  ;;  %v7510_v3 = vpop.f32.mrf.mxu1 }
 0x208   : > { %8099 = vmatprep.mubr.bf16.mxu0 %v9928_v59  ;;  %v10130_v47 = vadd.f32 %v7993_v43, %v7509_v20 }
 0x209   : > { %v7511_v10 = vpop.f32.mrf.mxu1 }
 0x20a   : > { %v7512_v46 = vadd.f32 %v7511_v10, %v7510_v3  ;;  %v10760_v3 = vld [vmem:[#allocation8_spill] sm:$0xff] }
 0x20b   : > { %8056 = vmatmul.mubr.bf16.gmra.mxu1 %v9971_v36 }
 0x20c   : > { %8059 = vmatprep.mubr.bf16.mxu1 %v9992_v14  ;;  %v10134_v8 = vadd.f32 %v7994_v45, %v7512_v46  ;;  %v7513_v49 = vpop.f32.mrf.mxu1  ;;  %v10758_v45 = vld [vmem:[#allocation6_spill] sm:$0xff]  ;;  %v8291_v46 = vld [vmem:[%s10692_s4 + $0x230] sm:$0xff]  }
 0x20e   : > { %v7514_v52 = vpop.f32.mrf.mxu1 }
 0x20f   : > { %8100 = vmatmul.mubr.bf16.gmra.mxu0 %v9971_v36  ;;  %v7515_v60 = vadd.f32 %v7514_v52, %v7513_v49  ;;  %v7997_v56 = vpop.f32.mrf.mxu0 }
 0x210   : > { %8103 = vmatprep.mubr.bf16.mxu0 %v9992_v14  ;;  %v7516_v59 = vpop.f32.mrf.mxu1 }
 0x211   : > { %v5677_v54 = vpop.f32.mrf.mxu0 }
 0x212   : > { %v7517_v2 = vpop.f32.mrf.mxu1  ;;  %v10139_v16 = vadd.f32 %v7515_v60, %v5677_v54 }
 0x213   : > { %8060 = vmatmul.mubr.bf16.gmra.mxu1 %v9996_v13  ;;  %v7518_v50 = vadd.f32 %v7517_v2, %v7516_v59  ;;  %v7998_v43 = vpop.f32.mrf.mxu0  ;;  %v10761_v59 = vld [vmem:[#allocation17_spill] sm:$0xff] }
 0x214   : > { %8063 = vmatprep.mubr.bf16.mxu1 %v10014_v31 }
 0x215   : > { %v5680_v51 = vpop.f32.mrf.mxu0 }
 0x216   : > { %v7519_v36 = vpop.f32.mrf.mxu1  ;;  %v10143_v44 = vadd.f32 %v7518_v50, %v5680_v51  ;;  %v10762_v50 = vld [vmem:[#allocation11_spill] sm:$0xff]  ;;  %v10763_v51 = vld [vmem:[#allocation18_spill] sm:$0xff] }
 0x217   : > { %8104 = vmatmul.mubr.bf16.gmra.mxu0 %v9996_v13  ;;  %v10759_v13 = vld [vmem:[#allocation7_spill] sm:$0xff] }
 0x218   : > { %8107 = vmatprep.mubr.bf16.mxu0 %v10014_v31  ;;  %v7520_v14 = vpop.f32.mrf.mxu1 }
 0x219   : > { %v7521_v26 = vadd.f32 %v7520_v14, %v7519_v36 }
 0x21a   : > { %v7522_v19 = vpop.f32.mrf.mxu1 }
 0x21b   : > { %8064 = vmatmul.mubr.bf16.gmra.mxu1 %v10018_v6  ;;  %v10148_v24 = vadd.f32 %v7997_v56, %v7521_v26 }
 0x21c   : > { %6463 = vmatprep.mubr.bf16.mxu1 %v10758_v45  ;;  %v7523_v0 = vpop.f32.mrf.mxu1  ;;  %v10764_v45 = vld [vmem:[#allocation19_spill] sm:$0xff] }
 0x21d   : > { %v7524_v39 = vadd.f32 %v7523_v0, %v7522_v19 }
 0x21f   : > { %8108 = vmatmul.mubr.bf16.gmra.mxu0 %v10018_v6  ;;  %v10151_v20 = vadd.f32 %v7998_v43, %v7524_v39 }
 0x222   : > { %v7525_v31 = vpop.f32.mrf.mxu1 }
 0x223   : > { %7398 = vmatmul.mubr.msk.bf16.vlgmr.msra.gmra.mxu1 %vm9055_vm8, %v10759_v13 }
 0x224   : > { %8139 = vmatpush3.bf16.msra.mxu1 %v8290_v7  ;;  %6471 = vmatprep.mubr.bf16.mxu1 %v10760_v3  ;;  %v7526_v10 = vpop.f32.mrf.mxu1  ;;  %v10766_v3 = vld [vmem:[#allocation13_spill] sm:$0xff] }
 0x225   : > { %8132 = vmatprep.subr.bf16.mxu1 %v8291_v46  ;;  %v7527_v49 = vadd.f32 %v7526_v10, %v7525_v31 }
 0x226   : > { %v7528_v52 = vpop.f32.mrf.mxu1  ;;  %v8001_v60 = vpop.f32.mrf.mxu0 }
 0x228   : > { %8140 = vmatpush3.bf16.msra.mxu1 %v8291_v46  ;;  %v7529_v6 = vpop.f32.mrf.mxu1  ;;  %v5693_v56 = vpop.f32.mrf.mxu0 }
 0x229   : > { %8133 = vmatprep.subr.bf16.mxu1 %v10761_v59  ;;  %v7530_v54 = vadd.f32 %v7529_v6, %v7528_v52  ;;  %v10161_v2 = vadd.f32 %v7527_v49, %v5693_v56  ;;  %v10767_v6 = vld [vmem:[#allocation20_spill] sm:$0xff] }
 0x22a   : > { %v8002_v7 = vpop.f32.mrf.mxu0 }
 0x22b   : > { %7401 = vmatmul.mubr.msk.bf16.gmra.mxu1 %vm9055_vm8, %v9172_v48  ;;  %v10765_v48 = vld [vmem:[#allocation10_spill] sm:$0xff] }
 0x22c   : > { %6479 = vmatprep.mubr.bf16.mxu1 %v10762_v50  ;;  %8141 = vmatpush3.bf16.msra.mxu1 %v10761_v59  ;;  %v5696_v43 = vpop.f32.mrf.mxu0 }
 0x22d   : > { %8134 = vmatprep.subr.bf16.mxu1 %v10763_v51  ;;  %v10169_v36 = vadd.f32 %v7530_v54, %v5696_v43 }
 0x22f   : > { %v7625_v14 = vpop.f32.mrf.mxu0  ;;  %v7531_v26 = vpop.f32.mrf.mxu1 }
 0x230   : > { %8142 = vmatpush3.bf16.msra.mxu1 %v10763_v51 }
 0x231   : > { %v7626_v19 = vpop.f32.mrf.mxu0  ;;  %8135 = vmatprep.subr.bf16.mxu1 %v10764_v45  ;;  %v7532_v0 = vpop.f32.mrf.mxu1 }
 0x232   : > { %v7627_v39 = vadd.f32 %v7626_v19, %v7625_v14  ;;  %v7533_v13 = vadd.f32 %v7532_v0, %v7531_v26 }
 0x233   : > { %7404 = vmatmul.mubr.msk.bf16.gmra.mxu1 %vm9055_vm8, %v10765_v48  ;;  %v7628_v31 = vpop.f32.mrf.mxu0  ;;  %v7534_v10 = vpop.f32.mrf.mxu1  ;;  %v10769_v48 = vld [vmem:[#allocation22_spill] sm:$0xff] }
 0x234   : > { %6487 = vmatprep.mubr.bf16.mxu1 %v10766_v3  ;;  %8143 = vmatpush3.bf16.msra.mxu1 %v10764_v45  ;;  %v10179_v46 = vadd.f32 %v7627_v39, %v10062_v42  ;;  %v10181_v49 = vadd.f32 %v8001_v60, %v7533_v13  ;;  %v10768_v42 = vld [vmem:[#allocation21_spill] sm:$0xff] }
 0x235   : > { %v7629_v52 = vpop.f32.mrf.mxu0  ;;  %8136 = vmatprep.subr.bf16.mxu1 %v10767_v6  ;;  %v7535_v56 = vpop.f32.mrf.mxu1 }
 0x236   : > { %v7630_v59 = vadd.f32 %v7629_v52, %v7628_v31  ;;  %v7536_v54 = vadd.f32 %v7535_v56, %v7534_v10 }
 0x237   : > { %v7631_v50 = vpop.f32.mrf.mxu0 }
 0x238   : > { %8144 = vmatpush3.bf16.msra.mxu1 %v10767_v6  ;;  %v10186_v43 = vadd.f32 %v7630_v59, %v10074_v41  ;;  %v10188_v51 = vadd.f32 %v8002_v7, %v7536_v54  ;;  %v7537_v14 = vpop.f32.mrf.mxu1 }
 0x239   : > { %v7632_v26 = vpop.f32.mrf.mxu0  ;;  %8137 = vmatprep.subr.bf16.mxu1 %v10768_v42 }
 0x23a   : > { %v7633_v60 = vadd.f32 %v7632_v26, %v7631_v50  ;;  %v7538_v19 = vpop.f32.mrf.mxu1 }
 0x23b   : > { %7407 = vmatmul.mubr.msk.bf16.gmra.mxu1 %vm9055_vm8, %v9324_v34  ;;  %v7634_v45 = vpop.f32.mrf.mxu0  ;;  %v10195_v0 = vadd.f32 %v7538_v19, %v7537_v14 }
 0x23c   : > { %6495 = vmatprep.mubr.bf16.mxu1 %v9390_v1  ;;  %8145 = vmatpush3.bf16.msra.mxu1 %v10768_v42  ;;  %v10199_v41 = vadd.f32 %v7633_v60, %v10085_v9  ;;  %v7540_v7 = vpop.f32.mrf.mxu1 }
 0x23d   : > { %v7635_v39 = vpop.f32.mrf.mxu0  ;;  %8138 = vmatprep.subr.bf16.mxu1 %v10769_v48 }
 0x23e   : > { %v7636_v13 = vadd.f32 %v7635_v39, %v7634_v45  ;;  %v7541_v31 = vpop.f32.mrf.mxu1 }
 0x23f   : > { %v7637_v3 = vpop.f32.mrf.mxu0  ;;  %v10202_v10 = vadd.f32 %v7541_v31, %v7540_v7 }
 0x240   : > { %8146 = vmatpush3.bf16.msra.mxu1 %v10769_v48  ;;  %v10206_v34 = vadd.f32 %v7636_v13, %v10095_v27 }
 0x241   : > { %v7638_v1 = vpop.f32.mrf.mxu0 }
 0x242   : > { %v7639_v52 = vadd.f32 %v7638_v1, %v7637_v3 }
 0x243   : > { %7410 = vmatmul.mubr.msk.bf16.gmra.mxu1 %vm9055_vm8, %v9377_v4  ;;  %v7640_v9 = vpop.f32.mrf.mxu0  ;;  %v7543_v6 = vpop.f32.mrf.mxu1 }
 0x244   : > { %6503 = vmatprep.mubr.bf16.mxu1 %v9461_v30  ;;  %v10213_v56 = vadd.f32 %v7639_v52, %v10118_v32 }
 0x245   : > { %v7641_v59 = vpop.f32.mrf.mxu0  ;;  %v7544_v54 = vpop.f32.mrf.mxu1 }
 0x246   : > { %v7642_v50 = vadd.f32 %v7641_v59, %v7640_v9  ;;  %v10215_v14 = vadd.f32 %v7544_v54, %v7543_v6 }
 0x247   : > { %v7643_v27 = vpop.f32.mrf.mxu0  ;;  %v7546_v26 = vpop.f32.mrf.mxu1 }
 0x248   : > { %v10218_v42 = vadd.f32 %v7642_v50, %v10125_v63 }
 0x249   : > { %v7644_v60 = vpop.f32.mrf.mxu0  ;;  %v7547_v19 = vpop.f32.mrf.mxu1 }
 0x24a   : > { %v7645_v4 = vadd.f32 %v7644_v60, %v7643_v27  ;;  %v10220_v45 = vadd.f32 %v7547_v19, %v7546_v26 }
 0x24b   : > { %7413 = vmatmul.mubr.msk.bf16.gmra.mxu1 %vm9055_vm8, %v9448_v33  ;;  %v7646_v30 = vpop.f32.mrf.mxu0 }
 0x24c   : > { %6511 = vmatprep.mubr.bf16.mxu1 %v9520_v28  ;;  %v7549_v32 = vpop.f32.mrf.mxu1  ;;  %v10227_v7 = vadd.f32 %v7645_v4, %v10130_v47 }
 0x24d   : > { %v7647_v39 = vpop.f32.mrf.mxu0 }
 0x24e   : > { %v7550_v48 = vpop.f32.mrf.mxu1  ;;  %v7648_v63 = vadd.f32 %v7647_v39, %v7646_v30 }
 0x24f   : > { %v10229_v13 = vadd.f32 %v7550_v48, %v7549_v32  ;;  %v7649_v31 = vpop.f32.mrf.mxu0 }
 0x250   : > { %v7552_v3 = vpop.f32.mrf.mxu1  ;;  %v10232_v1 = vadd.f32 %v7648_v63, %v10134_v8 }
 0x251   : > { %v7650_v52 = vpop.f32.mrf.mxu0 }
 0x252   : > { %v7553_v9 = vpop.f32.mrf.mxu1  ;;  %v7651_v33 = vadd.f32 %v7650_v52, %v7649_v31 }
 0x253   : > { %v10234_v6 = vadd.f32 %v7553_v9, %v7552_v3  ;;  %7416 = vmatmul.mubr.msk.bf16.gmra.mxu1 %vm9055_vm8, %v9492_v23  ;;  %v7652_v28 = vpop.f32.mrf.mxu0 }
 0x254   : > { %6519 = vmatprep.mubr.bf16.mxu1 %v9581_v29  ;;  %v10241_v47 = vadd.f32 %v7651_v33, %v10139_v16 }
 0x255   : > { %v7653_v59 = vpop.f32.mrf.mxu0 }
 0x256   : > { %v7654_v54 = vadd.f32 %v7653_v59, %v7652_v28 }
 0x257   : > { %v7655_v50 = vpop.f32.mrf.mxu0 }
 0x258   : > { %v10244_v8 = vadd.f32 %v7654_v54, %v10143_v44 }
 0x259   : > { %v7656_v27 = vpop.f32.mrf.mxu0 }
 0x25a   : > { %v7555_v26 = vpop.f32.mrf.mxu1  ;;  %v7657_v60 = vadd.f32 %v7656_v27, %v7655_v50 }
 0x25b   : > { %7419 = vmatmul.mubr.msk.bf16.gmra.mxu1 %vm9055_vm8, %v9554_v12  ;;  %v7658_v23 = vpop.f32.mrf.mxu0 }
 0x25c   : > { %v7556_v19 = vpop.f32.mrf.mxu1  ;;  %6527 = vmatprep.mubr.bf16.mxu1 %v9682_v53  ;;  %v10251_v29 = vadd.f32 %v7657_v60, %v10148_v24 }
 0x25d   : > { %v10253_v16 = vadd.f32 %v7556_v19, %v7555_v26  ;;  %v7659_v4 = vpop.f32.mrf.mxu0 }
 0x25e   : > { %v7558_v30 = vpop.f32.mrf.mxu1  ;;  %v7660_v44 = vadd.f32 %v7659_v4, %v7658_v23 }
 0x25f   : > { %v7661_v32 = vpop.f32.mrf.mxu0 }
 0x260   : > { %v7559_v39 = vpop.f32.mrf.mxu1  ;;  %v10256_v48 = vadd.f32 %v7660_v44, %v10151_v20 }
 0x261   : > { %v10258_v63 = vadd.f32 %v7559_v39, %v7558_v30  ;;  %v7662_v12 = vpop.f32.mrf.mxu0 }
 0x262   : > { %v7663_v31 = vadd.f32 %v7662_v12, %v7661_v32 }
 0x263   : > { %v7561_v3 = vpop.f32.mrf.mxu1  ;;  %7422 = vmatmul.mubr.msk.bf16.gmra.mxu1 %vm9055_vm8, %v9640_v58  ;;  %v7664_v53 = vpop.f32.mrf.mxu0 }
 0x264   : > { %6535 = vmatprep.mubr.bf16.mxu1 %v9734_v38  ;;  %v10265_v24 = vadd.f32 %v7663_v31, %v10161_v2 }
 0x265   : > { %v7562_v52 = vpop.f32.mrf.mxu1  ;;  %v7665_v9 = vpop.f32.mrf.mxu0 }
 0x266   : > { %v10267_v33 = vadd.f32 %v7562_v52, %v7561_v3  ;;  %v7666_v20 = vadd.f32 %v7665_v9, %v7664_v53 }
 0x267   : > { %v7564_v28 = vpop.f32.mrf.mxu1  ;;  %v7667_v59 = vpop.f32.mrf.mxu0 }
 0x268   : > { %v10270_v54 = vadd.f32 %v7666_v20, %v10169_v36 }
 0x269   : > { %v7565_v50 = vpop.f32.mrf.mxu1  ;;  %v7668_v27 = vpop.f32.mrf.mxu0 }
 0x26a   : > { %v10272_v26 = vadd.f32 %v7565_v50, %v7564_v28  ;;  %v7669_v58 = vadd.f32 %v7668_v27, %v7667_v59 }
 0x26b   : > { %v7567_v60 = vpop.f32.mrf.mxu1  ;;  %7425 = vmatmul.mubr.msk.bf16.gmra.mxu1 %vm9055_vm8, %v9694_v40  ;;  %v7670_v38 = vpop.f32.mrf.mxu0 }
 0x26c   : > { %6543 = vmatprep.mubr.bf16.mxu1 %v9822_v18  ;;  %v10279_v2 = vadd.f32 %v7669_v58, %v10181_v49 }
 0x26d   : > { %v7568_v23 = vpop.f32.mrf.mxu1  ;;  %v7671_v19 = vpop.f32.mrf.mxu0 }
 0x26e   : > { %v10281_v36 = vadd.f32 %v7568_v23, %v7567_v60  ;;  %v7672_v4 = vadd.f32 %v7671_v19, %v7670_v38 }
 0x26f   : > { %v7570_v30 = vpop.f32.mrf.mxu1  ;;  %v7673_v44 = vpop.f32.mrf.mxu0 }
 0x270   : > { %v10284_v32 = vadd.f32 %v7672_v4, %v10188_v51 }
 0x271   : > { %v7571_v39 = vpop.f32.mrf.mxu1  ;;  %v7674_v12 = vpop.f32.mrf.mxu0 }
 0x272   : > { %v10286_v31 = vadd.f32 %v7571_v39, %v7570_v30  ;;  %v7675_v40 = vadd.f32 %v7674_v12, %v7673_v44 }
 0x273   : > { %v7573_v3 = vpop.f32.mrf.mxu1  ;;  %7428 = vmatmul.mubr.msk.bf16.gmra.mxu1 %vm9055_vm8, %v9814_v17  ;;  %v7676_v18 = vpop.f32.mrf.mxu0 }
 0x274   : > { %6551 = vmatprep.mubr.bf16.mxu1 %v9867_v21 }
 0x275   : > { %v7574_v49 = vpop.f32.mrf.mxu1  ;;  %v7677_v53 = vpop.f32.mrf.mxu0 }
 0x276   : > { %v10292_v52 = vadd.f32 %v7574_v49, %v7573_v3  ;;  %v7678_v9 = vadd.f32 %v7677_v53, %v7676_v18 }
 0x277   : > { %v7576_v51 = vpop.f32.mrf.mxu1  ;;  %v7679_v20 = vpop.f32.mrf.mxu0 }
 0x279   : > { %v7577_v28 = vpop.f32.mrf.mxu1  ;;  %v7680_v59 = vpop.f32.mrf.mxu0 }
 0x27a   : > { %v10294_v50 = vadd.f32 %v7577_v28, %v7576_v51  ;;  %v7681_v27 = vadd.f32 %v7680_v59, %v7679_v20 }
 0x27b   : > { %v7579_v58 = vpop.f32.mrf.mxu1  ;;  %7431 = vmatmul.mubr.msk.bf16.gmra.mxu1 %vm9055_vm8, %v9871_v61  ;;  %v7682_v17 = vpop.f32.mrf.mxu0 }
 0x27c   : > { %6559 = vmatprep.mubr.bf16.mxu1 %v9899_v55 }
 0x27d   : > { %v7580_v21 = vpop.f32.mrf.mxu1  ;;  %v7683_v60 = vpop.f32.mrf.mxu0 }
 0x27e   : > { %v10300_v38 = vadd.f32 %v7580_v21, %v7579_v58  ;;  %v7684_v23 = vadd.f32 %v7683_v60, %v7682_v17 }
 0x27f   : > { %v7582_v19 = vpop.f32.mrf.mxu1  ;;  %v7685_v4 = vpop.f32.mrf.mxu0 }
 0x281   : > { %v7583_v30 = vpop.f32.mrf.mxu1  ;;  %v7686_v44 = vpop.f32.mrf.mxu0 }
 0x282   : > { %v10302_v39 = vadd.f32 %v7583_v30, %v7582_v19  ;;  %v7687_v12 = vadd.f32 %v7686_v44, %v7685_v4 }
 0x283   : > { %v8005_v3 = vpop.f32.mrf.mxu1  ;;  %7434 = vmatmul.mubr.msk.bf16.gmra.mxu1 %vm9055_vm8, %v9910_v22  ;;  %v7688_v61 = vpop.f32.mrf.mxu0 }
 0x284   : > { %v5718_v55 = vadd.f32 %v8005_v3, %v10215_v14  ;;  %6567 = vmatprep.mubr.bf16.mxu1 %v9931_v35 }
 0x285   : > { %v5709_v18 = vpop.f32.mrf.mxu1  ;;  %v7689_v49 = vpop.f32.mrf.mxu0 }
 0x286   : > { %v5710_v53 = vadd.f32 %v10195_v0, %v5709_v18  ;;  %v7690_v51 = vadd.f32 %v7689_v49, %v7688_v61  ;;  %v10310_v20 = vadd.f32 %v7681_v27, %v5718_v55 }
 0x287   : > { %v8006_v28 = vpop.f32.mrf.mxu1  ;;  %v7691_v59 = vpop.f32.mrf.mxu0 }
 0x288   : > { %v5721_v58 = vadd.f32 %v8006_v28, %v10220_v45  ;;  %v10313_v17 = vadd.f32 %v7675_v40, %v5710_v53  ;;  %v10770_v28 = vld [vmem:[#allocation5_spill] sm:$0xff] }
 0x289   : > { %v5712_v21 = vpop.f32.mrf.mxu1  ;;  %v7692_v22 = vpop.f32.mrf.mxu0 }
 0x28a   : > { %v5713_v60 = vadd.f32 %v10202_v10, %v5712_v21  ;;  %v7693_v14 = vadd.f32 %v7692_v22, %v7691_v59  ;;  %v10316_v19 = vadd.f32 %v7684_v23, %v5721_v58 }
 0x28b   : > { %v8009_v35 = vpop.f32.mrf.mxu1  ;;  %7437 = vmatmul.mubr.msk.bf16.gmra.mxu1 %vm9055_vm8, %v9941_v62  ;;  %v7694_v0 = vpop.f32.mrf.mxu0 }
 0x28c   : > { %v5734_v27 = vadd.f32 %v8009_v35, %v10253_v16  ;;  %6575 = vmatprep.mubr.bf16.mxu1 %v9944_v15  ;;  %v10323_v45 = vadd.f32 %v7678_v9, %v5713_v60 }
 0x28d   : > { %v5725_v40 = vpop.f32.mrf.mxu1  ;;  %v7695_v4 = vpop.f32.mrf.mxu0 }
 0x28e   : > { %v5726_v30 = vadd.f32 %v10229_v13, %v5725_v40  ;;  %v7696_v10 = vadd.f32 %v7695_v4, %v7694_v0  ;;  %v10326_v44 = vadd.f32 %v7693_v14, %v5734_v27 }
 0x28f   : > { %v8010_v23 = vpop.f32.mrf.mxu1  ;;  %v7697_v3 = vpop.f32.mrf.mxu0 }
 0x290   : > { %v5737_v61 = vadd.f32 %v8010_v23, %v10258_v63  ;;  %v10329_v55 = vadd.f32 %v7687_v12, %v5726_v30 }
 0x291   : > { %v5728_v62 = vpop.f32.mrf.mxu1  ;;  %v7698_v18 = vpop.f32.mrf.mxu0 }
 0x292   : > { %v5729_v16 = vadd.f32 %v10234_v6, %v5728_v62  ;;  %v7699_v15 = vadd.f32 %v7698_v18, %v7697_v3  ;;  %v10332_v9 = vadd.f32 %v7696_v10, %v5737_v61 }
 0x293   : > { %v8013_v49 = vpop.f32.mrf.mxu1  ;;  %7440 = vmatmul.mubr.msk.bf16.gmra.mxu1 %vm9055_vm8, %v9954_v25  ;;  %v7700_v13 = vpop.f32.mrf.mxu0 }
 0x294   : > { %v5750_v53 = vadd.f32 %v8013_v49, %v10281_v36  ;;  %6583 = vmatprep.mubr.bf16.mxu1 %v10770_v28  ;;  %v10339_v63 = vadd.f32 %v7690_v51, %v5729_v16 }
 0x295   : > { %v5741_v12 = vpop.f32.mrf.mxu1  ;;  %v7701_v59 = vpop.f32.mrf.mxu0 }
 0x296   : > { %v5742_v58 = vadd.f32 %v10267_v33, %v5741_v12  ;;  %v7702_v6 = vadd.f32 %v7701_v59, %v7700_v13 }
 0x297   : > { %v8014_v21 = vpop.f32.mrf.mxu1  ;;  %v7703_v22 = vpop.f32.mrf.mxu0 }
 0x298   : > { %v5753_v60 = vadd.f32 %v8014_v21, %v10286_v31  ;;  %v10343_v14 = vadd.f32 %v7699_v15, %v5742_v58 }
 0x299   : > { %v5744_v11 = vpop.f32.mrf.mxu1  ;;  %v7704_v25 = vpop.f32.mrf.mxu0 }
 0x29a   : > { %v5745_v35 = vadd.f32 %v10272_v26, %v5744_v11  ;;  %v7705_v36 = vadd.f32 %v7704_v25, %v7703_v22 }
 0x29b   : > { %v8017_v0 = vpop.f32.mrf.mxu1  ;;  %6584 = vmatmul.mubr.bf16.gmra.mxu1 %v10752_v5  ;;  %v7706_v51 = vpop.f32.mrf.mxu0 }
 0x29c   : > { %v5766_v27 = vadd.f32 %v8017_v0, %v10300_v38  ;;  %8111 = vmatprep.mubr.bf16.mxu1 %v10037_v37  ;;  %v10349_v33 = vadd.f32 %v7705_v36, %v5750_v53  ;;  %v10351_v40 = vadd.f32 %v7702_v6, %v5745_v35 }
 0x29d   : > { %v5757_v31 = vpop.f32.mrf.mxu1  ;;  %v7707_v4 = vpop.f32.mrf.mxu0 }
 0x29e   : > { %v5758_v30 = vadd.f32 %v10292_v52, %v5757_v31  ;;  %v7708_v10 = vadd.f32 %v7707_v4, %v7706_v51 }
 0x29f   : > { %v8018_v23 = vpop.f32.mrf.mxu1  ;;  %v7709_v26 = vpop.f32.mrf.mxu0 }
 0x2a0   : > { %v5769_v3 = vadd.f32 %v8018_v23, %v10302_v39  ;;  %v10355_v61 = vadd.f32 %v7708_v10, %v5753_v60 }
 0x2a1   : > { %v5760_v5 = vpop.f32.mrf.mxu1  ;;  %v7710_v62 = vpop.f32.mrf.mxu0 }
 0x2a2   : > { %v5761_v38 = vadd.f32 %v10294_v50, %v5760_v5  ;;  %v7711_v37 = vadd.f32 %v7710_v62, %v7709_v26 }
 0x2a3   : > { %v8037_v18 = vpop.f32.mrf.mxu1  ;;  %8112 = vmatmul.mubr.bf16.vlgmr.msra.gmra.mxu1 %v10031_v57  ;;  %v7712_v16 = vpop.f32.mrf.mxu0 }
 0x2a4   : > { %v10360_v15 = vadd.f32 %v8037_v18, %v10199_v41  ;;  %v10362_v52 = vadd.f32 %v7711_v37, %v5758_v30 }
 0x2a5   : > { %v6111_v49 = vpop.f32.mrf.mxu1  ;;  %v7713_v13 = vpop.f32.mrf.mxu0 }
 0x2a6   : > { %v10365_v39 = vadd.f32 %v6111_v49, %v10179_v46  ;;  %v7714_v53 = vadd.f32 %v7713_v13, %v7712_v16 }
 0x2a7   : > { %v8038_v28 = vpop.f32.mrf.mxu1  ;;  %v7715_v12 = vpop.f32.mrf.mxu0 }
 0x2a8   : > { %v10368_v50 = vadd.f32 %v8038_v28, %v10206_v34  ;;  %v10370_v59 = vadd.f32 %v7714_v53, %v5761_v38 }
 0x2a9   : > { %v6114_v57 = vpop.f32.mrf.mxu1  ;;  %v7716_v58 = vpop.f32.mrf.mxu0 }
 0x2aa   : > { %v10373_v41 = vadd.f32 %v6114_v57, %v10186_v43  ;;  %v7717_v6 = vadd.f32 %v7716_v58, %v7715_v12 }
 0x2ab   : > { %v8041_v21 = vpop.f32.mrf.mxu1  ;;  %v7718_v22 = vpop.f32.mrf.mxu0 }
 0x2ac   : > { %v10376_v60 = vadd.f32 %v8041_v21, %v10227_v7  ;;  %v6071_v46 = vadd.f32 %v7717_v6, %v5766_v27 }
 0x2ad   : > { %v6127_v11 = vpop.f32.mrf.mxu1  ;;  %v7719_v25 = vpop.f32.mrf.mxu0 }
 0x2ae   : > { %v10379_v35 = vadd.f32 %v6127_v11, %v10213_v56  ;;  %v7720_v34 = vadd.f32 %v7719_v25, %v7718_v22 }
 0x2af   : > { %v8042_v36 = vpop.f32.mrf.mxu1  ;;  %v8085_v11 = vpop.f32.mrf.mxu0 }
 0x2b0   : > { %v10382_v0 = vadd.f32 %v8042_v36, %v10232_v1  ;;  %v6074_v51 = vadd.f32 %v7720_v34, %v5769_v3 }
 0x2b1   : > { %v6130_v43 = vpop.f32.mrf.mxu1  ;;  %v6626_v36 = vpop.f32.mrf.mxu0 }
 0x2b2   : > { %v10385_v31 = vadd.f32 %v6130_v43, %v10218_v42 }
 0x2b3   : > { %v8045_v4 = vpop.f32.mrf.mxu1 }
 0x2b4   : > { %v10388_v7 = vadd.f32 %v8045_v4, %v10251_v29 }
 0x2b5   : > { %v6143_v27 = vpop.f32.mrf.mxu1 }
 0x2b6   : > { %v10391_v30 = vadd.f32 %v6143_v27, %v10241_v47  ;;  %v8086_v27 = vpop.f32.mrf.mxu0 }
 0x2b7   : > { %v8046_v56 = vpop.f32.mrf.mxu1 }
 0x2b8   : > { %v10394_v10 = vadd.f32 %v8046_v56, %v10256_v48 }
 0x2b9   : > { %v6146_v23 = vpop.f32.mrf.mxu1 }
 0x2ba   : > { %v10397_v1 = vadd.f32 %v6146_v23, %v10244_v8 }
 0x2bb   : > { %v8049_v26 = vpop.f32.mrf.mxu1 }
 0x2bc   : > { %v10400_v42 = vadd.f32 %v8049_v26, %v10279_v2 }
 0x2bd   : > { %v6159_v3 = vpop.f32.mrf.mxu1 }
 0x2be   : > { %v10403_v29 = vadd.f32 %v6159_v3, %v10265_v24  ;;  %v10467_v3 = vld [vmem:[%s10694_s6] ss:$0 sm:$0xff] }
 0x2bf   : > { %v8050_v5 = vpop.f32.mrf.mxu1 }
 0x2c0   : > { %v10406_v47 = vadd.f32 %v8050_v5, %v10284_v32 }
 0x2c1   : > { %v6162_v62 = vpop.f32.mrf.mxu1 }
 0x2c2   : > { %v10409_v48 = vadd.f32 %v6162_v62, %v10270_v54 }
 0x2c3   : > { %v8053_v38 = vpop.f32.mrf.mxu1 }
 0x2c4   : > { %v10412_v8 = vadd.f32 %v8053_v38, %v10310_v20 }
 0x2c5   : > { %v6175_v37 = vpop.f32.mrf.mxu1 }
 0x2c6   : > { %v10415_v2 = vadd.f32 %v6175_v37, %v10313_v17 }
 0x2c7   : > { %v8054_v18 = vpop.f32.mrf.mxu1 }
 0x2c8   : > { %v10418_v24 = vadd.f32 %v8054_v18, %v10316_v19 }
 0x2c9   : > { %v6178_v16 = vpop.f32.mrf.mxu1 }
 0x2ca   : > { %v10421_v32 = vadd.f32 %v6178_v16, %v10323_v45 }
 0x2cb   : > { %v8057_v49 = vpop.f32.mrf.mxu1 }
 0x2cc   : > { %v10424_v54 = vadd.f32 %v8057_v49, %v10326_v44 }
 0x2cd   : > { %v6191_v13 = vpop.f32.mrf.mxu1 }
 0x2ce   : > { %v10427_v20 = vadd.f32 %v6191_v13, %v10329_v55 }
 0x2cf   : > { %v8058_v53 = vpop.f32.mrf.mxu1 }
 0x2d0   : > { %v10430_v17 = vadd.f32 %v8058_v53, %v10332_v9 }
 0x2d1   : > { %v6194_v28 = vpop.f32.mrf.mxu1 }
 0x2d2   : > { %v10433_v19 = vadd.f32 %v6194_v28, %v10339_v63 }
 0x2d3   : > { %v8061_v12 = vpop.f32.mrf.mxu1 }
 0x2d4   : > { %v10436_v45 = vadd.f32 %v8061_v12, %v10349_v33 }
 0x2d5   : > { %v6207_v57 = vpop.f32.mrf.mxu1 }
 0x2d6   : > { %v10439_v44 = vadd.f32 %v6207_v57, %v10343_v14 }
 0x2d7   : > { %v8062_v58 = vpop.f32.mrf.mxu1 }
 0x2d8   : > { %v10442_v55 = vadd.f32 %v8062_v58, %v10355_v61 }
 0x2d9   : > { %v6210_v6 = vpop.f32.mrf.mxu1 }
 0x2da   : > { %v10445_v9 = vadd.f32 %v6210_v6, %v10351_v40 }
 0x2db   : > { %v8065_v21 = vpop.f32.mrf.mxu1 }
 0x2dc   : > { %v10447_v63 = vadd.f32 %v8065_v21, %v6071_v46 }
 0x2dd   : > { %v6223_v22 = vpop.f32.mrf.mxu1 }
 0x2de   : > { %v10450_v33 = vadd.f32 %v6223_v22, %v10362_v52  ;;  %v10461_v52 = vld [vmem:[%s10693_s5] ss:$0 sm:$0xff] }
 0x2df   : > { %v8066_v25 = vpop.f32.mrf.mxu1 }
 0x2e0   : > { %v10452_v14 = vadd.f32 %v8066_v25, %v6074_v51 }
 0x2e1   : > { %v6226_v34 = vpop.f32.mrf.mxu1 }
 0x2e2   : > { %v10455_v61 = vadd.f32 %v6226_v34, %v10370_v59  ;;  %v6629_v59 = vpop.f32.mrf.mxu0 }
 0x2e3   : > { %v7761_v40 = vpop.f32.mrf.mxu1 }
 0x2e5   : > { %v7762_v43 = vpop.f32.mrf.mxu1 }
 0x2e6   : > { %v7763_v4 = vadd.f32 %v7762_v43, %v7761_v40 }
 0x2e7   : > { %v7764_v46 = vpop.f32.mrf.mxu1 }
 0x2e8   : > { %v6627_v56 = vadd.f32 %v7763_v4, %v6626_v36 }
 0x2e9   : > { %v7765_v51 = vpop.f32.mrf.mxu1 }
 0x2ea   : > { %v6753_v23 = vadd.f32 %v6627_v56, %v10365_v39  ;;  %v7766_v26 = vadd.f32 %v7765_v51, %v7764_v46  ;;  %v8089_v39 = vpop.f32.mrf.mxu0 }
 0x2eb   : > { %v7767_v5 = vpop.f32.mrf.mxu1 }
 0x2ec   : > { %v6792_v62 = vmul.f32 %v10461_v52, %v6753_v23  ;;  %v6630_v38 = vadd.f32 %v7766_v26, %v6629_v59  ;;  %v6642_v21 = vpop.f32.mrf.mxu0 }
 0x2ed   : > { %v7768_v37 = vpop.f32.mrf.mxu1 }
 0x2ee   : > { %v6831_v18 = vadd.f32 %v10467_v3, %v6792_v62  ;;  %v6754_v16 = vadd.f32 %v6630_v38, %v10373_v41  ;;  %v7769_v49 = vadd.f32 %v7768_v37, %v7767_v5  ;;  %v8090_v46 = vpop.f32.mrf.mxu0 }
 0x2ef   : > { %v7770_v13 = vpop.f32.mrf.mxu1 }
 0x2f0   : > { %v6863_v53 = vmax.f32 %v6831_v18, 0.0  ;;  %v6793_v28 = vmul.f32 %v10461_v52, %v6754_v16  ;;  %v6635_v12 = vadd.f32 %v8085_v11, %v7769_v49  ;;  %v6645_v62 = vpop.f32.mrf.mxu0 }
 0x2f1   : > { %v7771_v57 = vpop.f32.mrf.mxu1 }
 0x2f2   : > { %6896 = vst.msk [vmem:[%s10475_s30] sm:$0xff] %vm6895_vm9, %v6863_v53  ;;  %v6832_v58 = vadd.f32 %v10467_v3, %v6793_v28  ;;  %v6755_v6 = vadd.f32 %v6635_v12, %v10360_v15  ;;  %v7772_v41 = vadd.f32 %v7771_v57, %v7770_v13  ;;  %v8093_v28 = vpop.f32.mrf.mxu0 }
 0x2f3   : > { %v7773_v22 = vpop.f32.mrf.mxu1 }
 0x2f4   : > { %v6864_v25 = vmax.f32 %v6832_v58, 0.0  ;;  %v6794_v34 = vmul.f32 %v10461_v52, %v6755_v6  ;;  %v6638_v36 = vadd.f32 %v8086_v27, %v7772_v41 }
 0x2f5   : > { %v7774_v11 = vpop.f32.mrf.mxu1 }
 0x2f6   : > { %6897 = vst.msk [vmem:[%s10475_s30 + $0x8] sm:$0xff] %vm6895_vm9, %v6864_v25  ;;  %v6833_v40 = vadd.f32 %v10467_v3, %v6794_v34  ;;  %v6756_v43 = vadd.f32 %v6638_v36, %v10368_v50  ;;  %v7775_v4 = vadd.f32 %v7774_v11, %v7773_v22  ;;  %v6658_v25 = vpop.f32.mrf.mxu0 }
 0x2f7   : > { %v7776_v56 = vpop.f32.mrf.mxu1 }
 0x2f8   : > { %v6865_v15 = vmax.f32 %v6833_v40, 0.0  ;;  %v6795_v51 = vmul.f32 %v10461_v52, %v6756_v43  ;;  %v6643_v23 = vadd.f32 %v7775_v4, %v6642_v21 }
 0x2f9   : > { %v7777_v26 = vpop.f32.mrf.mxu1 }
 0x2fa   : > { %6898 = vst.msk [vmem:[%s10475_s30 + $0x10] sm:$0xff] %vm6895_vm9, %v6865_v15  ;;  %v6834_v27 = vadd.f32 %v10467_v3, %v6795_v51  ;;  %v6757_v59 = vadd.f32 %v6643_v23, %v10379_v35  ;;  %v7778_v5 = vadd.f32 %v7777_v26, %v7776_v56  ;;  %v8094_v56 = vpop.f32.mrf.mxu0 }
 0x2fb   : > { %v7779_v38 = vpop.f32.mrf.mxu1 }
 0x2fc   : > { %v6866_v50 = vmax.f32 %v6834_v27, 0.0  ;;  %v6796_v37 = vmul.f32 %v10461_v52, %v6757_v59  ;;  %v6646_v18 = vadd.f32 %v7778_v5, %v6645_v62  ;;  %v6661_v5 = vpop.f32.mrf.mxu0 }
 0x2fd   : > { %v7780_v16 = vpop.f32.mrf.mxu1 }
 0x2fe   : > { %6899 = vst.msk [vmem:[%s10475_s30 + $0x18] sm:$0xff] %vm6895_vm9, %v6866_v50  ;;  %v6835_v49 = vadd.f32 %v10467_v3, %v6796_v37  ;;  %v6758_v13 = vadd.f32 %v6646_v18, %v10385_v31  ;;  %v7781_v53 = vadd.f32 %v7780_v16, %v7779_v38 }
 0x2ff   : > { %v7782_v12 = vpop.f32.mrf.mxu1 }
 0x300   : > { %v6867_v35 = vmax.f32 %v6835_v49, 0.0  ;;  %v6797_v57 = vmul.f32 %v10461_v52, %v6758_v13  ;;  %v6651_v58 = vadd.f32 %v8089_v39, %v7781_v53  ;;  %v8097_v13 = vpop.f32.mrf.mxu0 }
 0x301   : > { %v7783_v6 = vpop.f32.mrf.mxu1 }
 0x302   : > { %6900 = vst.msk [vmem:[%s10475_s30 + $0x20] sm:$0xff] %vm6895_vm9, %v6867_v35  ;;  %v6836_v41 = vadd.f32 %v10467_v3, %v6797_v57  ;;  %v6759_v21 = vadd.f32 %v6651_v58, %v10376_v60  ;;  %v7784_v22 = vadd.f32 %v7783_v6, %v7782_v12 }
 0x303   : > { %v7785_v34 = vpop.f32.mrf.mxu1 }
 0x304   : > { %v6868_v31 = vmax.f32 %v6836_v41, 0.0  ;;  %v6798_v36 = vmul.f32 %v10461_v52, %v6759_v21  ;;  %v6654_v11 = vadd.f32 %v8090_v46, %v7784_v22  ;;  %v6674_v21 = vpop.f32.mrf.mxu0 }
 0x305   : > { %v7786_v40 = vpop.f32.mrf.mxu1 }
 0x306   : > { %6901 = vst.msk [vmem:[%s10475_s30 + $0x28] sm:$0xff] %vm6895_vm9, %v6868_v31  ;;  %v6837_v39 = vadd.f32 %v10467_v3, %v6798_v36  ;;  %v6760_v43 = vadd.f32 %v6654_v11, %v10382_v0  ;;  %v7787_v4 = vadd.f32 %v7786_v40, %v7785_v34  ;;  %v8098_v40 = vpop.f32.mrf.mxu0 }
 0x307   : > { %v7788_v15 = vpop.f32.mrf.mxu1 }
 0x308   : > { %v6869_v60 = vmax.f32 %v6837_v39, 0.0  ;;  %v6799_v51 = vmul.f32 %v10461_v52, %v6760_v43  ;;  %v6659_v23 = vadd.f32 %v7787_v4, %v6658_v25 }
 0x309   : > { %v7789_v26 = vpop.f32.mrf.mxu1 }
 0x30a   : > { %6902 = vst.msk [vmem:[%s10475_s30 + $0x30] sm:$0xff] %vm6895_vm9, %v6869_v60  ;;  %v6838_v46 = vadd.f32 %v10467_v3, %v6799_v51  ;;  %v6761_v27 = vadd.f32 %v6659_v23, %v10391_v30  ;;  %v7790_v59 = vadd.f32 %v7789_v26, %v7788_v15  ;;  %v6677_v23 = vpop.f32.mrf.mxu0 }
 0x30b   : > { %v7791_v62 = vpop.f32.mrf.mxu1 }
 0x30c   : > { %v6870_v0 = vmax.f32 %v6838_v46, 0.0  ;;  %v6800_v38 = vmul.f32 %v10461_v52, %v6761_v27  ;;  %v6662_v50 = vadd.f32 %v7790_v59, %v6661_v5 }
 0x30d   : > { %v7792_v37 = vpop.f32.mrf.mxu1 }
 0x30e   : > { %6903 = vst.msk [vmem:[%s10475_s30 + $0x38] sm:$0xff] %vm6895_vm9, %v6870_v0  ;;  %v6839_v18 = vadd.f32 %v10467_v3, %v6800_v38  ;;  %v6762_v16 = vadd.f32 %v6662_v50, %v10397_v1  ;;  %v7793_v49 = vadd.f32 %v7792_v37, %v7791_v62  ;;  %v8101_v38 = vpop.f32.mrf.mxu0 }
 0x30f   : > { %v7794_v53 = vpop.f32.mrf.mxu1 }
 0x310   : > { %v6871_v30 = vmax.f32 %v6839_v18, 0.0  ;;  %v6801_v12 = vmul.f32 %v10461_v52, %v6762_v16  ;;  %v6667_v35 = vadd.f32 %v8093_v28, %v7793_v49 }
 0x311   : > { %v7795_v57 = vpop.f32.mrf.mxu1 }
 0x312   : > { %6904 = vst.msk [vmem:[%s10475_s30 + $0x40] sm:$0xff] %vm6895_vm9, %v6871_v30  ;;  %v6840_v58 = vadd.f32 %v10467_v3, %v6801_v12  ;;  %v6763_v6 = vadd.f32 %v6667_v35, %v10388_v7  ;;  %v7796_v41 = vadd.f32 %v7795_v57, %v7794_v53  ;;  %v6690_v12 = vpop.f32.mrf.mxu0 }
 0x313   : > { %v7797_v22 = vpop.f32.mrf.mxu1 }
 0x314   : > { %v6872_v1 = vmax.f32 %v6840_v58, 0.0  ;;  %v6802_v25 = vmul.f32 %v10461_v52, %v6763_v6  ;;  %v6670_v34 = vadd.f32 %v8094_v56, %v7796_v41 }
 0x315   : > { %v7798_v31 = vpop.f32.mrf.mxu1 }
 0x316   : > { %6905 = vst.msk [vmem:[%s10475_s30 + $0x48] sm:$0xff] %vm6895_vm9, %v6872_v1  ;;  %v6841_v28 = vadd.f32 %v10467_v3, %v6802_v25  ;;  %v6764_v36 = vadd.f32 %v6670_v34, %v10394_v10  ;;  %v7799_v11 = vadd.f32 %v7798_v31, %v7797_v22  ;;  %v8102_v22 = vpop.f32.mrf.mxu0 }
 0x317   : > { %v7800_v39 = vpop.f32.mrf.mxu1 }
 0x318   : > { %v6873_v7 = vmax.f32 %v6841_v28, 0.0  ;;  %v6803_v43 = vmul.f32 %v10461_v52, %v6764_v36  ;;  %v6675_v4 = vadd.f32 %v7799_v11, %v6674_v21 }
 0x319   : > { %v7801_v15 = vpop.f32.mrf.mxu1 }
 0x31a   : > { %6906 = vst.msk [vmem:[%s10475_s30 + $0x50] sm:$0xff] %vm6895_vm9, %v6873_v7  ;;  %v6842_v56 = vadd.f32 %v10467_v3, %v6803_v43  ;;  %v6765_v60 = vadd.f32 %v6675_v4, %v10403_v29  ;;  %v7802_v51 = vadd.f32 %v7801_v15, %v7800_v39 }
 0x31b   : > { %v7803_v26 = vpop.f32.mrf.mxu1 }
 0x31c   : > { %v6874_v10 = vmax.f32 %v6842_v56, 0.0  ;;  %v6804_v46 = vmul.f32 %v10461_v52, %v6765_v60  ;;  %v6678_v27 = vadd.f32 %v7802_v51, %v6677_v23 }
 0x31d   : > { %v7804_v59 = vpop.f32.mrf.mxu1 }
 0x31e   : > { %6907 = vst.msk [vmem:[%s10475_s30 + $0x58] sm:$0xff] %vm6895_vm9, %v6874_v10  ;;  %v6843_v5 = vadd.f32 %v10467_v3, %v6804_v46  ;;  %v6766_v62 = vadd.f32 %v6678_v27, %v10409_v48  ;;  %v7805_v0 = vadd.f32 %v7804_v59, %v7803_v26 }
 0x31f   : > { %v7806_v50 = vpop.f32.mrf.mxu1 }
 0x320   : > { %v6875_v29 = vmax.f32 %v6843_v5, 0.0  ;;  %v6805_v37 = vmul.f32 %v10461_v52, %v6766_v62  ;;  %v6683_v18 = vadd.f32 %v8097_v13, %v7805_v0 }
 0x321   : > { %v7807_v16 = vpop.f32.mrf.mxu1 }
 0x322   : > { %6908 = vst.msk [vmem:[%s10475_s30 + $0x60] sm:$0xff] %vm6895_vm9, %v6875_v29  ;;  %v6844_v49 = vadd.f32 %v10467_v3, %v6805_v37  ;;  %v6767_v53 = vadd.f32 %v6683_v18, %v10400_v42  ;;  %v7808_v30 = vadd.f32 %v7807_v16, %v7806_v50 }
 0x323   : > { %v7809_v35 = vpop.f32.mrf.mxu1 }
 0x324   : > { %v6876_v48 = vmax.f32 %v6844_v49, 0.0  ;;  %v6806_v57 = vmul.f32 %v10461_v52, %v6767_v53  ;;  %v6686_v58 = vadd.f32 %v8098_v40, %v7808_v30  ;;  %v6693_v40 = vpop.f32.mrf.mxu0 }
 0x325   : > { %v7810_v6 = vpop.f32.mrf.mxu1 }
 0x326   : > { %6909 = vst.msk [vmem:[%s10475_s30 + $0x68] sm:$0xff] %vm6895_vm9, %v6876_v48  ;;  %v6845_v13 = vadd.f32 %v10467_v3, %v6806_v57  ;;  %v6768_v41 = vadd.f32 %v6686_v58, %v10406_v47  ;;  %v7811_v21 = vadd.f32 %v7810_v6, %v7809_v35  ;;  %v8105_v51 = vpop.f32.mrf.mxu0 }
 0x327   : > { %v7812_v1 = vpop.f32.mrf.mxu1 }
 0x328   : > { %v6877_v42 = vmax.f32 %v6845_v13, 0.0  ;;  %v6807_v25 = vmul.f32 %v10461_v52, %v6768_v41  ;;  %v6691_v34 = vadd.f32 %v7811_v21, %v6690_v12  ;;  %v6706_v62 = vpop.f32.mrf.mxu0 }
 0x329   : > { %v7813_v31 = vpop.f32.mrf.mxu1 }
 0x32a   : > { %6910 = vst.msk [vmem:[%s10475_s30 + $0x70] sm:$0xff] %vm6895_vm9, %v6877_v42  ;;  %v6846_v28 = vadd.f32 %v10467_v3, %v6807_v25  ;;  %v6769_v36 = vadd.f32 %v6691_v34, %v10415_v2  ;;  %v7814_v11 = vadd.f32 %v7813_v31, %v7812_v1  ;;  %v8106_v49 = vpop.f32.mrf.mxu0 }
 0x32b   : > { %v7815_v39 = vpop.f32.mrf.mxu1 }
 0x32c   : > { %v6878_v47 = vmax.f32 %v6846_v28, 0.0  ;;  %v6808_v7 = vmul.f32 %v10461_v52, %v6769_v36  ;;  %v6694_v43 = vadd.f32 %v7814_v11, %v6693_v40  ;;  %v6709_v6 = vpop.f32.mrf.mxu0 }
 0x32d   : > { %v7816_v4 = vpop.f32.mrf.mxu1 }
 0x32e   : > { %6911 = vst.msk [vmem:[%s10475_s30 + $0x78] sm:$0xff] %vm6895_vm9, %v6878_v47  ;;  %v6847_v15 = vadd.f32 %v10467_v3, %v6808_v7  ;;  %v6770_v56 = vadd.f32 %v6694_v43, %v10421_v32  ;;  %v7817_v60 = vadd.f32 %v7816_v4, %v7815_v39  ;;  %v8109_v34 = vpop.f32.mrf.mxu0 }
 0x32f   : > { %v7818_v23 = vpop.f32.mrf.mxu1 }
 0x330   : > { %v6879_v2 = vmax.f32 %v6847_v15, 0.0  ;;  %v6809_v26 = vmul.f32 %v10461_v52, %v6770_v56  ;;  %v6699_v10 = vadd.f32 %v8101_v38, %v7817_v60  ;;  %v6722_v7 = vpop.f32.mrf.mxu0 }
 0x331   : > { %v7819_v46 = vpop.f32.mrf.mxu1 }
 0x332   : > { %6912 = vst.msk [vmem:[%s10475_s30 + $0x80] sm:$0xff] %vm6895_vm9, %v6879_v2  ;;  %v6848_v27 = vadd.f32 %v10467_v3, %v6809_v26  ;;  %v6771_v59 = vadd.f32 %v6699_v10, %v10412_v8  ;;  %v7820_v5 = vadd.f32 %v7819_v46, %v7818_v23  ;;  %v8110_v2 = vpop.f32.mrf.mxu0 }
 0x333   : > { %v7821_v0 = vpop.f32.mrf.mxu1 }
 0x334   : > { %v6880_v32 = vmax.f32 %v6848_v27, 0.0  ;;  %v6810_v50 = vmul.f32 %v10461_v52, %v6771_v59  ;;  %v6702_v29 = vadd.f32 %v8102_v22, %v7820_v5 }
 0x335   : > { %v7822_v37 = vpop.f32.mrf.mxu1 }
 0x336   : > { %6913 = vst.msk [vmem:[%s10475_s30 + $0x88] sm:$0xff] %vm6895_vm9, %v6880_v32  ;;  %v6849_v38 = vadd.f32 %v10467_v3, %v6810_v50  ;;  %v6772_v18 = vadd.f32 %v6702_v29, %v10418_v24  ;;  %v7823_v16 = vadd.f32 %v7822_v37, %v7821_v0  ;;  %v6725_v0 = vpop.f32.mrf.mxu0 }
 0x337   : > { %v7824_v53 = vpop.f32.mrf.mxu1 }
 0x338   : > { %v6881_v8 = vmax.f32 %v6849_v38, 0.0  ;;  %v6811_v30 = vmul.f32 %v10461_v52, %v6772_v18  ;;  %v6707_v12 = vadd.f32 %v7823_v16, %v6706_v62 }
 0x339   : > { %v7825_v35 = vpop.f32.mrf.mxu1 }
 0x33a   : > { %6914 = vst.msk [vmem:[%s10475_s30 + $0x90] sm:$0xff] %vm6895_vm9, %v6881_v8  ;;  %v6850_v48 = vadd.f32 %v10467_v3, %v6811_v30  ;;  %v6773_v57 = vadd.f32 %v6707_v12, %v10427_v20  ;;  %v7826_v58 = vadd.f32 %v7825_v35, %v7824_v53 }
 0x33b   : > { %v7827_v13 = vpop.f32.mrf.mxu1 }
 0x33c   : > { %v6882_v24 = vmax.f32 %v6850_v48, 0.0  ;;  %v6812_v41 = vmul.f32 %v10461_v52, %v6773_v57  ;;  %v6710_v21 = vadd.f32 %v7826_v58, %v6709_v6 }
 0x33d   : > { %v7828_v22 = vpop.f32.mrf.mxu1 }
 0x33e   : > { %6915 = vst.msk [vmem:[%s10475_s30 + $0x98] sm:$0xff] %vm6895_vm9, %v6882_v24  ;;  %v6851_v1 = vadd.f32 %v10467_v3, %v6812_v41  ;;  %v6774_v42 = vadd.f32 %v6710_v21, %v10433_v19  ;;  %v7829_v25 = vadd.f32 %v7828_v22, %v7827_v13 }
 0x33f   : > { %v7830_v31 = vpop.f32.mrf.mxu1 }
 0x340   : > { %v6883_v20 = vmax.f32 %v6851_v1, 0.0  ;;  %v6813_v28 = vmul.f32 %v10461_v52, %v6774_v42  ;;  %v6715_v36 = vadd.f32 %v8105_v51, %v7829_v25 }
 0x341   : > { %v7831_v11 = vpop.f32.mrf.mxu1 }
 0x342   : > { %6916 = vst.msk [vmem:[%s10475_s30 + $0xa0] sm:$0xff] %vm6895_vm9, %v6883_v20  ;;  %v6852_v40 = vadd.f32 %v10467_v3, %v6813_v28  ;;  %v6775_v39 = vadd.f32 %v6715_v36, %v10424_v54  ;;  %v7832_v47 = vadd.f32 %v7831_v11, %v7830_v31 }
 0x343   : > { %v7833_v43 = vpop.f32.mrf.mxu1 }
 0x344   : > { %v6884_v19 = vmax.f32 %v6852_v40, 0.0  ;;  %v6814_v4 = vmul.f32 %v10461_v52, %v6775_v39  ;;  %v6718_v15 = vadd.f32 %v8106_v49, %v7832_v47 }
 0x345   : > { %v7834_v56 = vpop.f32.mrf.mxu1 }
 0x346   : > { %6917 = vst.msk [vmem:[%s10475_s30 + $0xa8] sm:$0xff] %vm6895_vm9, %v6884_v19  ;;  %v6853_v60 = vadd.f32 %v10467_v3, %v6814_v4  ;;  %v6776_v51 = vadd.f32 %v6718_v15, %v10430_v17  ;;  %v7835_v23 = vadd.f32 %v7834_v56, %v7833_v43 }
 0x347   : > { %v7836_v26 = vpop.f32.mrf.mxu1 }
 0x348   : > { %v6885_v54 = vmax.f32 %v6853_v60, 0.0  ;;  %v6815_v10 = vmul.f32 %v10461_v52, %v6776_v51  ;;  %v6723_v46 = vadd.f32 %v7835_v23, %v6722_v7 }
 0x349   : > { %v7837_v27 = vpop.f32.mrf.mxu1 }
 0x34a   : > { %6918 = vst.msk [vmem:[%s10475_s30 + $0xb0] sm:$0xff] %vm6895_vm9, %v6885_v54  ;;  %v6854_v59 = vadd.f32 %v10467_v3, %v6815_v10  ;;  %v6777_v5 = vadd.f32 %v6723_v46, %v10439_v44  ;;  %v7838_v62 = vadd.f32 %v7837_v27, %v7836_v26 }
 0x34b   : > { %v7839_v32 = vpop.f32.mrf.mxu1 }
 0x34c   : > { %v6886_v17 = vmax.f32 %v6854_v59, 0.0  ;;  %v6816_v50 = vmul.f32 %v10461_v52, %v6777_v5  ;;  %v6726_v29 = vadd.f32 %v7838_v62, %v6725_v0 }
 0x34d   : > { %v7840_v37 = vpop.f32.mrf.mxu1 }
 0x34e   : > { %6919 = vst.msk [vmem:[%s10475_s30 + $0xb8] sm:$0xff] %vm6895_vm9, %v6886_v17  ;;  %v6855_v38 = vadd.f32 %v10467_v3, %v6816_v50  ;;  %v6778_v18 = vadd.f32 %v6726_v29, %v10445_v9  ;;  %v7841_v16 = vadd.f32 %v7840_v37, %v7839_v32 }
 0x34f   : > { %v7842_v49 = vpop.f32.mrf.mxu1 }
 0x350   : > { %v6887_v53 = vmax.f32 %v6855_v38, 0.0  ;;  %v6817_v44 = vmul.f32 %v10461_v52, %v6778_v18  ;;  %v6731_v8 = vadd.f32 %v8109_v34, %v7841_v16 }
 0x351   : > { %v7843_v30 = vpop.f32.mrf.mxu1 }
 0x352   : > { %6920 = vst.msk [vmem:[%s10475_s30 + $0xc0] sm:$0xff] %vm6895_vm9, %v6887_v53  ;;  %v6856_v12 = vadd.f32 %v10467_v3, %v6817_v44  ;;  %v6779_v35 = vadd.f32 %v6731_v8, %v10436_v45  ;;  %v7844_v48 = vadd.f32 %v7843_v30, %v7842_v49 }
 0x353   : > { %v7845_v57 = vpop.f32.mrf.mxu1 }
 0x354   : > { %v6888_v58 = vmax.f32 %v6856_v12, 0.0  ;;  %v6818_v9 = vmul.f32 %v10461_v52, %v6779_v35  ;;  %v6734_v6 = vadd.f32 %v8110_v2, %v7844_v48 }
 0x355   : > { %v7846_v13 = vpop.f32.mrf.mxu1 }
 0x356   : > { %6921 = vst.msk [vmem:[%s10475_s30 + $0xc8] sm:$0xff] %vm6895_vm9, %v6888_v58  ;;  %v6857_v24 = vadd.f32 %v10467_v3, %v6818_v9  ;;  %v6780_v41 = vadd.f32 %v6734_v6, %v10442_v55  ;;  %v7847_v40 = vadd.f32 %v7846_v13, %v7845_v57 }
 0x357   : > { %v7848_v21 = vpop.f32.mrf.mxu1 }
 0x358   : > { %v6889_v22 = vmax.f32 %v6857_v24, 0.0  ;;  %v6819_v1 = vmul.f32 %v10461_v52, %v6780_v41 }
 0x359   : > { %v7849_v42 = vpop.f32.mrf.mxu1 }
 0x35a   : > { %6922 = vst.msk [vmem:[%s10475_s30 + $0xd0] sm:$0xff] %vm6895_vm9, %v6889_v22  ;;  %v6858_v45 = vadd.f32 %v10467_v3, %v6819_v1  ;;  %v7850_v4 = vadd.f32 %v7849_v42, %v7848_v21 }
 0x35b   : > { %v7851_v25 = vpop.f32.mrf.mxu1 }
 0x35c   : > { %v6890_v34 = vmax.f32 %v6858_v45, 0.0 }
 0x35d   : > { %v7852_v31 = vpop.f32.mrf.mxu1 }
 0x35e   : > { %6923 = vst.msk [vmem:[%s10475_s30 + $0xd8] sm:$0xff] %vm6895_vm9, %v6890_v34  ;;  %v7853_v36 = vadd.f32 %v7852_v31, %v7851_v25 }
 0x35f   : > { %v7854_v20 = vpop.f32.mrf.mxu1 }
 0x361   : > { %v7855_v28 = vpop.f32.mrf.mxu1 }
 0x362   : > { %v7856_v47 = vadd.f32 %v7855_v28, %v7854_v20 }
 0x363   : > { %v8113_v11 = vpop.f32.mrf.mxu1 }
 0x364   : > { %v6747_v55 = vadd.f32 %v8113_v11, %v7853_v36 }
 0x365   : > { %v6738_v39 = vpop.f32.mrf.mxu1 }
 0x366   : > { %v6783_v7 = vadd.f32 %v6747_v55, %v10447_v63  ;;  %v6739_v43 = vadd.f32 %v7847_v40, %v6738_v39 }
 0x367   : > { %v8114_v19 = vpop.f32.mrf.mxu1 }
 0x368   : > { %v6822_v15 = vmul.f32 %v10461_v52, %v6783_v7  ;;  %v6781_v56 = vadd.f32 %v6739_v43, %v10450_v33  ;;  %v6750_v60 = vadd.f32 %v8114_v19, %v7856_v47 }
 0x369   : > { %v6741_v51 = vpop.f32.mrf.mxu1 }
 0x36a   : > { %v6861_v23 = vadd.f32 %v10467_v3, %v6822_v15  ;;  %v6820_v2 = vmul.f32 %v10461_v52, %v6781_v56  ;;  %v6784_v26 = vadd.f32 %v6750_v60, %v10452_v14  ;;  %v6742_v63 = vadd.f32 %v7850_v4, %v6741_v51 }
 0x36c   : > { %v6893_v54 = vmax.f32 %v6861_v23, 0.0  ;;  %v6859_v10 = vadd.f32 %v10467_v3, %v6820_v2  ;;  %v6823_v46 = vmul.f32 %v10461_v52, %v6784_v26  ;;  %v6782_v33 = vadd.f32 %v6742_v63, %v10455_v61 }
 0x36e   : > { %6926 = vst.msk [vmem:[%s10475_s30 + $0xf0] sm:$0xff] %vm6895_vm9, %v6893_v54  ;;  %v6891_v27 = vmax.f32 %v6859_v10, 0.0  ;;  %v6862_v59 = vadd.f32 %v10467_v3, %v6823_v46  ;;  %v6821_v5 = vmul.f32 %v10461_v52, %v6782_v33 }
 0x370   : > { %6924 = vst.msk [vmem:[%s10475_s30 + $0xe0] sm:$0xff] %vm6895_vm9, %v6891_v27  ;;  %v6894_v14 = vmax.f32 %v6862_v59, 0.0  ;;  %v6860_v62 = vadd.f32 %v10467_v3, %v6821_v5 }
 0x372   : > { %6927 = vst.msk [vmem:[%s10475_s30 + $0xf8] sm:$0xff] %vm6895_vm9, %v6894_v14  ;;  %v6892_v61 = vmax.f32 %v6860_v62, 0.0 }
 0x374   : > { %6925 = vst.msk [vmem:[%s10475_s30 + $0xe8] sm:$0xff] %vm6895_vm9, %v6892_v61 }
 0x375   : > { %8305 = shalt.err (!%p8302_p5)
}
 0x376   : > { %s8306_s18 = scalar_lea.hbm %s10633_s16, 4096  ;;  %s8310_s30 = scalar_lea.hbm %s10695_s7, 8192 }
 0x377   : > { %p8307_p6 = scmp.ne.s32.totalorder %s10633_s16, %s8306_s18  ;;  %p8311_p10 = scmp.lt.s32.totalorder %s10633_s16, %s10695_s7 }
 0x378   : > { %p8312_p11 = scmp.lt.s32.totalorder %s8310_s30, %s8306_s18 }
 0x379   : > { %p8308_p7 = pnand %p8307_p6, %p8460_p4 }
 0x37a   : > { %p8313_p12 = por %p8312_p11, %p8311_p10 }
 0x37b   : > { %p8309_p9 = pneg %p8308_p7 }
 0x37d   : > { %p8314_p13 = pnand %p8313_p12, %p8309_p9 }
 0x37f   : > { %8317 = shalt.err (!%p8314_p13)
}
 0x380   : > { %s8378_s15 = smov 128   ;;  %s8379_s17 = smov 8  }
 0x381   : > { %8148 = dma.vmem_to_hbm [thread:$0]  (%p8460_p4), %s10635_s10, 4096, %s10633_s16, %s10643_s27, %s8378_s15, %s8378_s15, %s8379_s17  }
 0x382 PF: > { %p8154_p0 = scmp.ge.s32.totalorder %s8368_s29, 2  ;;  %s6960_s19 = sand.u32 1, %s8348_s24  }
 0x383   : > { %s6961_s20 = scalar_lea.sflag [#allocation3], %s6960_s19 }
 0x384   : > { %p8151_p1 = pnand %p8154_p0, %p8467_p8 }
 0x386   : > { %p8152_p2 = pneg %p8151_p1 }
 0x388   : > { %8343 = dma.done.wait (%p8152_p2), %s6961_s20, 4096  }
 0x389   : > { %8345 = vsyncadd (%p8152_p2), %s6961_s20, 4294963200  ;;  %s20_s29 = sadd.s32 1, %s8368_s29   ;;  %s10771_s24 = smov %s8352_s25 }
 0x38a   : > { %p17_p3 = scmp.ge.s32.totalorder %s20_s29, 4   ;;  %s10772_s25 = smov %s8356_s26 }
 0x38b   : > { %s10773_s26 = smov %s8473_s14  ;;  %s10774_s27 = smov %s8364_s28 }
 0x38c   : > { %s10775_s28 = smov %s10777_s9  ;;  %19 = sbr.rel (!%p17_p3) target bundleno = 4 (0x4), region = 85 }
 0x391   :  { %6966 = vsyncpa [#allocation3], 1 }
 0x392   :  { %6968 = vsyncpa [#allocation3 + $0x1], 1 }

</bundles_post_ra>
